<compile_context>
chip_gen: v7x
topology: tpu7x:2x2x1
jax: 0.10.0
libtpu: 0.0.40
codegen_flags: <defaults>
</compile_context>

<pallas_src>
import jax
import jax.numpy as jnp
from jax.experimental import pallas as pl
from jax.experimental.pallas import tpu as pltpu


def cdcnn_kernel(
    patch_ref,
    w11e_ref, b11_ref, w12e_ref, b12_ref, w13_ref, b13_ref,
    w2a_ref, w2b_ref, w2c_ref, b2_ref,
    r1wa_ref, r1ba_ref, r1wb_ref, r1bb_ref,
    r2wa_ref, r2ba_ref, r2wb_ref, r2bb_ref,
    w3_ref, b3_ref, w4_ref, b4_ref, w5_ref, b5_ref,
    wfc_ref, bfc_ref,
    out_ref,
):
    f32 = jnp.float32
    bf16 = jnp.bfloat16
    patch = patch_ref[...]                      # (TN, 25*band) bf16, (h, w, c) order

    def mm(x, w):
        return jnp.dot(x, w, preferred_element_type=f32)

    def cast(v):
        return v.astype(bf16)

    # ---- conv11 branch: 25 full-patch matmuls (zero-embedded 1x1 weights),
    #      then MaxPool2d(5x5) -> 1x1 via tree-max (pure VPU elementwise) ----
    y11 = mm(patch, w11e_ref[0])
    for p in range(1, 25):
        y11 = jnp.maximum(y11, mm(patch, w11e_ref[p]))
    y11 = y11 + b11_ref[...]                    # bias commutes with max

    # Start conv2 (torch.cat + 1x1 conv, split into K=128 matmuls) immediately so
    # y11 dies before the conv12 work begins (short live range -> fewer spills).
    x1 = mm(cast(y11), w2a_ref[...]) + b2_ref[...]

    # ---- conv13: 5x5 conv == dense layer over the whole patch ----
    y13 = mm(patch, w13_ref[...]) + b13_ref[...]
    x1 = x1 + mm(cast(y13), w2c_ref[...])

    # ---- conv12 branch: 9 full-patch matmuls (zero-embedded 3x3 kernels, one per
    #      valid output position), then MaxPool2d(3x3) -> 1x1 via tree-max ----
    y12 = mm(patch, w12e_ref[0])
    for q in range(1, 9):
        y12 = jnp.maximum(y12, mm(patch, w12e_ref[q]))
    y12 = y12 + b12_ref[...]
    x1 = x1 + mm(cast(y12), w2b_ref[...])

    # ---- res_net1 (batch_normal=True): relu(conv_b(BN(relu(conv_a(x)))) + x)
    #      eval-mode BN is folded into r1wb / r1bb ahead of time ----
    y = mm(cast(x1), r1wa_ref[...]) + r1ba_ref[...]
    y = jnp.maximum(y, 0.0)
    y = mm(cast(y), r1wb_ref[...]) + r1bb_ref[...]
    x1 = jnp.maximum(y + x1, 0.0)

    # ---- res_net2 (no BN): relu(conv_b(relu(conv_a(x))) + x) ----
    y = mm(cast(x1), r2wa_ref[...]) + r2ba_ref[...]
    y = jnp.maximum(y, 0.0)
    y = mm(cast(y), r2wb_ref[...]) + r2bb_ref[...]
    x1 = jnp.maximum(y + x1, 0.0)

    # ---- conv3/4/5: ReLU -> (Dropout == identity at inference) -> 1x1 conv ----
    # x1 leaving res_net2 is already >= 0, so conv3's ReLU is a no-op.
    x1 = mm(cast(x1), w3_ref[...]) + b3_ref[...]
    x1 = mm(cast(jnp.maximum(x1, 0.0)), w4_ref[...]) + b4_ref[...]
    x1 = mm(cast(jnp.maximum(x1, 0.0)), w5_ref[...]) + b5_ref[...]

    # ---- flatten (spatial is 1x1) + Linear(128, classes), lane-padded to 128,
    #      stored in bf16 (halves output HBM writeback) ----
    out_ref[...] = (mm(cast(x1), wfc_ref[...]) + bfc_ref[...]).astype(out_ref.dtype)


def make_params(band, classes, key):
    """Deterministic parameters in PyTorch layouts, converted to kernel layout (bf16)."""
    keys = iter(jax.random.split(key, 32))
    f32, bf16 = jnp.float32, jnp.bfloat16
    K = 25 * band

    def conv_w(cout, cin, kh, kw):
        return jax.random.normal(next(keys), (cout, cin, kh, kw), f32) * 0.05

    def bias(cout):
        return (jax.random.normal(next(keys), (cout,), f32) * 0.01).reshape(1, cout)

    def as_mat_1x1(w):       # (Cout, Cin, 1, 1) -> (Cin, Cout)
        return w.reshape(w.shape[0], w.shape[1]).T.astype(bf16)

    # conv11: zero-embed the (band, 128) 1x1 weight at each of the 25 pixel offsets
    # of the (h, w, c)-ordered patch vector -> (25, 25*band, 128).
    w11 = conv_w(128, band, 1, 1).reshape(128, band).T            # (band, 128)
    b11 = bias(128)
    w11e = jnp.zeros((25, K, 128), f32)
    for p in range(25):
        w11e = w11e.at[p, p * band:(p + 1) * band, :].set(w11)
    w11e = w11e.astype(bf16)

    # conv12: zero-embed the full 3x3 kernel at each of the 9 valid output positions
    # -> (9, 25*band, 128).  conv output (oi, oj) = patch @ w12e[oi*3+oj].
    w12 = conv_w(128, band, 3, 3)                                 # (128, band, 3, 3)
    w12_t = jnp.transpose(w12, (2, 3, 1, 0))                      # (kh, kw, band, 128)
    b12 = bias(128)
    w12e = jnp.zeros((9, K, 128), f32)
    for oi in range(3):
        for oj in range(3):
            q = oi * 3 + oj
            for ki in range(3):
                for kj in range(3):
                    pix = (oi + ki) * 5 + (oj + kj)
                    w12e = w12e.at[q, pix * band:(pix + 1) * band, :].set(w12_t[ki, kj])
    w12e = w12e.astype(bf16)

    # conv13: 5x5 conv over the whole 5x5 patch -> (25*band, 128), (kh, kw, cin) order.
    w13 = conv_w(128, band, 5, 5)
    w13 = jnp.transpose(w13, (2, 3, 1, 0)).reshape(K, 128).astype(bf16)
    b13 = bias(128)

    # conv2 (1x1, 384 -> 128), split along the concat axis: conv11 | conv12 | conv13.
    w2 = conv_w(128, 384, 1, 1).reshape(128, 384)
    w2a = w2[:, 0:128].T.astype(bf16)
    w2b = w2[:, 128:256].T.astype(bf16)
    w2c = w2[:, 256:384].T.astype(bf16)
    b2 = bias(128)

    # res_net1 (batch_normal=True): fold eval-mode BN (eps=1e-3, PyTorch init stats)
    # into the second conv:  W' = diag(scale) @ W,  b' = shift @ W + b.
    r1wa, r1ba = as_mat_1x1(conv_w(128, 128, 1, 1)), bias(128)
    r1wb_raw = conv_w(128, 128, 1, 1).reshape(128, 128).T         # (Cin, Cout) f32
    r1bb_raw = bias(128)
    gamma = jnp.ones((128,), f32)
    beta = jnp.zeros((128,), f32)
    r_mean = jnp.zeros((128,), f32)
    r_var = jnp.ones((128,), f32)
    scale = gamma / jnp.sqrt(r_var + 1e-3)
    shift = beta - r_mean * scale
    r1wb = (scale[:, None] * r1wb_raw).astype(bf16)
    r1bb = shift.reshape(1, 128) @ r1wb_raw + r1bb_raw

    # res_net2 (no BN)
    r2wa, r2ba = as_mat_1x1(conv_w(128, 128, 1, 1)), bias(128)
    r2wb, r2bb = as_mat_1x1(conv_w(128, 128, 1, 1)), bias(128)

    w3, b3 = as_mat_1x1(conv_w(128, 128, 1, 1)), bias(128)
    w4, b4 = as_mat_1x1(conv_w(128, 128, 1, 1)), bias(128)
    w5, b5 = as_mat_1x1(conv_w(128, 128, 1, 1)), bias(128)

    # Linear(128, classes), padded to 128 output lanes (dense store; slice outside).
    wfc = jax.random.normal(next(keys), (classes, 128), f32) * 0.05
    bfc = jax.random.normal(next(keys), (classes,), f32) * 0.01
    wfc_pad = jnp.zeros((128, 128), f32).at[:, :classes].set(wfc.T).astype(bf16)
    bfc_pad = jnp.zeros((1, 128), f32).at[:, :classes].set(bfc.reshape(1, -1))

    return (
        w11e, b11, w12e, b12, w13, b13,
        w2a, w2b, w2c, b2,
        r1wa, r1ba, r1wb, r1bb,
        r2wa, r2ba, r2wb, r2bb,
        w3, b3, w4, b4, w5, b5,
        wfc_pad, bfc_pad,
    )


def cdcnn_forward(x, params, classes, *, block_n=512):
    """x: (N, 1, 5, 5, band) float32, matching the PyTorch forward's input layout."""
    n, one, h, w, band = x.shape
    assert one == 1 and h == 5 and w == 5, "CDCNN requires 5x5 spatial patches"

    # Raw 5x5 patch, pixel-major (h, w, c) layout; only this goes HBM -> VMEM per tile.
    patch = x[:, 0].reshape(n, 25 * band).astype(jnp.bfloat16)

    # Tile/grid selection: minimize padding, multiples of 8 rows, and (when the batch
    # allows it) grid >= 2 so the "parallel" batch axis splits across v7x's two TCs.
    n8 = pl.cdiv(n, 8) * 8
    g = pl.cdiv(n8, block_n)
    if g == 1 and n8 >= 16:
        g = 2
    tn = pl.cdiv(pl.cdiv(n8, g), 8) * 8
    n_pad = tn * g
    if n_pad != n:
        patch = jnp.pad(patch, ((0, n_pad - n), (0, 0)))
    grid = (g,)

    patch_spec = pl.BlockSpec((tn, 25 * band), lambda i: (i, 0))
    # Weights/biases: full-array blocks with constant index_map -> DMA'd once, resident.
    # (Single-buffering them via pipeline_mode is not needed at small band: VMEM use is
    #  far below budget on every generation.)
    weight_specs = [
        pl.BlockSpec(p.shape, lambda i, nd=p.ndim: (0,) * nd) for p in params
    ]
    out_spec = pl.BlockSpec((tn, 128), lambda i: (i, 0))

    out = pl.pallas_call(
        cdcnn_kernel,
        out_shape=jax.ShapeDtypeStruct((n_pad, 128), jnp.bfloat16),
        grid_spec=pltpu.PrefetchScalarGridSpec(
            num_scalar_prefetch=0,
            grid=grid,
            in_specs=[patch_spec] + weight_specs,
            out_specs=out_spec,
        ),
        compiler_params=pltpu.CompilerParams(
            dimension_semantics=("parallel",),
            vmem_limit_bytes=48 * 1024 * 1024,
        ),
    )(patch, *params)

    return out[:n, :classes].astype(jnp.float32)


if __name__ == "__main__":
    band, classes, batch = 4, 10, 8
    key = jax.random.PRNGKey(0)
    kx, kp = jax.random.split(key)

    x = jax.random.normal(kx, (batch, 1, 5, 5, band), jnp.float32)
    params = make_params(band, classes, kp)

    out = cdcnn_forward(x, params, classes)
    out = jax.block_until_ready(out)
    assert out.shape == (batch, classes)
    assert bool(jnp.all(jnp.isfinite(out)))
    print("KERNEL_OK")
</pallas_src>

<mosaic_0001>
module attributes {stable_mosaic.version = 11 : i64} {
  func.func @cdcnn_kernel(%arg0: i32, %arg1: memref<8x100xbf16, #tpu.memory_space<vmem>>, %arg2: memref<25x100x128xbf16, #tpu.memory_space<vmem>>, %arg3: memref<1x128xf32, #tpu.memory_space<vmem>>, %arg4: memref<9x100x128xbf16, #tpu.memory_space<vmem>>, %arg5: memref<1x128xf32, #tpu.memory_space<vmem>>, %arg6: memref<100x128xbf16, #tpu.memory_space<vmem>>, %arg7: memref<1x128xf32, #tpu.memory_space<vmem>>, %arg8: memref<128x128xbf16, #tpu.memory_space<vmem>>, %arg9: memref<128x128xbf16, #tpu.memory_space<vmem>>, %arg10: memref<128x128xbf16, #tpu.memory_space<vmem>>, %arg11: memref<1x128xf32, #tpu.memory_space<vmem>>, %arg12: memref<128x128xbf16, #tpu.memory_space<vmem>>, %arg13: memref<1x128xf32, #tpu.memory_space<vmem>>, %arg14: memref<128x128xbf16, #tpu.memory_space<vmem>>, %arg15: memref<1x128xf32, #tpu.memory_space<vmem>>, %arg16: memref<128x128xbf16, #tpu.memory_space<vmem>>, %arg17: memref<1x128xf32, #tpu.memory_space<vmem>>, %arg18: memref<128x128xbf16, #tpu.memory_space<vmem>>, %arg19: memref<1x128xf32, #tpu.memory_space<vmem>>, %arg20: memref<128x128xbf16, #tpu.memory_space<vmem>>, %arg21: memref<1x128xf32, #tpu.memory_space<vmem>>, %arg22: memref<128x128xbf16, #tpu.memory_space<vmem>>, %arg23: memref<1x128xf32, #tpu.memory_space<vmem>>, %arg24: memref<128x128xbf16, #tpu.memory_space<vmem>>, %arg25: memref<1x128xf32, #tpu.memory_space<vmem>>, %arg26: memref<128x128xbf16, #tpu.memory_space<vmem>>, %arg27: memref<1x128xf32, #tpu.memory_space<vmem>>, %arg28: memref<8x128xbf16, #tpu.memory_space<vmem>>) attributes {dimension_semantics = [#tpu.dimension_semantics<parallel>], iteration_bounds = array<i64: 1>, scalar_prefetch = 0 : i64, scratch_operands = 0 : i64, tpu.core_type = #tpu.core_type<tc>, window_params = [{transform_indices = @transform_0, window_bounds = array<i64: 8, 100>}, {pipeline_mode = #tpu.pipeline_mode<synchronous>, transform_indices = @transform_1, window_bounds = array<i64: 25, 100, 128>}, {pipeline_mode = #tpu.pipeline_mode<synchronous>, transform_indices = @transform_2, window_bounds = array<i64: 1, 128>}, {pipeline_mode = #tpu.pipeline_mode<synchronous>, transform_indices = @transform_3, window_bounds = array<i64: 9, 100, 128>}, {pipeline_mode = #tpu.pipeline_mode<synchronous>, transform_indices = @transform_4, window_bounds = array<i64: 1, 128>}, {pipeline_mode = #tpu.pipeline_mode<synchronous>, transform_indices = @transform_5, window_bounds = array<i64: 100, 128>}, {pipeline_mode = #tpu.pipeline_mode<synchronous>, transform_indices = @transform_6, window_bounds = array<i64: 1, 128>}, {pipeline_mode = #tpu.pipeline_mode<synchronous>, transform_indices = @transform_7, window_bounds = array<i64: 128, 128>}, {pipeline_mode = #tpu.pipeline_mode<synchronous>, transform_indices = @transform_8, window_bounds = array<i64: 128, 128>}, {pipeline_mode = #tpu.pipeline_mode<synchronous>, transform_indices = @transform_9, window_bounds = array<i64: 128, 128>}, {pipeline_mode = #tpu.pipeline_mode<synchronous>, transform_indices = @transform_10, window_bounds = array<i64: 1, 128>}, {pipeline_mode = #tpu.pipeline_mode<synchronous>, transform_indices = @transform_11, window_bounds = array<i64: 128, 128>}, {pipeline_mode = #tpu.pipeline_mode<synchronous>, transform_indices = @transform_12, window_bounds = array<i64: 1, 128>}, {pipeline_mode = #tpu.pipeline_mode<synchronous>, transform_indices = @transform_13, window_bounds = array<i64: 128, 128>}, {pipeline_mode = #tpu.pipeline_mode<synchronous>, transform_indices = @transform_14, window_bounds = array<i64: 1, 128>}, {pipeline_mode = #tpu.pipeline_mode<synchronous>, transform_indices = @transform_15, window_bounds = array<i64: 128, 128>}, {pipeline_mode = #tpu.pipeline_mode<synchronous>, transform_indices = @transform_16, window_bounds = array<i64: 1, 128>}, {pipeline_mode = #tpu.pipeline_mode<synchronous>, transform_indices = @transform_17, window_bounds = array<i64: 128, 128>}, {pipeline_mode = #tpu.pipeline_mode<synchronous>, transform_indices = @transform_18, window_bounds = array<i64: 1, 128>}, {pipeline_mode = #tpu.pipeline_mode<synchronous>, transform_indices = @transform_19, window_bounds = array<i64: 128, 128>}, {pipeline_mode = #tpu.pipeline_mode<synchronous>, transform_indices = @transform_20, window_bounds = array<i64: 1, 128>}, {pipeline_mode = #tpu.pipeline_mode<synchronous>, transform_indices = @transform_21, window_bounds = array<i64: 128, 128>}, {pipeline_mode = #tpu.pipeline_mode<synchronous>, transform_indices = @transform_22, window_bounds = array<i64: 1, 128>}, {pipeline_mode = #tpu.pipeline_mode<synchronous>, transform_indices = @transform_23, window_bounds = array<i64: 128, 128>}, {pipeline_mode = #tpu.pipeline_mode<synchronous>, transform_indices = @transform_24, window_bounds = array<i64: 1, 128>}, {pipeline_mode = #tpu.pipeline_mode<synchronous>, transform_indices = @transform_25, window_bounds = array<i64: 128, 128>}, {pipeline_mode = #tpu.pipeline_mode<synchronous>, transform_indices = @transform_26, window_bounds = array<i64: 1, 128>}, {transform_indices = @transform_27, window_bounds = array<i64: 8, 128>}]} {
    %c0 = arith.constant 0 : index
    %c0_0 = arith.constant 0 : index
    %0 = vector.load %arg1[%c0, %c0_0] : memref<8x100xbf16, #tpu.memory_space<vmem>>, vector<8x100xbf16>
    %c0_1 = arith.constant 0 : index
    %c0_2 = arith.constant 0 : index
    %c0_3 = arith.constant 0 : index
    %1 = vector.load %arg2[%c0_1, %c0_2, %c0_3] : memref<25x100x128xbf16, #tpu.memory_space<vmem>>, vector<1x100x128xbf16>
    %2 = vector.shape_cast %1 : vector<1x100x128xbf16> to vector<100x128xbf16>
    %cst = arith.constant dense<0.000000e+00> : vector<8x128xf32>
    %3 = tpu.matmul %0, %2, %cst {dimension_numbers = #tpu.dot_dimension_numbers<[1], [0], [0], [1], [0, 0, 1, 1], [], []>} : vector<8x100xbf16>, vector<100x128xbf16>, vector<8x128xf32> -> vector<8x128xf32>
    %c1 = arith.constant 1 : index
    %c0_4 = arith.constant 0 : index
    %c0_5 = arith.constant 0 : index
    %4 = vector.load %arg2[%c1, %c0_4, %c0_5] : memref<25x100x128xbf16, #tpu.memory_space<vmem>>, vector<1x100x128xbf16>
    %5 = vector.shape_cast %4 : vector<1x100x128xbf16> to vector<100x128xbf16>
    %cst_6 = arith.constant dense<0.000000e+00> : vector<8x128xf32>
    %6 = tpu.matmul %0, %5, %cst_6 {dimension_numbers = #tpu.dot_dimension_numbers<[1], [0], [0], [1], [0, 0, 1, 1], [], []>} : vector<8x100xbf16>, vector<100x128xbf16>, vector<8x128xf32> -> vector<8x128xf32>
    %7 = arith.maximumf %3, %6 : vector<8x128xf32>
    %c2 = arith.constant 2 : index
    %c0_7 = arith.constant 0 : index
    %c0_8 = arith.constant 0 : index
    %8 = vector.load %arg2[%c2, %c0_7, %c0_8] : memref<25x100x128xbf16, #tpu.memory_space<vmem>>, vector<1x100x128xbf16>
    %9 = vector.shape_cast %8 : vector<1x100x128xbf16> to vector<100x128xbf16>
    %cst_9 = arith.constant dense<0.000000e+00> : vector<8x128xf32>
    %10 = tpu.matmul %0, %9, %cst_9 {dimension_numbers = #tpu.dot_dimension_numbers<[1], [0], [0], [1], [0, 0, 1, 1], [], []>} : vector<8x100xbf16>, vector<100x128xbf16>, vector<8x128xf32> -> vector<8x128xf32>
    %11 = arith.maximumf %7, %10 : vector<8x128xf32>
    %c3 = arith.constant 3 : index
    %c0_10 = arith.constant 0 : index
    %c0_11 = arith.constant 0 : index
    %12 = vector.load %arg2[%c3, %c0_10, %c0_11] : memref<25x100x128xbf16, #tpu.memory_space<vmem>>, vector<1x100x128xbf16>
    %13 = vector.shape_cast %12 : vector<1x100x128xbf16> to vector<100x128xbf16>
    %cst_12 = arith.constant dense<0.000000e+00> : vector<8x128xf32>
    %14 = tpu.matmul %0, %13, %cst_12 {dimension_numbers = #tpu.dot_dimension_numbers<[1], [0], [0], [1], [0, 0, 1, 1], [], []>} : vector<8x100xbf16>, vector<100x128xbf16>, vector<8x128xf32> -> vector<8x128xf32>
    %15 = arith.maximumf %11, %14 : vector<8x128xf32>
    %c4 = arith.constant 4 : index
    %c0_13 = arith.constant 0 : index
    %c0_14 = arith.constant 0 : index
    %16 = vector.load %arg2[%c4, %c0_13, %c0_14] : memref<25x100x128xbf16, #tpu.memory_space<vmem>>, vector<1x100x128xbf16>
    %17 = vector.shape_cast %16 : vector<1x100x128xbf16> to vector<100x128xbf16>
    %cst_15 = arith.constant dense<0.000000e+00> : vector<8x128xf32>
    %18 = tpu.matmul %0, %17, %cst_15 {dimension_numbers = #tpu.dot_dimension_numbers<[1], [0], [0], [1], [0, 0, 1, 1], [], []>} : vector<8x100xbf16>, vector<100x128xbf16>, vector<8x128xf32> -> vector<8x128xf32>
    %19 = arith.maximumf %15, %18 : vector<8x128xf32>
    %c5 = arith.constant 5 : index
    %c0_16 = arith.constant 0 : index
    %c0_17 = arith.constant 0 : index
    %20 = vector.load %arg2[%c5, %c0_16, %c0_17] : memref<25x100x128xbf16, #tpu.memory_space<vmem>>, vector<1x100x128xbf16>
    %21 = vector.shape_cast %20 : vector<1x100x128xbf16> to vector<100x128xbf16>
    %cst_18 = arith.constant dense<0.000000e+00> : vector<8x128xf32>
    %22 = tpu.matmul %0, %21, %cst_18 {dimension_numbers = #tpu.dot_dimension_numbers<[1], [0], [0], [1], [0, 0, 1, 1], [], []>} : vector<8x100xbf16>, vector<100x128xbf16>, vector<8x128xf32> -> vector<8x128xf32>
    %23 = arith.maximumf %19, %22 : vector<8x128xf32>
    %c6 = arith.constant 6 : index
    %c0_19 = arith.constant 0 : index
    %c0_20 = arith.constant 0 : index
    %24 = vector.load %arg2[%c6, %c0_19, %c0_20] : memref<25x100x128xbf16, #tpu.memory_space<vmem>>, vector<1x100x128xbf16>
    %25 = vector.shape_cast %24 : vector<1x100x128xbf16> to vector<100x128xbf16>
    %cst_21 = arith.constant dense<0.000000e+00> : vector<8x128xf32>
    %26 = tpu.matmul %0, %25, %cst_21 {dimension_numbers = #tpu.dot_dimension_numbers<[1], [0], [0], [1], [0, 0, 1, 1], [], []>} : vector<8x100xbf16>, vector<100x128xbf16>, vector<8x128xf32> -> vector<8x128xf32>
    %27 = arith.maximumf %23, %26 : vector<8x128xf32>
    %c7 = arith.constant 7 : index
    %c0_22 = arith.constant 0 : index
    %c0_23 = arith.constant 0 : index
    %28 = vector.load %arg2[%c7, %c0_22, %c0_23] : memref<25x100x128xbf16, #tpu.memory_space<vmem>>, vector<1x100x128xbf16>
    %29 = vector.shape_cast %28 : vector<1x100x128xbf16> to vector<100x128xbf16>
    %cst_24 = arith.constant dense<0.000000e+00> : vector<8x128xf32>
    %30 = tpu.matmul %0, %29, %cst_24 {dimension_numbers = #tpu.dot_dimension_numbers<[1], [0], [0], [1], [0, 0, 1, 1], [], []>} : vector<8x100xbf16>, vector<100x128xbf16>, vector<8x128xf32> -> vector<8x128xf32>
    %31 = arith.maximumf %27, %30 : vector<8x128xf32>
    %c8 = arith.constant 8 : index
    %c0_25 = arith.constant 0 : index
    %c0_26 = arith.constant 0 : index
    %32 = vector.load %arg2[%c8, %c0_25, %c0_26] : memref<25x100x128xbf16, #tpu.memory_space<vmem>>, vector<1x100x128xbf16>
    %33 = vector.shape_cast %32 : vector<1x100x128xbf16> to vector<100x128xbf16>
    %cst_27 = arith.constant dense<0.000000e+00> : vector<8x128xf32>
    %34 = tpu.matmul %0, %33, %cst_27 {dimension_numbers = #tpu.dot_dimension_numbers<[1], [0], [0], [1], [0, 0, 1, 1], [], []>} : vector<8x100xbf16>, vector<100x128xbf16>, vector<8x128xf32> -> vector<8x128xf32>
    %35 = arith.maximumf %31, %34 : vector<8x128xf32>
    %c9 = arith.constant 9 : index
    %c0_28 = arith.constant 0 : index
    %c0_29 = arith.constant 0 : index
    %36 = vector.load %arg2[%c9, %c0_28, %c0_29] : memref<25x100x128xbf16, #tpu.memory_space<vmem>>, vector<1x100x128xbf16>
    %37 = vector.shape_cast %36 : vector<1x100x128xbf16> to vector<100x128xbf16>
    %cst_30 = arith.constant dense<0.000000e+00> : vector<8x128xf32>
    %38 = tpu.matmul %0, %37, %cst_30 {dimension_numbers = #tpu.dot_dimension_numbers<[1], [0], [0], [1], [0, 0, 1, 1], [], []>} : vector<8x100xbf16>, vector<100x128xbf16>, vector<8x128xf32> -> vector<8x128xf32>
    %39 = arith.maximumf %35, %38 : vector<8x128xf32>
    %c10 = arith.constant 10 : index
    %c0_31 = arith.constant 0 : index
    %c0_32 = arith.constant 0 : index
    %40 = vector.load %arg2[%c10, %c0_31, %c0_32] : memref<25x100x128xbf16, #tpu.memory_space<vmem>>, vector<1x100x128xbf16>
    %41 = vector.shape_cast %40 : vector<1x100x128xbf16> to vector<100x128xbf16>
    %cst_33 = arith.constant dense<0.000000e+00> : vector<8x128xf32>
    %42 = tpu.matmul %0, %41, %cst_33 {dimension_numbers = #tpu.dot_dimension_numbers<[1], [0], [0], [1], [0, 0, 1, 1], [], []>} : vector<8x100xbf16>, vector<100x128xbf16>, vector<8x128xf32> -> vector<8x128xf32>
    %43 = arith.maximumf %39, %42 : vector<8x128xf32>
    %c11 = arith.constant 11 : index
    %c0_34 = arith.constant 0 : index
    %c0_35 = arith.constant 0 : index
    %44 = vector.load %arg2[%c11, %c0_34, %c0_35] : memref<25x100x128xbf16, #tpu.memory_space<vmem>>, vector<1x100x128xbf16>
    %45 = vector.shape_cast %44 : vector<1x100x128xbf16> to vector<100x128xbf16>
    %cst_36 = arith.constant dense<0.000000e+00> : vector<8x128xf32>
    %46 = tpu.matmul %0, %45, %cst_36 {dimension_numbers = #tpu.dot_dimension_numbers<[1], [0], [0], [1], [0, 0, 1, 1], [], []>} : vector<8x100xbf16>, vector<100x128xbf16>, vector<8x128xf32> -> vector<8x128xf32>
    %47 = arith.maximumf %43, %46 : vector<8x128xf32>
    %c12 = arith.constant 12 : index
    %c0_37 = arith.constant 0 : index
    %c0_38 = arith.constant 0 : index
    %48 = vector.load %arg2[%c12, %c0_37, %c0_38] : memref<25x100x128xbf16, #tpu.memory_space<vmem>>, vector<1x100x128xbf16>
    %49 = vector.shape_cast %48 : vector<1x100x128xbf16> to vector<100x128xbf16>
    %cst_39 = arith.constant dense<0.000000e+00> : vector<8x128xf32>
    %50 = tpu.matmul %0, %49, %cst_39 {dimension_numbers = #tpu.dot_dimension_numbers<[1], [0], [0], [1], [0, 0, 1, 1], [], []>} : vector<8x100xbf16>, vector<100x128xbf16>, vector<8x128xf32> -> vector<8x128xf32>
    %51 = arith.maximumf %47, %50 : vector<8x128xf32>
    %c13 = arith.constant 13 : index
    %c0_40 = arith.constant 0 : index
    %c0_41 = arith.constant 0 : index
    %52 = vector.load %arg2[%c13, %c0_40, %c0_41] : memref<25x100x128xbf16, #tpu.memory_space<vmem>>, vector<1x100x128xbf16>
    %53 = vector.shape_cast %52 : vector<1x100x128xbf16> to vector<100x128xbf16>
    %cst_42 = arith.constant dense<0.000000e+00> : vector<8x128xf32>
    %54 = tpu.matmul %0, %53, %cst_42 {dimension_numbers = #tpu.dot_dimension_numbers<[1], [0], [0], [1], [0, 0, 1, 1], [], []>} : vector<8x100xbf16>, vector<100x128xbf16>, vector<8x128xf32> -> vector<8x128xf32>
    %55 = arith.maximumf %51, %54 : vector<8x128xf32>
    %c14 = arith.constant 14 : index
    %c0_43 = arith.constant 0 : index
    %c0_44 = arith.constant 0 : index
    %56 = vector.load %arg2[%c14, %c0_43, %c0_44] : memref<25x100x128xbf16, #tpu.memory_space<vmem>>, vector<1x100x128xbf16>
    %57 = vector.shape_cast %56 : vector<1x100x128xbf16> to vector<100x128xbf16>
    %cst_45 = arith.constant dense<0.000000e+00> : vector<8x128xf32>
    %58 = tpu.matmul %0, %57, %cst_45 {dimension_numbers = #tpu.dot_dimension_numbers<[1], [0], [0], [1], [0, 0, 1, 1], [], []>} : vector<8x100xbf16>, vector<100x128xbf16>, vector<8x128xf32> -> vector<8x128xf32>
    %59 = arith.maximumf %55, %58 : vector<8x128xf32>
    %c15 = arith.constant 15 : index
    %c0_46 = arith.constant 0 : index
    %c0_47 = arith.constant 0 : index
    %60 = vector.load %arg2[%c15, %c0_46, %c0_47] : memref<25x100x128xbf16, #tpu.memory_space<vmem>>, vector<1x100x128xbf16>
    %61 = vector.shape_cast %60 : vector<1x100x128xbf16> to vector<100x128xbf16>
    %cst_48 = arith.constant dense<0.000000e+00> : vector<8x128xf32>
    %62 = tpu.matmul %0, %61, %cst_48 {dimension_numbers = #tpu.dot_dimension_numbers<[1], [0], [0], [1], [0, 0, 1, 1], [], []>} : vector<8x100xbf16>, vector<100x128xbf16>, vector<8x128xf32> -> vector<8x128xf32>
    %63 = arith.maximumf %59, %62 : vector<8x128xf32>
    %c16 = arith.constant 16 : index
    %c0_49 = arith.constant 0 : index
    %c0_50 = arith.constant 0 : index
    %64 = vector.load %arg2[%c16, %c0_49, %c0_50] : memref<25x100x128xbf16, #tpu.memory_space<vmem>>, vector<1x100x128xbf16>
    %65 = vector.shape_cast %64 : vector<1x100x128xbf16> to vector<100x128xbf16>
    %cst_51 = arith.constant dense<0.000000e+00> : vector<8x128xf32>
    %66 = tpu.matmul %0, %65, %cst_51 {dimension_numbers = #tpu.dot_dimension_numbers<[1], [0], [0], [1], [0, 0, 1, 1], [], []>} : vector<8x100xbf16>, vector<100x128xbf16>, vector<8x128xf32> -> vector<8x128xf32>
    %67 = arith.maximumf %63, %66 : vector<8x128xf32>
    %c17 = arith.constant 17 : index
    %c0_52 = arith.constant 0 : index
    %c0_53 = arith.constant 0 : index
    %68 = vector.load %arg2[%c17, %c0_52, %c0_53] : memref<25x100x128xbf16, #tpu.memory_space<vmem>>, vector<1x100x128xbf16>
    %69 = vector.shape_cast %68 : vector<1x100x128xbf16> to vector<100x128xbf16>
    %cst_54 = arith.constant dense<0.000000e+00> : vector<8x128xf32>
    %70 = tpu.matmul %0, %69, %cst_54 {dimension_numbers = #tpu.dot_dimension_numbers<[1], [0], [0], [1], [0, 0, 1, 1], [], []>} : vector<8x100xbf16>, vector<100x128xbf16>, vector<8x128xf32> -> vector<8x128xf32>
    %71 = arith.maximumf %67, %70 : vector<8x128xf32>
    %c18 = arith.constant 18 : index
    %c0_55 = arith.constant 0 : index
    %c0_56 = arith.constant 0 : index
    %72 = vector.load %arg2[%c18, %c0_55, %c0_56] : memref<25x100x128xbf16, #tpu.memory_space<vmem>>, vector<1x100x128xbf16>
    %73 = vector.shape_cast %72 : vector<1x100x128xbf16> to vector<100x128xbf16>
    %cst_57 = arith.constant dense<0.000000e+00> : vector<8x128xf32>
    %74 = tpu.matmul %0, %73, %cst_57 {dimension_numbers = #tpu.dot_dimension_numbers<[1], [0], [0], [1], [0, 0, 1, 1], [], []>} : vector<8x100xbf16>, vector<100x128xbf16>, vector<8x128xf32> -> vector<8x128xf32>
    %75 = arith.maximumf %71, %74 : vector<8x128xf32>
    %c19 = arith.constant 19 : index
    %c0_58 = arith.constant 0 : index
    %c0_59 = arith.constant 0 : index
    %76 = vector.load %arg2[%c19, %c0_58, %c0_59] : memref<25x100x128xbf16, #tpu.memory_space<vmem>>, vector<1x100x128xbf16>
    %77 = vector.shape_cast %76 : vector<1x100x128xbf16> to vector<100x128xbf16>
    %cst_60 = arith.constant dense<0.000000e+00> : vector<8x128xf32>
    %78 = tpu.matmul %0, %77, %cst_60 {dimension_numbers = #tpu.dot_dimension_numbers<[1], [0], [0], [1], [0, 0, 1, 1], [], []>} : vector<8x100xbf16>, vector<100x128xbf16>, vector<8x128xf32> -> vector<8x128xf32>
    %79 = arith.maximumf %75, %78 : vector<8x128xf32>
    %c20 = arith.constant 20 : index
    %c0_61 = arith.constant 0 : index
    %c0_62 = arith.constant 0 : index
    %80 = vector.load %arg2[%c20, %c0_61, %c0_62] : memref<25x100x128xbf16, #tpu.memory_space<vmem>>, vector<1x100x128xbf16>
    %81 = vector.shape_cast %80 : vector<1x100x128xbf16> to vector<100x128xbf16>
    %cst_63 = arith.constant dense<0.000000e+00> : vector<8x128xf32>
    %82 = tpu.matmul %0, %81, %cst_63 {dimension_numbers = #tpu.dot_dimension_numbers<[1], [0], [0], [1], [0, 0, 1, 1], [], []>} : vector<8x100xbf16>, vector<100x128xbf16>, vector<8x128xf32> -> vector<8x128xf32>
    %83 = arith.maximumf %79, %82 : vector<8x128xf32>
    %c21 = arith.constant 21 : index
    %c0_64 = arith.constant 0 : index
    %c0_65 = arith.constant 0 : index
    %84 = vector.load %arg2[%c21, %c0_64, %c0_65] : memref<25x100x128xbf16, #tpu.memory_space<vmem>>, vector<1x100x128xbf16>
    %85 = vector.shape_cast %84 : vector<1x100x128xbf16> to vector<100x128xbf16>
    %cst_66 = arith.constant dense<0.000000e+00> : vector<8x128xf32>
    %86 = tpu.matmul %0, %85, %cst_66 {dimension_numbers = #tpu.dot_dimension_numbers<[1], [0], [0], [1], [0, 0, 1, 1], [], []>} : vector<8x100xbf16>, vector<100x128xbf16>, vector<8x128xf32> -> vector<8x128xf32>
    %87 = arith.maximumf %83, %86 : vector<8x128xf32>
    %c22 = arith.constant 22 : index
    %c0_67 = arith.constant 0 : index
    %c0_68 = arith.constant 0 : index
    %88 = vector.load %arg2[%c22, %c0_67, %c0_68] : memref<25x100x128xbf16, #tpu.memory_space<vmem>>, vector<1x100x128xbf16>
    %89 = vector.shape_cast %88 : vector<1x100x128xbf16> to vector<100x128xbf16>
    %cst_69 = arith.constant dense<0.000000e+00> : vector<8x128xf32>
    %90 = tpu.matmul %0, %89, %cst_69 {dimension_numbers = #tpu.dot_dimension_numbers<[1], [0], [0], [1], [0, 0, 1, 1], [], []>} : vector<8x100xbf16>, vector<100x128xbf16>, vector<8x128xf32> -> vector<8x128xf32>
    %91 = arith.maximumf %87, %90 : vector<8x128xf32>
    %c23 = arith.constant 23 : index
    %c0_70 = arith.constant 0 : index
    %c0_71 = arith.constant 0 : index
    %92 = vector.load %arg2[%c23, %c0_70, %c0_71] : memref<25x100x128xbf16, #tpu.memory_space<vmem>>, vector<1x100x128xbf16>
    %93 = vector.shape_cast %92 : vector<1x100x128xbf16> to vector<100x128xbf16>
    %cst_72 = arith.constant dense<0.000000e+00> : vector<8x128xf32>
    %94 = tpu.matmul %0, %93, %cst_72 {dimension_numbers = #tpu.dot_dimension_numbers<[1], [0], [0], [1], [0, 0, 1, 1], [], []>} : vector<8x100xbf16>, vector<100x128xbf16>, vector<8x128xf32> -> vector<8x128xf32>
    %95 = arith.maximumf %91, %94 : vector<8x128xf32>
    %c24 = arith.constant 24 : index
    %c0_73 = arith.constant 0 : index
    %c0_74 = arith.constant 0 : index
    %96 = vector.load %arg2[%c24, %c0_73, %c0_74] : memref<25x100x128xbf16, #tpu.memory_space<vmem>>, vector<1x100x128xbf16>
    %97 = vector.shape_cast %96 : vector<1x100x128xbf16> to vector<100x128xbf16>
    %cst_75 = arith.constant dense<0.000000e+00> : vector<8x128xf32>
    %98 = tpu.matmul %0, %97, %cst_75 {dimension_numbers = #tpu.dot_dimension_numbers<[1], [0], [0], [1], [0, 0, 1, 1], [], []>} : vector<8x100xbf16>, vector<100x128xbf16>, vector<8x128xf32> -> vector<8x128xf32>
    %99 = arith.maximumf %95, %98 : vector<8x128xf32>
    %c0_76 = arith.constant 0 : index
    %c0_77 = arith.constant 0 : index
    %100 = vector.load %arg3[%c0_76, %c0_77] : memref<1x128xf32, #tpu.memory_space<vmem>>, vector<1x128xf32>
    %101 = vector.broadcast %100 : vector<1x128xf32> to vector<8x128xf32>
    %102 = arith.addf %99, %101 : vector<8x128xf32>
    %103 = arith.truncf %102 : vector<8x128xf32> to vector<8x128xbf16>
    %c0_78 = arith.constant 0 : index
    %c0_79 = arith.constant 0 : index
    %104 = vector.load %arg8[%c0_78, %c0_79] : memref<128x128xbf16, #tpu.memory_space<vmem>>, vector<128x128xbf16>
    %cst_80 = arith.constant dense<0.000000e+00> : vector<8x128xf32>
    %105 = tpu.matmul %103, %104, %cst_80 {dimension_numbers = #tpu.dot_dimension_numbers<[1], [0], [0], [1], [0, 0, 1, 1], [], []>} : vector<8x128xbf16>, vector<128x128xbf16>, vector<8x128xf32> -> vector<8x128xf32>
    %c0_81 = arith.constant 0 : index
    %c0_82 = arith.constant 0 : index
    %106 = vector.load %arg11[%c0_81, %c0_82] : memref<1x128xf32, #tpu.memory_space<vmem>>, vector<1x128xf32>
    %107 = vector.broadcast %106 : vector<1x128xf32> to vector<8x128xf32>
    %108 = arith.addf %105, %107 : vector<8x128xf32>
    %c0_83 = arith.constant 0 : index
    %c0_84 = arith.constant 0 : index
    %109 = vector.load %arg6[%c0_83, %c0_84] : memref<100x128xbf16, #tpu.memory_space<vmem>>, vector<100x128xbf16>
    %cst_85 = arith.constant dense<0.000000e+00> : vector<8x128xf32>
    %110 = tpu.matmul %0, %109, %cst_85 {dimension_numbers = #tpu.dot_dimension_numbers<[1], [0], [0], [1], [0, 0, 1, 1], [], []>} : vector<8x100xbf16>, vector<100x128xbf16>, vector<8x128xf32> -> vector<8x128xf32>
    %c0_86 = arith.constant 0 : index
    %c0_87 = arith.constant 0 : index
    %111 = vector.load %arg7[%c0_86, %c0_87] : memref<1x128xf32, #tpu.memory_space<vmem>>, vector<1x128xf32>
    %112 = vector.broadcast %111 : vector<1x128xf32> to vector<8x128xf32>
    %113 = arith.addf %110, %112 : vector<8x128xf32>
    %114 = arith.truncf %113 : vector<8x128xf32> to vector<8x128xbf16>
    %c0_88 = arith.constant 0 : index
    %c0_89 = arith.constant 0 : index
    %115 = vector.load %arg10[%c0_88, %c0_89] : memref<128x128xbf16, #tpu.memory_space<vmem>>, vector<128x128xbf16>
    %cst_90 = arith.constant dense<0.000000e+00> : vector<8x128xf32>
    %116 = tpu.matmul %114, %115, %cst_90 {dimension_numbers = #tpu.dot_dimension_numbers<[1], [0], [0], [1], [0, 0, 1, 1], [], []>} : vector<8x128xbf16>, vector<128x128xbf16>, vector<8x128xf32> -> vector<8x128xf32>
    %117 = arith.addf %108, %116 : vector<8x128xf32>
    %c0_91 = arith.constant 0 : index
    %c0_92 = arith.constant 0 : index
    %c0_93 = arith.constant 0 : index
    %118 = vector.load %arg4[%c0_91, %c0_92, %c0_93] : memref<9x100x128xbf16, #tpu.memory_space<vmem>>, vector<1x100x128xbf16>
    %119 = vector.shape_cast %118 : vector<1x100x128xbf16> to vector<100x128xbf16>
    %cst_94 = arith.constant dense<0.000000e+00> : vector<8x128xf32>
    %120 = tpu.matmul %0, %119, %cst_94 {dimension_numbers = #tpu.dot_dimension_numbers<[1], [0], [0], [1], [0, 0, 1, 1], [], []>} : vector<8x100xbf16>, vector<100x128xbf16>, vector<8x128xf32> -> vector<8x128xf32>
    %c1_95 = arith.constant 1 : index
    %c0_96 = arith.constant 0 : index
    %c0_97 = arith.constant 0 : index
    %121 = vector.load %arg4[%c1_95, %c0_96, %c0_97] : memref<9x100x128xbf16, #tpu.memory_space<vmem>>, vector<1x100x128xbf16>
    %122 = vector.shape_cast %121 : vector<1x100x128xbf16> to vector<100x128xbf16>
    %cst_98 = arith.constant dense<0.000000e+00> : vector<8x128xf32>
    %123 = tpu.matmul %0, %122, %cst_98 {dimension_numbers = #tpu.dot_dimension_numbers<[1], [0], [0], [1], [0, 0, 1, 1], [], []>} : vector<8x100xbf16>, vector<100x128xbf16>, vector<8x128xf32> -> vector<8x128xf32>
    %124 = arith.maximumf %120, %123 : vector<8x128xf32>
    %c2_99 = arith.constant 2 : index
    %c0_100 = arith.constant 0 : index
    %c0_101 = arith.constant 0 : index
    %125 = vector.load %arg4[%c2_99, %c0_100, %c0_101] : memref<9x100x128xbf16, #tpu.memory_space<vmem>>, vector<1x100x128xbf16>
    %126 = vector.shape_cast %125 : vector<1x100x128xbf16> to vector<100x128xbf16>
    %cst_102 = arith.constant dense<0.000000e+00> : vector<8x128xf32>
    %127 = tpu.matmul %0, %126, %cst_102 {dimension_numbers = #tpu.dot_dimension_numbers<[1], [0], [0], [1], [0, 0, 1, 1], [], []>} : vector<8x100xbf16>, vector<100x128xbf16>, vector<8x128xf32> -> vector<8x128xf32>
    %128 = arith.maximumf %124, %127 : vector<8x128xf32>
    %c3_103 = arith.constant 3 : index
    %c0_104 = arith.constant 0 : index
    %c0_105 = arith.constant 0 : index
    %129 = vector.load %arg4[%c3_103, %c0_104, %c0_105] : memref<9x100x128xbf16, #tpu.memory_space<vmem>>, vector<1x100x128xbf16>
    %130 = vector.shape_cast %129 : vector<1x100x128xbf16> to vector<100x128xbf16>
    %cst_106 = arith.constant dense<0.000000e+00> : vector<8x128xf32>
    %131 = tpu.matmul %0, %130, %cst_106 {dimension_numbers = #tpu.dot_dimension_numbers<[1], [0], [0], [1], [0, 0, 1, 1], [], []>} : vector<8x100xbf16>, vector<100x128xbf16>, vector<8x128xf32> -> vector<8x128xf32>
    %132 = arith.maximumf %128, %131 : vector<8x128xf32>
    %c4_107 = arith.constant 4 : index
    %c0_108 = arith.constant 0 : index
    %c0_109 = arith.constant 0 : index
    %133 = vector.load %arg4[%c4_107, %c0_108, %c0_109] : memref<9x100x128xbf16, #tpu.memory_space<vmem>>, vector<1x100x128xbf16>
    %134 = vector.shape_cast %133 : vector<1x100x128xbf16> to vector<100x128xbf16>
    %cst_110 = arith.constant dense<0.000000e+00> : vector<8x128xf32>
    %135 = tpu.matmul %0, %134, %cst_110 {dimension_numbers = #tpu.dot_dimension_numbers<[1], [0], [0], [1], [0, 0, 1, 1], [], []>} : vector<8x100xbf16>, vector<100x128xbf16>, vector<8x128xf32> -> vector<8x128xf32>
    %136 = arith.maximumf %132, %135 : vector<8x128xf32>
    %c5_111 = arith.constant 5 : index
    %c0_112 = arith.constant 0 : index
    %c0_113 = arith.constant 0 : index
    %137 = vector.load %arg4[%c5_111, %c0_112, %c0_113] : memref<9x100x128xbf16, #tpu.memory_space<vmem>>, vector<1x100x128xbf16>
    %138 = vector.shape_cast %137 : vector<1x100x128xbf16> to vector<100x128xbf16>
    %cst_114 = arith.constant dense<0.000000e+00> : vector<8x128xf32>
    %139 = tpu.matmul %0, %138, %cst_114 {dimension_numbers = #tpu.dot_dimension_numbers<[1], [0], [0], [1], [0, 0, 1, 1], [], []>} : vector<8x100xbf16>, vector<100x128xbf16>, vector<8x128xf32> -> vector<8x128xf32>
    %140 = arith.maximumf %136, %139 : vector<8x128xf32>
    %c6_115 = arith.constant 6 : index
    %c0_116 = arith.constant 0 : index
    %c0_117 = arith.constant 0 : index
    %141 = vector.load %arg4[%c6_115, %c0_116, %c0_117] : memref<9x100x128xbf16, #tpu.memory_space<vmem>>, vector<1x100x128xbf16>
    %142 = vector.shape_cast %141 : vector<1x100x128xbf16> to vector<100x128xbf16>
    %cst_118 = arith.constant dense<0.000000e+00> : vector<8x128xf32>
    %143 = tpu.matmul %0, %142, %cst_118 {dimension_numbers = #tpu.dot_dimension_numbers<[1], [0], [0], [1], [0, 0, 1, 1], [], []>} : vector<8x100xbf16>, vector<100x128xbf16>, vector<8x128xf32> -> vector<8x128xf32>
    %144 = arith.maximumf %140, %143 : vector<8x128xf32>
    %c7_119 = arith.constant 7 : index
    %c0_120 = arith.constant 0 : index
    %c0_121 = arith.constant 0 : index
    %145 = vector.load %arg4[%c7_119, %c0_120, %c0_121] : memref<9x100x128xbf16, #tpu.memory_space<vmem>>, vector<1x100x128xbf16>
    %146 = vector.shape_cast %145 : vector<1x100x128xbf16> to vector<100x128xbf16>
    %cst_122 = arith.constant dense<0.000000e+00> : vector<8x128xf32>
    %147 = tpu.matmul %0, %146, %cst_122 {dimension_numbers = #tpu.dot_dimension_numbers<[1], [0], [0], [1], [0, 0, 1, 1], [], []>} : vector<8x100xbf16>, vector<100x128xbf16>, vector<8x128xf32> -> vector<8x128xf32>
    %148 = arith.maximumf %144, %147 : vector<8x128xf32>
    %c8_123 = arith.constant 8 : index
    %c0_124 = arith.constant 0 : index
    %c0_125 = arith.constant 0 : index
    %149 = vector.load %arg4[%c8_123, %c0_124, %c0_125] : memref<9x100x128xbf16, #tpu.memory_space<vmem>>, vector<1x100x128xbf16>
    %150 = vector.shape_cast %149 : vector<1x100x128xbf16> to vector<100x128xbf16>
    %cst_126 = arith.constant dense<0.000000e+00> : vector<8x128xf32>
    %151 = tpu.matmul %0, %150, %cst_126 {dimension_numbers = #tpu.dot_dimension_numbers<[1], [0], [0], [1], [0, 0, 1, 1], [], []>} : vector<8x100xbf16>, vector<100x128xbf16>, vector<8x128xf32> -> vector<8x128xf32>
    %152 = arith.maximumf %148, %151 : vector<8x128xf32>
    %c0_127 = arith.constant 0 : index
    %c0_128 = arith.constant 0 : index
    %153 = vector.load %arg5[%c0_127, %c0_128] : memref<1x128xf32, #tpu.memory_space<vmem>>, vector<1x128xf32>
    %154 = vector.broadcast %153 : vector<1x128xf32> to vector<8x128xf32>
    %155 = arith.addf %152, %154 : vector<8x128xf32>
    %156 = arith.truncf %155 : vector<8x128xf32> to vector<8x128xbf16>
    %c0_129 = arith.constant 0 : index
    %c0_130 = arith.constant 0 : index
    %157 = vector.load %arg9[%c0_129, %c0_130] : memref<128x128xbf16, #tpu.memory_space<vmem>>, vector<128x128xbf16>
    %cst_131 = arith.constant dense<0.000000e+00> : vector<8x128xf32>
    %158 = tpu.matmul %156, %157, %cst_131 {dimension_numbers = #tpu.dot_dimension_numbers<[1], [0], [0], [1], [0, 0, 1, 1], [], []>} : vector<8x128xbf16>, vector<128x128xbf16>, vector<8x128xf32> -> vector<8x128xf32>
    %159 = arith.addf %117, %158 : vector<8x128xf32>
    %160 = arith.truncf %159 : vector<8x128xf32> to vector<8x128xbf16>
    %c0_132 = arith.constant 0 : index
    %c0_133 = arith.constant 0 : index
    %161 = vector.load %arg12[%c0_132, %c0_133] : memref<128x128xbf16, #tpu.memory_space<vmem>>, vector<128x128xbf16>
    %cst_134 = arith.constant dense<0.000000e+00> : vector<8x128xf32>
    %162 = tpu.matmul %160, %161, %cst_134 {dimension_numbers = #tpu.dot_dimension_numbers<[1], [0], [0], [1], [0, 0, 1, 1], [], []>} : vector<8x128xbf16>, vector<128x128xbf16>, vector<8x128xf32> -> vector<8x128xf32>
    %c0_135 = arith.constant 0 : index
    %c0_136 = arith.constant 0 : index
    %163 = vector.load %arg13[%c0_135, %c0_136] : memref<1x128xf32, #tpu.memory_space<vmem>>, vector<1x128xf32>
    %164 = vector.broadcast %163 : vector<1x128xf32> to vector<8x128xf32>
    %165 = arith.addf %162, %164 : vector<8x128xf32>
    %cst_137 = arith.constant 0.000000e+00 : f32
    %166 = vector.broadcast %cst_137 : f32 to vector<8x128xf32>
    %167 = arith.maximumf %165, %166 : vector<8x128xf32>
    %168 = arith.truncf %167 : vector<8x128xf32> to vector<8x128xbf16>
    %c0_138 = arith.constant 0 : index
    %c0_139 = arith.constant 0 : index
    %169 = vector.load %arg14[%c0_138, %c0_139] : memref<128x128xbf16, #tpu.memory_space<vmem>>, vector<128x128xbf16>
    %cst_140 = arith.constant dense<0.000000e+00> : vector<8x128xf32>
    %170 = tpu.matmul %168, %169, %cst_140 {dimension_numbers = #tpu.dot_dimension_numbers<[1], [0], [0], [1], [0, 0, 1, 1], [], []>} : vector<8x128xbf16>, vector<128x128xbf16>, vector<8x128xf32> -> vector<8x128xf32>
    %c0_141 = arith.constant 0 : index
    %c0_142 = arith.constant 0 : index
    %171 = vector.load %arg15[%c0_141, %c0_142] : memref<1x128xf32, #tpu.memory_space<vmem>>, vector<1x128xf32>
    %172 = vector.broadcast %171 : vector<1x128xf32> to vector<8x128xf32>
    %173 = arith.addf %170, %172 : vector<8x128xf32>
    %174 = arith.addf %173, %159 : vector<8x128xf32>
    %cst_143 = arith.constant 0.000000e+00 : f32
    %175 = vector.broadcast %cst_143 : f32 to vector<8x128xf32>
    %176 = arith.maximumf %174, %175 : vector<8x128xf32>
    %177 = arith.truncf %176 : vector<8x128xf32> to vector<8x128xbf16>
    %c0_144 = arith.constant 0 : index
    %c0_145 = arith.constant 0 : index
    %178 = vector.load %arg16[%c0_144, %c0_145] : memref<128x128xbf16, #tpu.memory_space<vmem>>, vector<128x128xbf16>
    %cst_146 = arith.constant dense<0.000000e+00> : vector<8x128xf32>
    %179 = tpu.matmul %177, %178, %cst_146 {dimension_numbers = #tpu.dot_dimension_numbers<[1], [0], [0], [1], [0, 0, 1, 1], [], []>} : vector<8x128xbf16>, vector<128x128xbf16>, vector<8x128xf32> -> vector<8x128xf32>
    %c0_147 = arith.constant 0 : index
    %c0_148 = arith.constant 0 : index
    %180 = vector.load %arg17[%c0_147, %c0_148] : memref<1x128xf32, #tpu.memory_space<vmem>>, vector<1x128xf32>
    %181 = vector.broadcast %180 : vector<1x128xf32> to vector<8x128xf32>
    %182 = arith.addf %179, %181 : vector<8x128xf32>
    %cst_149 = arith.constant 0.000000e+00 : f32
    %183 = vector.broadcast %cst_149 : f32 to vector<8x128xf32>
    %184 = arith.maximumf %182, %183 : vector<8x128xf32>
    %185 = arith.truncf %184 : vector<8x128xf32> to vector<8x128xbf16>
    %c0_150 = arith.constant 0 : index
    %c0_151 = arith.constant 0 : index
    %186 = vector.load %arg18[%c0_150, %c0_151] : memref<128x128xbf16, #tpu.memory_space<vmem>>, vector<128x128xbf16>
    %cst_152 = arith.constant dense<0.000000e+00> : vector<8x128xf32>
    %187 = tpu.matmul %185, %186, %cst_152 {dimension_numbers = #tpu.dot_dimension_numbers<[1], [0], [0], [1], [0, 0, 1, 1], [], []>} : vector<8x128xbf16>, vector<128x128xbf16>, vector<8x128xf32> -> vector<8x128xf32>
    %c0_153 = arith.constant 0 : index
    %c0_154 = arith.constant 0 : index
    %188 = vector.load %arg19[%c0_153, %c0_154] : memref<1x128xf32, #tpu.memory_space<vmem>>, vector<1x128xf32>
    %189 = vector.broadcast %188 : vector<1x128xf32> to vector<8x128xf32>
    %190 = arith.addf %187, %189 : vector<8x128xf32>
    %191 = arith.addf %190, %176 : vector<8x128xf32>
    %cst_155 = arith.constant 0.000000e+00 : f32
    %192 = vector.broadcast %cst_155 : f32 to vector<8x128xf32>
    %193 = arith.maximumf %191, %192 : vector<8x128xf32>
    %194 = arith.truncf %193 : vector<8x128xf32> to vector<8x128xbf16>
    %c0_156 = arith.constant 0 : index
    %c0_157 = arith.constant 0 : index
    %195 = vector.load %arg20[%c0_156, %c0_157] : memref<128x128xbf16, #tpu.memory_space<vmem>>, vector<128x128xbf16>
    %cst_158 = arith.constant dense<0.000000e+00> : vector<8x128xf32>
    %196 = tpu.matmul %194, %195, %cst_158 {dimension_numbers = #tpu.dot_dimension_numbers<[1], [0], [0], [1], [0, 0, 1, 1], [], []>} : vector<8x128xbf16>, vector<128x128xbf16>, vector<8x128xf32> -> vector<8x128xf32>
    %c0_159 = arith.constant 0 : index
    %c0_160 = arith.constant 0 : index
    %197 = vector.load %arg21[%c0_159, %c0_160] : memref<1x128xf32, #tpu.memory_space<vmem>>, vector<1x128xf32>
    %198 = vector.broadcast %197 : vector<1x128xf32> to vector<8x128xf32>
    %199 = arith.addf %196, %198 : vector<8x128xf32>
    %cst_161 = arith.constant 0.000000e+00 : f32
    %200 = vector.broadcast %cst_161 : f32 to vector<8x128xf32>
    %201 = arith.maximumf %199, %200 : vector<8x128xf32>
    %202 = arith.truncf %201 : vector<8x128xf32> to vector<8x128xbf16>
    %c0_162 = arith.constant 0 : index
    %c0_163 = arith.constant 0 : index
    %203 = vector.load %arg22[%c0_162, %c0_163] : memref<128x128xbf16, #tpu.memory_space<vmem>>, vector<128x128xbf16>
    %cst_164 = arith.constant dense<0.000000e+00> : vector<8x128xf32>
    %204 = tpu.matmul %202, %203, %cst_164 {dimension_numbers = #tpu.dot_dimension_numbers<[1], [0], [0], [1], [0, 0, 1, 1], [], []>} : vector<8x128xbf16>, vector<128x128xbf16>, vector<8x128xf32> -> vector<8x128xf32>
    %c0_165 = arith.constant 0 : index
    %c0_166 = arith.constant 0 : index
    %205 = vector.load %arg23[%c0_165, %c0_166] : memref<1x128xf32, #tpu.memory_space<vmem>>, vector<1x128xf32>
    %206 = vector.broadcast %205 : vector<1x128xf32> to vector<8x128xf32>
    %207 = arith.addf %204, %206 : vector<8x128xf32>
    %cst_167 = arith.constant 0.000000e+00 : f32
    %208 = vector.broadcast %cst_167 : f32 to vector<8x128xf32>
    %209 = arith.maximumf %207, %208 : vector<8x128xf32>
    %210 = arith.truncf %209 : vector<8x128xf32> to vector<8x128xbf16>
    %c0_168 = arith.constant 0 : index
    %c0_169 = arith.constant 0 : index
    %211 = vector.load %arg24[%c0_168, %c0_169] : memref<128x128xbf16, #tpu.memory_space<vmem>>, vector<128x128xbf16>
    %cst_170 = arith.constant dense<0.000000e+00> : vector<8x128xf32>
    %212 = tpu.matmul %210, %211, %cst_170 {dimension_numbers = #tpu.dot_dimension_numbers<[1], [0], [0], [1], [0, 0, 1, 1], [], []>} : vector<8x128xbf16>, vector<128x128xbf16>, vector<8x128xf32> -> vector<8x128xf32>
    %c0_171 = arith.constant 0 : index
    %c0_172 = arith.constant 0 : index
    %213 = vector.load %arg25[%c0_171, %c0_172] : memref<1x128xf32, #tpu.memory_space<vmem>>, vector<1x128xf32>
    %214 = vector.broadcast %213 : vector<1x128xf32> to vector<8x128xf32>
    %215 = arith.addf %212, %214 : vector<8x128xf32>
    %216 = arith.truncf %215 : vector<8x128xf32> to vector<8x128xbf16>
    %c0_173 = arith.constant 0 : index
    %c0_174 = arith.constant 0 : index
    %217 = vector.load %arg26[%c0_173, %c0_174] : memref<128x128xbf16, #tpu.memory_space<vmem>>, vector<128x128xbf16>
    %cst_175 = arith.constant dense<0.000000e+00> : vector<8x128xf32>
    %218 = tpu.matmul %216, %217, %cst_175 {dimension_numbers = #tpu.dot_dimension_numbers<[1], [0], [0], [1], [0, 0, 1, 1], [], []>} : vector<8x128xbf16>, vector<128x128xbf16>, vector<8x128xf32> -> vector<8x128xf32>
    %c0_176 = arith.constant 0 : index
    %c0_177 = arith.constant 0 : index
    %219 = vector.load %arg27[%c0_176, %c0_177] : memref<1x128xf32, #tpu.memory_space<vmem>>, vector<1x128xf32>
    %220 = vector.broadcast %219 : vector<1x128xf32> to vector<8x128xf32>
    %221 = arith.addf %218, %220 : vector<8x128xf32>
    %222 = arith.truncf %221 : vector<8x128xf32> to vector<8x128xbf16>
    %c0_178 = arith.constant 0 : index
    %c0_179 = arith.constant 0 : index
    %223 = vector.load %arg28[%c0_178, %c0_179] : memref<8x128xbf16, #tpu.memory_space<vmem>>, vector<8x128xbf16>
    tpu.vector_store %arg28[%c0_178, %c0_179], %222 {strides = array<i32>} : memref<8x128xbf16, #tpu.memory_space<vmem>>, vector<8x128xbf16>,
    return
  }
  func.func @transform_0(%arg0: i32) -> (i32, i32) {
    %c0_i32 = arith.constant 0 : i32
    %c0_i32_0 = arith.constant 0 : i32
    return %arg0, %c0_i32 : i32, i32
  }
  func.func @transform_1(%arg0: i32) -> (i32, i32, i32) {
    %c0_i32 = arith.constant 0 : i32
    %c0_i32_0 = arith.constant 0 : i32
    %c0_i32_1 = arith.constant 0 : i32
    %c0_i32_2 = arith.constant 0 : i32
    return %c0_i32, %c0_i32_0, %c0_i32_1 : i32, i32, i32
  }
  func.func @transform_2(%arg0: i32) -> (i32, i32) {
    %c0_i32 = arith.constant 0 : i32
    %c0_i32_0 = arith.constant 0 : i32
    %c0_i32_1 = arith.constant 0 : i32
    return %c0_i32, %c0_i32_0 : i32, i32
  }
  func.func @transform_3(%arg0: i32) -> (i32, i32, i32) {
    %c0_i32 = arith.constant 0 : i32
    %c0_i32_0 = arith.constant 0 : i32
    %c0_i32_1 = arith.constant 0 : i32
    %c0_i32_2 = arith.constant 0 : i32
    return %c0_i32, %c0_i32_0, %c0_i32_1 : i32, i32, i32
  }
  func.func @transform_4(%arg0: i32) -> (i32, i32) {
    %c0_i32 = arith.constant 0 : i32
    %c0_i32_0 = arith.constant 0 : i32
    %c0_i32_1 = arith.constant 0 : i32
    return %c0_i32, %c0_i32_0 : i32, i32
  }
  func.func @transform_5(%arg0: i32) -> (i32, i32) {
    %c0_i32 = arith.constant 0 : i32
    %c0_i32_0 = arith.constant 0 : i32
    %c0_i32_1 = arith.constant 0 : i32
    return %c0_i32, %c0_i32_0 : i32, i32
  }
  func.func @transform_6(%arg0: i32) -> (i32, i32) {
    %c0_i32 = arith.constant 0 : i32
    %c0_i32_0 = arith.constant 0 : i32
    %c0_i32_1 = arith.constant 0 : i32
    return %c0_i32, %c0_i32_0 : i32, i32
  }
  func.func @transform_7(%arg0: i32) -> (i32, i32) {
    %c0_i32 = arith.constant 0 : i32
    %c0_i32_0 = arith.constant 0 : i32
    %c0_i32_1 = arith.constant 0 : i32
    return %c0_i32, %c0_i32_0 : i32, i32
  }
  func.func @transform_8(%arg0: i32) -> (i32, i32) {
    %c0_i32 = arith.constant 0 : i32
    %c0_i32_0 = arith.constant 0 : i32
    %c0_i32_1 = arith.constant 0 : i32
    return %c0_i32, %c0_i32_0 : i32, i32
  }
  func.func @transform_9(%arg0: i32) -> (i32, i32) {
    %c0_i32 = arith.constant 0 : i32
    %c0_i32_0 = arith.constant 0 : i32
    %c0_i32_1 = arith.constant 0 : i32
    return %c0_i32, %c0_i32_0 : i32, i32
  }
  func.func @transform_10(%arg0: i32) -> (i32, i32) {
    %c0_i32 = arith.constant 0 : i32
    %c0_i32_0 = arith.constant 0 : i32
    %c0_i32_1 = arith.constant 0 : i32
    return %c0_i32, %c0_i32_0 : i32, i32
  }
  func.func @transform_11(%arg0: i32) -> (i32, i32) {
    %c0_i32 = arith.constant 0 : i32
    %c0_i32_0 = arith.constant 0 : i32
    %c0_i32_1 = arith.constant 0 : i32
    return %c0_i32, %c0_i32_0 : i32, i32
  }
  func.func @transform_12(%arg0: i32) -> (i32, i32) {
    %c0_i32 = arith.constant 0 : i32
    %c0_i32_0 = arith.constant 0 : i32
    %c0_i32_1 = arith.constant 0 : i32
    return %c0_i32, %c0_i32_0 : i32, i32
  }
  func.func @transform_13(%arg0: i32) -> (i32, i32) {
    %c0_i32 = arith.constant 0 : i32
    %c0_i32_0 = arith.constant 0 : i32
    %c0_i32_1 = arith.constant 0 : i32
    return %c0_i32, %c0_i32_0 : i32, i32
  }
  func.func @transform_14(%arg0: i32) -> (i32, i32) {
    %c0_i32 = arith.constant 0 : i32
    %c0_i32_0 = arith.constant 0 : i32
    %c0_i32_1 = arith.constant 0 : i32
    return %c0_i32, %c0_i32_0 : i32, i32
  }
  func.func @transform_15(%arg0: i32) -> (i32, i32) {
    %c0_i32 = arith.constant 0 : i32
    %c0_i32_0 = arith.constant 0 : i32
    %c0_i32_1 = arith.constant 0 : i32
    return %c0_i32, %c0_i32_0 : i32, i32
  }
  func.func @transform_16(%arg0: i32) -> (i32, i32) {
    %c0_i32 = arith.constant 0 : i32
    %c0_i32_0 = arith.constant 0 : i32
    %c0_i32_1 = arith.constant 0 : i32
    return %c0_i32, %c0_i32_0 : i32, i32
  }
  func.func @transform_17(%arg0: i32) -> (i32, i32) {
    %c0_i32 = arith.constant 0 : i32
    %c0_i32_0 = arith.constant 0 : i32
    %c0_i32_1 = arith.constant 0 : i32
    return %c0_i32, %c0_i32_0 : i32, i32
  }
  func.func @transform_18(%arg0: i32) -> (i32, i32) {
    %c0_i32 = arith.constant 0 : i32
    %c0_i32_0 = arith.constant 0 : i32
    %c0_i32_1 = arith.constant 0 : i32
    return %c0_i32, %c0_i32_0 : i32, i32
  }
  func.func @transform_19(%arg0: i32) -> (i32, i32) {
    %c0_i32 = arith.constant 0 : i32
    %c0_i32_0 = arith.constant 0 : i32
    %c0_i32_1 = arith.constant 0 : i32
    return %c0_i32, %c0_i32_0 : i32, i32
  }
  func.func @transform_20(%arg0: i32) -> (i32, i32) {
    %c0_i32 = arith.constant 0 : i32
    %c0_i32_0 = arith.constant 0 : i32
    %c0_i32_1 = arith.constant 0 : i32
    return %c0_i32, %c0_i32_0 : i32, i32
  }
  func.func @transform_21(%arg0: i32) -> (i32, i32) {
    %c0_i32 = arith.constant 0 : i32
    %c0_i32_0 = arith.constant 0 : i32
    %c0_i32_1 = arith.constant 0 : i32
    return %c0_i32, %c0_i32_0 : i32, i32
  }
  func.func @transform_22(%arg0: i32) -> (i32, i32) {
    %c0_i32 = arith.constant 0 : i32
    %c0_i32_0 = arith.constant 0 : i32
    %c0_i32_1 = arith.constant 0 : i32
    return %c0_i32, %c0_i32_0 : i32, i32
  }
  func.func @transform_23(%arg0: i32) -> (i32, i32) {
    %c0_i32 = arith.constant 0 : i32
    %c0_i32_0 = arith.constant 0 : i32
    %c0_i32_1 = arith.constant 0 : i32
    return %c0_i32, %c0_i32_0 : i32, i32
  }
  func.func @transform_24(%arg0: i32) -> (i32, i32) {
    %c0_i32 = arith.constant 0 : i32
    %c0_i32_0 = arith.constant 0 : i32
    %c0_i32_1 = arith.constant 0 : i32
    return %c0_i32, %c0_i32_0 : i32, i32
  }
  func.func @transform_25(%arg0: i32) -> (i32, i32) {
    %c0_i32 = arith.constant 0 : i32
    %c0_i32_0 = arith.constant 0 : i32
    %c0_i32_1 = arith.constant 0 : i32
    return %c0_i32, %c0_i32_0 : i32, i32
  }
  func.func @transform_26(%arg0: i32) -> (i32, i32) {
    %c0_i32 = arith.constant 0 : i32
    %c0_i32_0 = arith.constant 0 : i32
    %c0_i32_1 = arith.constant 0 : i32
    return %c0_i32, %c0_i32_0 : i32, i32
  }
  func.func @transform_27(%arg0: i32) -> (i32, i32) {
    %c0_i32 = arith.constant 0 : i32
    %c0_i32_0 = arith.constant 0 : i32
    return %arg0, %c0_i32 : i32, i32
  }
}

</mosaic_0001>

<bundles_post_ra>
// kernel: tpu_custom_call.1
= control target key start
LH: loop header
LB: loop body
LE: loop exit
PB: predicated region body
PF: predicated region fallthrough
CT: control target
= control target key end

     0   :  { %s8582_s0 = inlined_call_operand.hbm [shape: bf16[8,100], index: 0, kind: input, shape index: {}]   ;;  %s8583_s1 = inlined_call_operand.hbm [shape: bf16[25,100,128], index: 1, kind: input, shape index: {}]   ;;  %s8584_s2 = inlined_call_operand.hbm [shape: f32[1,128], index: 2, kind: input, shape index: {}]   ;;  %s8585_s3 = inlined_call_operand.hbm [shape: bf16[9,100,128], index: 3, kind: input, shape index: {}]   ;;  %s8586_s4 = inlined_call_operand.hbm [shape: f32[1,128], index: 4, kind: input, shape index: {}]   ;;  %s8587_s5 = inlined_call_operand.hbm [shape: bf16[100,128], index: 5, kind: input, shape index: {}]   ;;  %s8588_s6 = inlined_call_operand.hbm [shape: f32[1,128], index: 6, kind: input, shape index: {}]   ;;  %s8589_s7 = inlined_call_operand.hbm [shape: bf16[128,128], index: 7, kind: input, shape index: {}]   ;;  %s8590_s8 = inlined_call_operand.hbm [shape: bf16[128,128], index: 8, kind: input, shape index: {}]   ;;  %s8591_s9 = inlined_call_operand.hbm [shape: bf16[128,128], index: 9, kind: input, shape index: {}]   ;;  %s8592_s10 = inlined_call_operand.hbm [shape: f32[1,128], index: 10, kind: input, shape index: {}]   ;;  %s8593_s11 = inlined_call_operand.hbm [shape: bf16[128,128], index: 11, kind: input, shape index: {}]   ;;  %s8594_s12 = inlined_call_operand.hbm [shape: f32[1,128], index: 12, kind: input, shape index: {}]   ;;  %s8595_s13 = inlined_call_operand.hbm [shape: bf16[128,128], index: 13, kind: input, shape index: {}]   ;;  %s8596_s14 = inlined_call_operand.hbm [shape: f32[1,128], index: 14, kind: input, shape index: {}]   ;;  %s8597_s15 = inlined_call_operand.hbm [shape: bf16[128,128], index: 15, kind: input, shape index: {}]   ;;  %s8598_s16 = inlined_call_operand.hbm [shape: f32[1,128], index: 16, kind: input, shape index: {}]   ;;  %s8599_s17 = inlined_call_operand.vmem [shape: bf16[128,128], index: 17, kind: input, shape index: {}]   ;;  %s8600_s18 = inlined_call_operand.vmem [shape: f32[1,128], index: 18, kind: input, shape index: {}]   ;;  %s8601_s19 = inlined_call_operand.hbm [shape: bf16[128,128], index: 19, kind: input, shape index: {}]   ;;  %s8602_s20 = inlined_call_operand.vmem [shape: f32[1,128], index: 20, kind: input, shape index: {}]   ;;  %s8603_s21 = inlined_call_operand.hbm [shape: bf16[128,128], index: 21, kind: input, shape index: {}]   ;;  %s8604_s22 = inlined_call_operand.vmem [shape: f32[1,128], index: 22, kind: input, shape index: {}]   ;;  %s8605_s23 = inlined_call_operand.hbm [shape: bf16[128,128], index: 23, kind: input, shape index: {}]   ;;  %s8606_s24 = inlined_call_operand.vmem [shape: f32[1,128], index: 24, kind: input, shape index: {}]   ;;  %s8607_s25 = inlined_call_operand.hbm [shape: bf16[128,128], index: 25, kind: input, shape index: {}]   ;;  %s8608_s26 = inlined_call_operand.vmem [shape: f32[1,128], index: 26, kind: input, shape index: {}]   ;;  %s8609_s27 = inlined_call_operand.hbm [shape: bf16[8,128], index: 27, kind: output, shape index: {}]  }
   0x1   :  { %8623 = sst [smem:[#allocation48_spill]] %s8582_s0 }
   0x2   :  { %8624 = sst [smem:[#allocation49_spill]] %s8583_s1 }
   0x3   :  { %8625 = sst [smem:[#allocation50_spill]] %s8584_s2 }
   0x4   :  { %8626 = sst [smem:[#allocation51_spill]] %s8585_s3 }
   0x5   :  { %8627 = sst [smem:[#allocation52_spill]] %s8586_s4 }
   0x6   :  { %8628 = sst [smem:[#allocation53_spill]] %s8587_s5 }
   0x7   :  { %8629 = sst [smem:[#allocation54_spill]] %s8588_s6 }
   0x8   :  { %8630 = sst [smem:[#allocation55_spill]] %s8589_s7 }
   0x9   :  { %8631 = sst [smem:[#allocation56_spill]] %s8590_s8 }
   0xa   :  { %8632 = sst [smem:[#allocation57_spill]] %s8591_s9 }
   0xb   :  { %8633 = sst [smem:[#allocation58_spill]] %s8592_s10 }
   0xc   :  { %8634 = sst [smem:[#allocation59_spill]] %s8593_s11 }
   0xd   :  { %8635 = sst [smem:[#allocation60_spill]] %s8606_s24 }
   0xe   :  { %8636 = sst [smem:[#allocation61_spill]] %s8608_s26 }
   0xf   :  { %8637 = sst [smem:[#allocation62_spill]] %s8609_s27 }
  0x10   :  { %32 = vsyncpa [#allocation3], 0 }
  0x11   :  { %33 = vsyncpa [#allocation6], 0 }
  0x12   :  { %34 = vsyncpa [#allocation9], 0 }
  0x13   :  { %35 = vsyncpa [#allocation12], 0 }
  0x14   :  { %36 = vsyncpa [#allocation15], 0 }
  0x15   :  { %37 = vsyncpa [#allocation18], 0 }
  0x16   :  { %38 = vsyncpa [#allocation21], 0 }
  0x17   :  { %39 = vsyncpa [#allocation24], 0 }
  0x18   :  { %40 = vsyncpa [#allocation27], 0 }
  0x19   :  { %41 = vsyncpa [#allocation30], 0 }
  0x1a   :  { %42 = vsyncpa [#allocation33], 0 }
  0x1b   :  { %43 = vsyncpa [#allocation4], 0  ;;  %s7516_s7 = smov [#allocation5]   ;;  %s8638_s9 = sld [smem:[#allocation49_spill]] }
  0x1c   :  { %s59_s4 = sshll.u32 %s7516_s7, 4  ;;  %s60_s4 = int_to_ptr.vmem [resolvable:$true] %s59_s4 }
  0x21   :  { %s7008_s5 = scalar_lea.hbm %s8638_s9, 20800 }
  0x22   :  { %p7009_p0 = scmp.ne.s32.totalorder %s8638_s9, %s7008_s5  ;;  %p7012_p1 = scmp.lt.u32.totalorder %s7008_s5, %s8638_s9 }
  0x24   :  { %p7014_p2 = pnand %p7012_p1, %p7009_p0 }
  0x26   :  { %7017 = shalt.err (!%p7014_p2)
}
  0x27   :  { %s7018_s1 = scalar_lea.vmem %s60_s4, 20800  ;;  %p7023_p4 = scmp.lt.s32.totalorder %s60_s4, %s60_s4 }
  0x28   :  { %p7019_p3 = scmp.ne.s32.totalorder %s60_s4, %s7018_s1  ;;  %p7024_p5 = scmp.lt.s32.totalorder %s7018_s1, %s7018_s1 }
  0x2a   :  { %p7025_p6 = por %p7024_p5, %p7023_p4 }
  0x2c   :  { %p7026_p7 = pnand %p7025_p6, %p7019_p3 }
  0x2e   :  { %7029 = shalt.err (!%p7026_p7)
}
  0x2f   :  { %s7517_s6 = smov 64   ;;  %s7518_s11 = smov 4  }
  0x30   :  { %65 = dma.hbm_to_vmem [thread:$0]  %s8638_s9, 20800, %s60_s4, [#allocation6], %s7517_s6, %s7517_s6, %s7518_s11  }
  0x31   :  { %s7519_s7 = smov [#allocation8]   ;;  %s7520_s30 = smov [#allocation11]  }
  0x32   :  { %s81_s8 = sshll.u32 %s7519_s7, 4  ;;  %s103_s5 = sshll.u32 %s7520_s30, 4  ;;  %s82_s8 = int_to_ptr.vmem [resolvable:$true] %s81_s8  ;;  %s104_s5 = int_to_ptr.vmem [resolvable:$true] %s103_s5 }
  0x33   :  { %s8639_s10 = sld [smem:[#allocation51_spill]] }
  0x39   :  { %s7030_s29 = scalar_lea.hbm %s8639_s10, 7488 }
  0x3a   :  { %p7031_p8 = scmp.ne.s32.totalorder %s8639_s10, %s7030_s29  ;;  %p7034_p9 = scmp.lt.u32.totalorder %s7030_s29, %s8639_s10 }
  0x3c   :  { %p7036_p10 = pnand %p7034_p9, %p7031_p8 }
  0x3e   :  { %7039 = shalt.err (!%p7036_p10)
}
  0x3f   :  { %s7040_s4 = scalar_lea.vmem %s82_s8, 7488  ;;  %p7045_p12 = scmp.lt.s32.totalorder %s82_s8, %s82_s8 }
  0x40   :  { %p7041_p11 = scmp.ne.s32.totalorder %s82_s8, %s7040_s4  ;;  %p7046_p13 = scmp.lt.s32.totalorder %s7040_s4, %s7040_s4 }
  0x42   :  { %p7047_p0 = por %p7046_p13, %p7045_p12 }
  0x44   :  { %p7048_p1 = pnand %p7047_p0, %p7041_p11 }
  0x46   :  { %7051 = shalt.err (!%p7048_p1)
}
  0x47   :  { %87 = dma.hbm_to_vmem [thread:$0]  %s8639_s10, 7488, %s82_s8, [#allocation9], %s7517_s6, %s7517_s6, %s7518_s11  }
  0x48   :  { %s8640_s26 = sld [smem:[#allocation53_spill]] }
  0x4e   :  { %s7052_s3 = scalar_lea.hbm %s8640_s26, 832 }
  0x4f   :  { %p7053_p2 = scmp.ne.s32.totalorder %s8640_s26, %s7052_s3  ;;  %p7056_p3 = scmp.lt.u32.totalorder %s7052_s3, %s8640_s26 }
  0x51   :  { %p7058_p4 = pnand %p7056_p3, %p7053_p2 }
  0x53   :  { %7061 = shalt.err (!%p7058_p4)
}
  0x54   :  { %s7062_s29 = scalar_lea.vmem %s104_s5, 832  ;;  %p7067_p6 = scmp.lt.s32.totalorder %s104_s5, %s104_s5 }
  0x55   :  { %p7063_p5 = scmp.ne.s32.totalorder %s104_s5, %s7062_s29  ;;  %p7068_p7 = scmp.lt.s32.totalorder %s7062_s29, %s7062_s29 }
  0x57   :  { %p7069_p8 = por %p7068_p7, %p7067_p6 }
  0x59   :  { %p7070_p9 = pnand %p7069_p8, %p7063_p5 }
  0x5b   :  { %7073 = shalt.err (!%p7070_p9)
}
  0x5c   :  { %109 = dma.hbm_to_vmem [thread:$0]  %s8640_s26, 832, %s104_s5, [#allocation12], %s7517_s6, %s7517_s6, %s7518_s11  }
  0x5d   :  { %s7521_s1 = smov [#allocation14]   ;;  %s7522_s9 = smov [#allocation17]  }
  0x5e   :  { %s125_s4 = sshll.u32 %s7521_s1, 4  ;;  %s149_s2 = sshll.u32 %s7522_s9, 4  ;;  %s126_s4 = int_to_ptr.vmem [resolvable:$true] %s125_s4  ;;  %s150_s2 = int_to_ptr.vmem [resolvable:$true] %s149_s2 }
  0x5f   :  { %s8641_s3 = sld [smem:[#allocation55_spill]] }
  0x65   :  { %s7074_s7 = scalar_lea.hbm %s8641_s3, 1024 }
  0x66   :  { %p7075_p10 = scmp.ne.s32.totalorder %s8641_s3, %s7074_s7  ;;  %p7078_p11 = scmp.lt.u32.totalorder %s7074_s7, %s8641_s3 }
  0x68   :  { %p7080_p12 = pnand %p7078_p11, %p7075_p10 }
  0x6a   :  { %7083 = shalt.err (!%p7080_p12)
}
  0x6b   :  { %s7084_s5 = scalar_lea.vmem %s126_s4, 1024  ;;  %p7089_p0 = scmp.lt.s32.totalorder %s126_s4, %s126_s4 }
  0x6c   :  { %p7085_p13 = scmp.ne.s32.totalorder %s126_s4, %s7084_s5  ;;  %p7090_p1 = scmp.lt.s32.totalorder %s7084_s5, %s7084_s5 }
  0x6e   :  { %p7091_p2 = por %p7090_p1, %p7089_p0 }
  0x70   :  { %p7092_p3 = pnand %p7091_p2, %p7085_p13 }
  0x72   :  { %7095 = shalt.err (!%p7092_p3)
}
  0x73   :  { %131 = dma.hbm_to_vmem [thread:$0]  %s8641_s3, 1024, %s126_s4, [#allocation15], %s7517_s6, %s7517_s6, %s7518_s11  }
  0x74   :  { %s8642_s9 = sld [smem:[#allocation57_spill]] }
  0x7a   :  { %s7096_s27 = scalar_lea.hbm %s8642_s9, 1024 }
  0x7b   :  { %p7097_p4 = scmp.ne.s32.totalorder %s8642_s9, %s7096_s27  ;;  %p7100_p5 = scmp.lt.u32.totalorder %s7096_s27, %s8642_s9 }
  0x7d   :  { %p7102_p6 = pnand %p7100_p5, %p7097_p4 }
  0x7f   :  { %7105 = shalt.err (!%p7102_p6)
}
  0x80   :  { %s7106_s0 = scalar_lea.vmem %s150_s2, 1024  ;;  %p7111_p8 = scmp.lt.s32.totalorder %s150_s2, %s150_s2 }
  0x81   :  { %p7107_p7 = scmp.ne.s32.totalorder %s150_s2, %s7106_s0  ;;  %p7112_p9 = scmp.lt.s32.totalorder %s7106_s0, %s7106_s0 }
  0x83   :  { %p7113_p10 = por %p7112_p9, %p7111_p8 }
  0x85   :  { %p7114_p11 = pnand %p7113_p10, %p7107_p7 }
  0x87   :  { %7117 = shalt.err (!%p7114_p11)
}
  0x88   :  { %155 = dma.hbm_to_vmem [thread:$0]  %s8642_s9, 1024, %s150_s2, [#allocation18], %s7517_s6, %s7517_s6, %s7518_s11  }
  0x89   :  { %s7523_s29 = smov [#allocation20]   ;;  %s7524_s26 = smov [#allocation23]  }
  0x8a   :  { %s171_s5 = sshll.u32 %s7523_s29, 4  ;;  %s193_s8 = sshll.u32 %s7524_s26, 4  ;;  %s172_s5 = int_to_ptr.vmem [resolvable:$true] %s171_s5  ;;  %s194_s8 = int_to_ptr.vmem [resolvable:$true] %s193_s8 }
  0x8b   :  { %s8643_s27 = sld [smem:[#allocation59_spill]] }
  0x91   :  { %s7118_s24 = scalar_lea.hbm %s8643_s27, 1024 }
  0x92   :  { %p7119_p12 = scmp.ne.s32.totalorder %s8643_s27, %s7118_s24  ;;  %p7122_p13 = scmp.lt.u32.totalorder %s7118_s24, %s8643_s27 }
  0x94   :  { %p7124_p0 = pnand %p7122_p13, %p7119_p12 }
  0x96   :  { %7127 = shalt.err (!%p7124_p0)
}
  0x97   :  { %s7128_s2 = scalar_lea.vmem %s172_s5, 1024  ;;  %p7133_p2 = scmp.lt.s32.totalorder %s172_s5, %s172_s5 }
  0x98   :  { %p7129_p1 = scmp.ne.s32.totalorder %s172_s5, %s7128_s2  ;;  %p7134_p3 = scmp.lt.s32.totalorder %s7128_s2, %s7128_s2 }
  0x9a   :  { %p7135_p4 = por %p7134_p3, %p7133_p2 }
  0x9c   :  { %p7136_p5 = pnand %p7135_p4, %p7129_p1 }
  0x9e   :  { %7139 = shalt.err (!%p7136_p5)
}
  0x9f   :  { %177 = dma.hbm_to_vmem [thread:$0]  %s8643_s27, 1024, %s172_s5, [#allocation21], %s7517_s6, %s7517_s6, %s7518_s11  }
  0xa0   :  { %s7140_s26 = scalar_lea.hbm %s8595_s13, 1024 }
  0xa1   :  { %p7141_p6 = scmp.ne.s32.totalorder %s8595_s13, %s7140_s26  ;;  %p7144_p7 = scmp.lt.u32.totalorder %s7140_s26, %s8595_s13 }
  0xa3   :  { %p7146_p8 = pnand %p7144_p7, %p7141_p6 }
  0xa5   :  { %7149 = shalt.err (!%p7146_p8)
}
  0xa6   :  { %s7150_s30 = scalar_lea.vmem %s194_s8, 1024  ;;  %p7155_p10 = scmp.lt.s32.totalorder %s194_s8, %s194_s8 }
  0xa7   :  { %p7151_p9 = scmp.ne.s32.totalorder %s194_s8, %s7150_s30  ;;  %p7156_p11 = scmp.lt.s32.totalorder %s7150_s30, %s7150_s30 }
  0xa9   :  { %p7157_p12 = por %p7156_p11, %p7155_p10 }
  0xab   :  { %p7158_p13 = pnand %p7157_p12, %p7151_p9 }
  0xad   :  { %7161 = shalt.err (!%p7158_p13)
}
  0xae   :  { %199 = dma.hbm_to_vmem [thread:$0]  %s8595_s13, 1024, %s194_s8, [#allocation24], %s7517_s6, %s7517_s6, %s7518_s11  }
  0xaf   :  { %s7525_s28 = smov [#allocation26]   ;;  %s7526_s2 = smov [#allocation29]  }
  0xb0   :  { %s215_s0 = sshll.u32 %s7525_s28, 4  ;;  %s241_s9 = sshll.u32 %s7526_s2, 4  ;;  %s216_s0 = int_to_ptr.vmem [resolvable:$true] %s215_s0  ;;  %s242_s9 = int_to_ptr.vmem [resolvable:$true] %s241_s9 }
  0xb1   :  { %s7162_s29 = scalar_lea.hbm %s8597_s15, 1024 }
  0xb2   :  { %p7163_p0 = scmp.ne.s32.totalorder %s8597_s15, %s7162_s29  ;;  %p7166_p1 = scmp.lt.u32.totalorder %s7162_s29, %s8597_s15 }
  0xb4   :  { %p7168_p2 = pnand %p7166_p1, %p7163_p0 }
  0xb6   :  { %7171 = shalt.err (!%p7168_p2)
}
  0xb7   :  { %s7172_s13 = scalar_lea.vmem %s216_s0, 1024  ;;  %p7177_p4 = scmp.lt.s32.totalorder %s216_s0, %s216_s0 }
  0xb8   :  { %p7173_p3 = scmp.ne.s32.totalorder %s216_s0, %s7172_s13  ;;  %p7178_p5 = scmp.lt.s32.totalorder %s7172_s13, %s7172_s13 }
  0xba   :  { %p7179_p6 = por %p7178_p5, %p7177_p4 }
  0xbc   :  { %p7180_p7 = pnand %p7179_p6, %p7173_p3 }
  0xbe   :  { %7183 = shalt.err (!%p7180_p7)
}
  0xbf   :  { %221 = dma.hbm_to_vmem [thread:$0]  %s8597_s15, 1024, %s216_s0, [#allocation27], %s7517_s6, %s7517_s6, %s7518_s11  }
  0xc0   :  { %s7184_s27 = scalar_lea.hbm %s8601_s19, 1024 }
  0xc1   :  { %p7185_p8 = scmp.ne.s32.totalorder %s8601_s19, %s7184_s27  ;;  %p7188_p9 = scmp.lt.u32.totalorder %s7184_s27, %s8601_s19 }
  0xc3   :  { %p7190_p10 = pnand %p7188_p9, %p7185_p8 }
  0xc5   :  { %7193 = shalt.err (!%p7190_p10)
}
  0xc6   :  { %s7194_s29 = scalar_lea.vmem %s242_s9, 1024  ;;  %p7199_p12 = scmp.lt.s32.totalorder %s242_s9, %s242_s9 }
  0xc7   :  { %p7195_p11 = scmp.ne.s32.totalorder %s242_s9, %s7194_s29  ;;  %p7200_p13 = scmp.lt.s32.totalorder %s7194_s29, %s7194_s29 }
  0xc9   :  { %p7201_p0 = por %p7200_p13, %p7199_p12 }
  0xcb   :  { %p7202_p1 = pnand %p7201_p0, %p7195_p11 }
  0xcd   :  { %7205 = shalt.err (!%p7202_p1)
}
  0xce   :  { %247 = dma.hbm_to_vmem [thread:$0]  %s8601_s19, 1024, %s242_s9, [#allocation30], %s7517_s6, %s7517_s6, %s7518_s11  }
  0xcf   :  { %s7527_s26 = smov [#allocation32]   ;;  %s7528_s1 = smov [#allocation2]  }
  0xd0   :  { %s269_s10 = sshll.u32 %s7527_s26, 4  ;;  %s50_s24 = sshll.u32 %s7528_s1, 4  ;;  %s270_s10 = int_to_ptr.vmem [resolvable:$true] %s269_s10  ;;  %s51_s24 = int_to_ptr.vmem [resolvable:$true] %s50_s24 }
  0xd1   :  { %s7206_s7 = scalar_lea.hbm %s8605_s23, 1024 }
  0xd2   :  { %p7207_p2 = scmp.ne.s32.totalorder %s8605_s23, %s7206_s7  ;;  %p7210_p3 = scmp.lt.u32.totalorder %s7206_s7, %s8605_s23 }
  0xd4   :  { %p7212_p4 = pnand %p7210_p3, %p7207_p2 }
  0xd6   :  { %7215 = shalt.err (!%p7212_p4)
}
  0xd7   :  { %s7216_s19 = scalar_lea.vmem %s270_s10, 1024  ;;  %p7221_p6 = scmp.lt.s32.totalorder %s270_s10, %s270_s10 }
  0xd8   :  { %p7217_p5 = scmp.ne.s32.totalorder %s270_s10, %s7216_s19  ;;  %p7222_p7 = scmp.lt.s32.totalorder %s7216_s19, %s7216_s19 }
  0xda   :  { %p7223_p8 = por %p7222_p7, %p7221_p6 }
  0xdc   :  { %p7224_p9 = pnand %p7223_p8, %p7217_p5 }
  0xde   :  { %7227 = shalt.err (!%p7224_p9)
}
  0xdf   :  { %275 = dma.hbm_to_vmem [thread:$0]  %s8605_s23, 1024, %s270_s10, [#allocation33], %s7517_s6, %s7517_s6, %s7518_s11  }
  0xe0   :  { %s8644_s29 = sld [smem:[#allocation48_spill]] }
  0xe6   :  { %s7228_s15 = scalar_lea.hbm %s8644_s29, 64 }
  0xe7   :  { %p7229_p10 = scmp.ne.s32.totalorder %s8644_s29, %s7228_s15  ;;  %p7232_p11 = scmp.lt.u32.totalorder %s7228_s15, %s8644_s29 }
  0xe9   :  { %p7234_p12 = pnand %p7232_p11, %p7229_p10 }
  0xeb   :  { %7237 = shalt.err (!%p7234_p12)
}
  0xec   :  { %s7238_s8 = scalar_lea.vmem %s51_s24, 64  ;;  %p7243_p0 = scmp.lt.s32.totalorder %s51_s24, %s51_s24 }
  0xed   :  { %p7239_p13 = scmp.ne.s32.totalorder %s51_s24, %s7238_s8  ;;  %p7244_p1 = scmp.lt.s32.totalorder %s7238_s8, %s7238_s8 }
  0xef   :  { %p7245_p2 = por %p7244_p1, %p7243_p0 }
  0xf1   :  { %p7246_p3 = pnand %p7245_p2, %p7239_p13 }
  0xf3   :  { %7249 = shalt.err (!%p7246_p3)
}
  0xf4   :  { %53 = dma.hbm_to_vmem [thread:$0]  %s8644_s29, 64, %s51_s24, [#allocation3]  }
  0xf5   :  { %s7529_s7 = smov [#allocation7]   ;;  %s7530_s5 = smov [#allocation10]  }
  0xf6   :  { %s72_s30 = sshll.u32 %s7529_s7, 4  ;;  %s94_s27 = sshll.u32 %s7530_s5, 4  ;;  %s73_s30 = int_to_ptr.vmem [resolvable:$true] %s72_s30  ;;  %s95_s27 = int_to_ptr.vmem [resolvable:$true] %s94_s27 }
  0xf7   :  { %s8645_s9 = sld [smem:[#allocation50_spill]] }
  0xfd   :  { %s7250_s2 = scalar_lea.hbm %s8645_s9, 16 }
  0xfe   :  { %p7251_p4 = scmp.ne.s32.totalorder %s8645_s9, %s7250_s2  ;;  %p7254_p5 = scmp.lt.u32.totalorder %s7250_s2, %s8645_s9 }
 0x100   :  { %p7256_p6 = pnand %p7254_p5, %p7251_p4 }
 0x102   :  { %7259 = shalt.err (!%p7256_p6)
}
 0x103   :  { %s7260_s24 = scalar_lea.vmem %s73_s30, 16  ;;  %s7264_s29 = scalar_lea.vmem %s73_s30, 32 }
 0x104   :  { %p7261_p7 = scmp.ne.s32.totalorder %s73_s30, %s7260_s24  ;;  %p7265_p8 = scmp.lt.s32.totalorder %s73_s30, %s73_s30 }
 0x105   :  { %p7266_p9 = scmp.lt.s32.totalorder %s7264_s29, %s7260_s24 }
 0x107   :  { %p7267_p10 = por %p7266_p9, %p7265_p8 }
 0x109   :  { %p7268_p11 = pnand %p7267_p10, %p7261_p7 }
 0x10b   :  { %7271 = shalt.err (!%p7268_p11)
}
 0x10c   :  { %75 = dma.hbm_to_vmem [thread:$0]  %s8645_s9, 16, %s73_s30, [#allocation6]  }
 0x10d   :  { %s8646_s23 = sld [smem:[#allocation52_spill]] }
 0x113   :  { %s7272_s10 = scalar_lea.hbm %s8646_s23, 16 }
 0x114   :  { %p7273_p12 = scmp.ne.s32.totalorder %s8646_s23, %s7272_s10  ;;  %p7276_p13 = scmp.lt.u32.totalorder %s7272_s10, %s8646_s23 }
 0x116   :  { %p7278_p0 = pnand %p7276_p13, %p7273_p12 }
 0x118   :  { %7281 = shalt.err (!%p7278_p0)
}
 0x119   :  { %s7282_s2 = scalar_lea.vmem %s95_s27, 16  ;;  %s7286_s4 = scalar_lea.vmem %s95_s27, 32 }
 0x11a   :  { %p7283_p1 = scmp.ne.s32.totalorder %s95_s27, %s7282_s2  ;;  %p7287_p2 = scmp.lt.s32.totalorder %s95_s27, %s95_s27 }
 0x11b   :  { %p7288_p3 = scmp.lt.s32.totalorder %s7286_s4, %s7282_s2 }
 0x11d   :  { %p7289_p4 = por %p7288_p3, %p7287_p2 }
 0x11f   :  { %p7290_p5 = pnand %p7289_p4, %p7283_p1 }
 0x121   :  { %7293 = shalt.err (!%p7290_p5)
}
 0x122   :  { %97 = dma.hbm_to_vmem [thread:$0]  %s8646_s23, 16, %s95_s27, [#allocation9]  }
 0x123   :  { %s7531_s3 = smov [#allocation13]   ;;  %s7532_s0 = smov [#allocation16]  }
 0x124   :  { %s116_s15 = sshll.u32 %s7531_s3, 4  ;;  %s137_s24 = sshll.u32 %s7532_s0, 4  ;;  %s117_s15 = int_to_ptr.vmem [resolvable:$true] %s116_s15  ;;  %s138_s24 = int_to_ptr.vmem [resolvable:$true] %s137_s24 }
 0x125   :  { %s8647_s1 = sld [smem:[#allocation54_spill]] }
 0x12b   :  { %s7294_s13 = scalar_lea.hbm %s8647_s1, 16 }
 0x12c   :  { %p7295_p6 = scmp.ne.s32.totalorder %s8647_s1, %s7294_s13  ;;  %p7298_p7 = scmp.lt.u32.totalorder %s7294_s13, %s8647_s1 }
 0x12e   :  { %p7300_p8 = pnand %p7298_p7, %p7295_p6 }
 0x130   :  { %7303 = shalt.err (!%p7300_p8)
}
 0x131   :  { %s7304_s27 = scalar_lea.vmem %s117_s15, 16  ;;  %s7308_s23 = scalar_lea.vmem %s117_s15, 32 }
 0x132   :  { %p7305_p9 = scmp.ne.s32.totalorder %s117_s15, %s7304_s27  ;;  %p7309_p10 = scmp.lt.s32.totalorder %s117_s15, %s117_s15 }
 0x133   :  { %p7310_p11 = scmp.lt.s32.totalorder %s7308_s23, %s7304_s27 }
 0x135   :  { %p7311_p12 = por %p7310_p11, %p7309_p10 }
 0x137   :  { %p7312_p13 = pnand %p7311_p12, %p7305_p9 }
 0x139   :  { %7315 = shalt.err (!%p7312_p13)
}
 0x13a   :  { %119 = dma.hbm_to_vmem [thread:$0]  %s8647_s1, 16, %s117_s15, [#allocation12]  }
 0x13b   :  { %s8648_s30 = sld [smem:[#allocation56_spill]] }
 0x141   :  { %s7316_s9 = scalar_lea.hbm %s8648_s30, 1024 }
 0x142   :  { %p7317_p0 = scmp.ne.s32.totalorder %s8648_s30, %s7316_s9  ;;  %p7320_p1 = scmp.lt.u32.totalorder %s7316_s9, %s8648_s30 }
 0x144   :  { %p7322_p2 = pnand %p7320_p1, %p7317_p0 }
 0x146   :  { %7325 = shalt.err (!%p7322_p2)
}
 0x147   :  { %s7326_s13 = scalar_lea.vmem %s138_s24, 1024  ;;  %p7331_p4 = scmp.lt.s32.totalorder %s138_s24, %s138_s24 }
 0x148   :  { %p7327_p3 = scmp.ne.s32.totalorder %s138_s24, %s7326_s13  ;;  %p7332_p5 = scmp.lt.s32.totalorder %s7326_s13, %s7326_s13 }
 0x14a   :  { %p7333_p6 = por %p7332_p5, %p7331_p4 }
 0x14c   :  { %p7334_p7 = pnand %p7333_p6, %p7327_p3 }
 0x14e   :  { %7337 = shalt.err (!%p7334_p7)
}
 0x14f   :  { %143 = dma.hbm_to_vmem [thread:$0]  %s8648_s30, 1024, %s138_s24, [#allocation15], %s7517_s6, %s7517_s6, %s7518_s11  }
 0x150   :  { %s7533_s8 = smov [#allocation19]   ;;  %s7534_s7 = smov [#allocation22]  }
 0x151   :  { %s162_s10 = sshll.u32 %s7533_s8, 4  ;;  %s184_s5 = sshll.u32 %s7534_s7, 4  ;;  %s163_s10 = int_to_ptr.vmem [resolvable:$true] %s162_s10  ;;  %s185_s5 = int_to_ptr.vmem [resolvable:$true] %s184_s5 }
 0x152   :  { %s8649_s28 = sld [smem:[#allocation58_spill]] }
 0x158   :  { %s7338_s19 = scalar_lea.hbm %s8649_s28, 16 }
 0x159   :  { %p7339_p8 = scmp.ne.s32.totalorder %s8649_s28, %s7338_s19  ;;  %p7342_p9 = scmp.lt.u32.totalorder %s7338_s19, %s8649_s28 }
 0x15b   :  { %p7344_p10 = pnand %p7342_p9, %p7339_p8 }
 0x15d   :  { %7347 = shalt.err (!%p7344_p10)
}
 0x15e   :  { %s7348_s24 = scalar_lea.vmem %s163_s10, 16  ;;  %s7352_s30 = scalar_lea.vmem %s163_s10, 32 }
 0x15f   :  { %p7349_p11 = scmp.ne.s32.totalorder %s163_s10, %s7348_s24  ;;  %p7353_p12 = scmp.lt.s32.totalorder %s163_s10, %s163_s10 }
 0x160   :  { %p7354_p13 = scmp.lt.s32.totalorder %s7352_s30, %s7348_s24 }
 0x162   :  { %p7355_p0 = por %p7354_p13, %p7353_p12 }
 0x164   :  { %p7356_p1 = pnand %p7355_p0, %p7349_p11 }
 0x166   :  { %7359 = shalt.err (!%p7356_p1)
}
 0x167   :  { %165 = dma.hbm_to_vmem [thread:$0]  %s8649_s28, 16, %s163_s10, [#allocation18]  }
 0x168   :  { %s7360_s15 = scalar_lea.hbm %s8594_s12, 16 }
 0x169   :  { %p7361_p2 = scmp.ne.s32.totalorder %s8594_s12, %s7360_s15  ;;  %p7364_p3 = scmp.lt.u32.totalorder %s7360_s15, %s8594_s12 }
 0x16b   :  { %p7366_p4 = pnand %p7364_p3, %p7361_p2 }
 0x16d   :  { %7369 = shalt.err (!%p7366_p4)
}
 0x16e   :  { %s7370_s23 = scalar_lea.vmem %s185_s5, 16  ;;  %s7374_s19 = scalar_lea.vmem %s185_s5, 32 }
 0x16f   :  { %p7371_p5 = scmp.ne.s32.totalorder %s185_s5, %s7370_s23  ;;  %p7375_p6 = scmp.lt.s32.totalorder %s185_s5, %s185_s5 }
 0x170   :  { %p7376_p7 = scmp.lt.s32.totalorder %s7374_s19, %s7370_s23 }
 0x172   :  { %p7377_p8 = por %p7376_p7, %p7375_p6 }
 0x174   :  { %p7378_p9 = pnand %p7377_p8, %p7371_p5 }
 0x176   :  { %7381 = shalt.err (!%p7378_p9)
}
 0x177   :  { %187 = dma.hbm_to_vmem [thread:$0]  %s8594_s12, 16, %s185_s5, [#allocation21]  }
 0x178   :  { %s7535_s2 = smov [#allocation25]   ;;  %s7536_s9 = smov [#allocation28]  }
 0x179   :  { %s206_s4 = sshll.u32 %s7535_s2, 4  ;;  %s228_s3 = sshll.u32 %s7536_s9, 4  ;;  %s207_s4 = int_to_ptr.vmem [resolvable:$true] %s206_s4  ;;  %s229_s3 = int_to_ptr.vmem [resolvable:$true] %s228_s3 }
 0x17a   :  { %s7382_s0 = scalar_lea.hbm %s8596_s14, 16 }
 0x17b   :  { %p7383_p10 = scmp.ne.s32.totalorder %s8596_s14, %s7382_s0  ;;  %p7386_p11 = scmp.lt.u32.totalorder %s7382_s0, %s8596_s14 }
 0x17d   :  { %p7388_p12 = pnand %p7386_p11, %p7383_p10 }
 0x17f   :  { %7391 = shalt.err (!%p7388_p12)
}
 0x180   :  { %s7392_s12 = scalar_lea.vmem %s207_s4, 16  ;;  %s7396_s5 = scalar_lea.vmem %s207_s4, 32 }
 0x181   :  { %p7393_p13 = scmp.ne.s32.totalorder %s207_s4, %s7392_s12  ;;  %p7397_p0 = scmp.lt.s32.totalorder %s207_s4, %s207_s4 }
 0x182   :  { %p7398_p1 = scmp.lt.s32.totalorder %s7396_s5, %s7392_s12 }
 0x184   :  { %p7399_p2 = por %p7398_p1, %p7397_p0 }
 0x186   :  { %p7400_p3 = pnand %p7399_p2, %p7393_p13 }
 0x188   :  { %7403 = shalt.err (!%p7400_p3)
}
 0x189   :  { %209 = dma.hbm_to_vmem [thread:$0]  %s8596_s14, 16, %s207_s4, [#allocation24]  }
 0x18a   :  { %s7404_s23 = scalar_lea.hbm %s8598_s16, 16 }
 0x18b   :  { %p7405_p4 = scmp.ne.s32.totalorder %s8598_s16, %s7404_s23  ;;  %p7408_p5 = scmp.lt.u32.totalorder %s7404_s23, %s8598_s16 }
 0x18d   :  { %p7410_p6 = pnand %p7408_p5, %p7405_p4 }
 0x18f   :  { %7413 = shalt.err (!%p7410_p6)
}
 0x190   :  { %s7414_s9 = scalar_lea.vmem %s229_s3, 16  ;;  %s7418_s24 = scalar_lea.vmem %s229_s3, 32 }
 0x191   :  { %p7415_p7 = scmp.ne.s32.totalorder %s229_s3, %s7414_s9  ;;  %p7419_p8 = scmp.lt.s32.totalorder %s229_s3, %s229_s3 }
 0x192   :  { %p7420_p9 = scmp.lt.s32.totalorder %s7418_s24, %s7414_s9 }
 0x194   :  { %p7421_p10 = por %p7420_p9, %p7419_p8 }
 0x196   :  { %p7422_p11 = pnand %p7421_p10, %p7415_p7 }
 0x198   :  { %7425 = shalt.err (!%p7422_p11)
}
 0x199   :  { %231 = dma.hbm_to_vmem [thread:$0]  %s8598_s16, 16, %s229_s3, [#allocation27]  }
 0x19a   :  { %s7537_s30 = smov [#allocation31]   ;;  %s7538_s29 = smov [#allocation34]  }
 0x19b   :  { %s255_s0 = sshll.u32 %s7537_s30, 4  ;;  %s283_s26 = sshll.u32 %s7538_s29, 4  ;;  %s256_s0 = int_to_ptr.vmem [resolvable:$true] %s255_s0  ;;  %s284_s26 = int_to_ptr.vmem [resolvable:$true] %s283_s26 }
 0x19c   :  { %s7426_s12 = scalar_lea.hbm %s8603_s21, 1024 }
 0x19d   :  { %p7427_p12 = scmp.ne.s32.totalorder %s8603_s21, %s7426_s12  ;;  %p7430_p13 = scmp.lt.u32.totalorder %s7426_s12, %s8603_s21 }
 0x19f   :  { %p7432_p0 = pnand %p7430_p13, %p7427_p12 }
 0x1a1   :  { %7435 = shalt.err (!%p7432_p0)
}
 0x1a2   :  { %s7436_s16 = scalar_lea.vmem %s256_s0, 1024  ;;  %p7441_p2 = scmp.lt.s32.totalorder %s256_s0, %s256_s0 }
 0x1a3   :  { %p7437_p1 = scmp.ne.s32.totalorder %s256_s0, %s7436_s16  ;;  %p7442_p3 = scmp.lt.s32.totalorder %s7436_s16, %s7436_s16 }
 0x1a5   :  { %p7443_p4 = por %p7442_p3, %p7441_p2 }
 0x1a7   :  { %p7444_p5 = pnand %p7443_p4, %p7437_p1 }
 0x1a9   :  { %7447 = shalt.err (!%p7444_p5)
}
 0x1aa   :  { %261 = dma.hbm_to_vmem [thread:$0]  %s8603_s21, 1024, %s256_s0, [#allocation30], %s7517_s6, %s7517_s6, %s7518_s11  }
 0x1ab   :  { %s7448_s10 = scalar_lea.hbm %s8607_s25, 1024 }
 0x1ac   :  { %p7449_p6 = scmp.ne.s32.totalorder %s8607_s25, %s7448_s10  ;;  %p7452_p7 = scmp.lt.u32.totalorder %s7448_s10, %s8607_s25 }
 0x1ae   :  { %p7454_p8 = pnand %p7452_p7, %p7449_p6 }
 0x1b0   :  { %7457 = shalt.err (!%p7454_p8)
}
 0x1b1   :  { %s7458_s14 = scalar_lea.vmem %s284_s26, 1024  ;;  %p7463_p10 = scmp.lt.s32.totalorder %s284_s26, %s284_s26 }
 0x1b2   :  { %p7459_p9 = scmp.ne.s32.totalorder %s284_s26, %s7458_s14  ;;  %p7464_p11 = scmp.lt.s32.totalorder %s7458_s14, %s7458_s14 }
 0x1b4   :  { %p7465_p12 = por %p7464_p11, %p7463_p10 }
 0x1b6   :  { %p7466_p13 = pnand %p7465_p12, %p7459_p9 }
 0x1b8   :  { %7469 = shalt.err (!%p7466_p13)
}
 0x1b9   :  { %289 = dma.hbm_to_vmem [thread:$0]  %s8607_s25, 1024, %s284_s26, [#allocation33], %s7517_s6, %s7517_s6, %s7518_s11  }
 0x1ba   :  { %7492 = dma.done.wait [#allocation3], 64  }
 0x1bb   :  { %7493 = vsyncadd [#allocation3], 4294967232 }
 0x1bc   :  { %7494 = dma.done.wait [#allocation6], 20816  }
 0x1bd   :  { %7495 = vsyncadd [#allocation6], 4294946480 }
 0x1be   :  { %7496 = dma.done.wait [#allocation9], 7504  }
 0x1bf   :  { %7497 = vsyncadd [#allocation9], 4294959792 }
 0x1c0   :  { %7498 = dma.done.wait [#allocation12], 848  }
 0x1c1   :  { %7499 = vsyncadd [#allocation12], 4294966448 }
 0x1c2   :  { %7500 = dma.done.wait [#allocation15], 2048  }
 0x1c3   :  { %7501 = vsyncadd [#allocation15], 4294965248 }
 0x1c4   :  { %7502 = dma.done.wait [#allocation18], 1040  }
 0x1c5   :  { %7503 = vsyncadd [#allocation18], 4294966256 }
 0x1c6   :  { %7504 = dma.done.wait [#allocation21], 1040  }
 0x1c7   :  { %7505 = vsyncadd [#allocation21], 4294966256 }
 0x1c8   :  { %7506 = dma.done.wait [#allocation24], 1040  }
 0x1c9   :  { %7507 = vsyncadd [#allocation24], 4294966256 }
 0x1ca   :  { %7508 = dma.done.wait [#allocation27], 1040  }
 0x1cb   :  { %7509 = vsyncadd [#allocation27], 4294966256 }
 0x1cc   :  { %7510 = dma.done.wait [#allocation30], 2048  }
 0x1cd   :  { %7511 = vsyncadd [#allocation30], 4294965248 }
 0x1ce   :  { %7512 = dma.done.wait [#allocation33], 2048  }
 0x1cf   :  { %7513 = vsyncadd [#allocation33], 4294965248  ;;  %v7539_v0 = vmov 0.0   ;;  %vm7540_vm0 = vmmov 0   ;;  %v6673_v1 = vld [vmem:[#allocation5] sm:$0xff]   ;;  %v6674_v2 = vld [vmem:[#allocation5 + $0x34] sm:$0xff]  }
 0x1d0   :  { %5788 = vmatprep.subr.bf16.mxu0 %v7539_v0  ;;  %5806 = vmatprep.subr.bf16.mxu1 %v7539_v0  ;;  %v6675_v3 = vld [vmem:[#allocation5 + $0x8] sm:$0xff]   ;;  %v6676_v4 = vld [vmem:[#allocation5 + $0x3c] sm:$0xff]   ;;  %v6677_v5 = vld [vmem:[#allocation5 + $0x10] sm:$0xff]   ;;  %vm413_vm1 = vcmask 1041408   ;;  %vm409_vm2 = vcmask 818176   ;;  %s8650_s2 = sld [smem:[#allocation60_spill]] }
 0x1d1   :  { %5802 = vmatprep.mubr.msk.bf16.mxu0 %vm7540_vm0, %v7539_v0  ;;  %5820 = vmatprep.mubr.msk.bf16.mxu1 %vm7540_vm0, %v7539_v0  ;;  %v6678_v6 = vld [vmem:[#allocation5 + $0x44] sm:$0xff]   ;;  %v6679_v7 = vld [vmem:[#allocation5 + $0x18] sm:$0xff]   ;;  %v6680_v8 = vld [vmem:[#allocation5 + $0x4c] sm:$0xff]   ;;  %s8651_s24 = sld [smem:[#allocation61_spill]]  ;;  %s7541_s14 = smov [#allocation35]  }
 0x1d2   :  { %5789 = vmatpush3.bf16.msra.mxu0 %v6673_v1  ;;  %5807 = vmatpush3.bf16.msra.mxu1 %v6674_v2  ;;  %v6681_v9 = vld [vmem:[#allocation5 + $0x20] sm:$0xff]   ;;  %v6682_v10 = vld [vmem:[#allocation5 + $0x54] sm:$0xff]   ;;  %v6685_v11 = vld [vmem:[#allocation5 + $0x30] ss:$0 sps:$4 sm:$0x33]   ;;  %s5010_s21 = sshll.u32 %s7541_s14, 4  ;;  %s5011_s21 = int_to_ptr.vmem [resolvable:$true] %s5010_s21 }
 0x1d3   :  { %5790 = vmatprep.subr.bf16.mxu0 %v7539_v0  ;;  %5808 = vmatprep.subr.bf16.mxu1 %v7539_v0  ;;  %v6683_v12 = vld [vmem:[#allocation5 + $0x28] sm:$0xff]   ;;  %v6686_v13 = vld [vmem:[#allocation5 + $0x64] ss:$0 sps:$4 sm:$0x33]   ;;  %v6684_v14 = vld [vmem:[#allocation5 + $0x5c] sm:$0xff]   ;;  %v415_v15 = vsel %vm413_vm1, %v6685_v11, 0  ;;  %p7475_p1 = scmp.lt.s32.totalorder %s5011_s21, %s5011_s21 }
 0x1d4   :  { %v511_v16 = vsel %vm413_vm1, %v6686_v13, 0  ;;  %v7993_v17 = vld [vmem:[#allocation2] sm:$0xf]  ;;  %v6687_v18 = vld [vmem:[#allocation5 + $0x68] sm:$0xff]   ;;  %v6689_v20 = vld [vmem:[#allocation5 + $0x70] sm:$0xff]   ;;  %s7470_s4 = scalar_lea.vmem %s5011_s21, 64 }
 0x1d5   :  { %v6688_v19 = vld [vmem:[#allocation5 + $0x9c] sm:$0xff]   ;;  %v6690_v21 = vld [vmem:[#allocation5 + $0xa4] sm:$0xff]   ;;  %v6692_v23 = vld [vmem:[#allocation5 + $0xac] sm:$0xff]   ;;  %p7471_p0 = scmp.ne.s32.totalorder %s5011_s21, %s7470_s4  ;;  %p7476_p2 = scmp.lt.s32.totalorder %s7470_s4, %s7470_s4 }
 0x1d6   :  { %5791 = vmatpush3.bf16.msra.mxu0 %v6675_v3  ;;  %5809 = vmatpush3.bf16.msra.mxu1 %v6676_v4  ;;  %v6691_v22 = vld [vmem:[#allocation5 + $0x78] sm:$0xff]   ;;  %v6693_v24 = vld [vmem:[#allocation5 + $0x80] sm:$0xff]   ;;  %v6695_v26 = vld [vmem:[#allocation5 + $0x88] sm:$0xff]  }
 0x1d7   :  { %5792 = vmatprep.subr.bf16.mxu0 %v7539_v0  ;;  %5810 = vmatprep.subr.bf16.mxu1 %v7539_v0  ;;  %v6694_v25 = vld [vmem:[#allocation5 + $0xb4] sm:$0xff]   ;;  %v6696_v27 = vld [vmem:[#allocation5 + $0xbc] sm:$0xff]   ;;  %v6700_v30 = vld [vmem:[#allocation5 + $0xcc] ss:$0 sps:$4 sm:$0x33]   ;;  %p7477_p3 = por %p7476_p2, %p7475_p1 }
 0x1d8   :  { %v6699_v28 = vld [vmem:[#allocation5 + $0x98] ss:$0 sps:$4 sm:$0x33]   ;;  %v6697_v29 = vld [vmem:[#allocation5 + $0x90] sm:$0xff]   ;;  %v6698_v31 = vld [vmem:[#allocation5 + $0xc4] sm:$0xff]   ;;  %v705_v33 = vsel %vm413_vm1, %v6700_v30, 0 }
 0x1d9   :  { %v608_v32 = vsel %vm413_vm1, %v6699_v28, 0  ;;  %v6701_v34 = vld [vmem:[#allocation5 + $0xd0] sm:$0xff]   ;;  %v6702_v35 = vld [vmem:[#allocation5 + $0x104] sm:$0xff]   ;;  %v6703_v36 = vld [vmem:[#allocation5 + $0xd8] sm:$0xff]   ;;  %p7478_p4 = pnand %p7477_p3, %p7471_p0 }
 0x1da   :  { %5793 = vmatpush3.bf16.msra.mxu0 %v6677_v5  ;;  %5811 = vmatpush3.bf16.msra.mxu1 %v6678_v6  ;;  %v6704_v37 = vld [vmem:[#allocation5 + $0x10c] sm:$0xff]   ;;  %v6705_v38 = vld [vmem:[#allocation5 + $0xe0] sm:$0xff]   ;;  %v6706_v39 = vld [vmem:[#allocation5 + $0x114] sm:$0xff]  }
 0x1db   :  { %5794 = vmatprep.subr.bf16.mxu0 %v7539_v0  ;;  %5812 = vmatprep.subr.bf16.mxu1 %v7539_v0  ;;  %v6707_v40 = vld [vmem:[#allocation5 + $0xe8] sm:$0xff]   ;;  %v6708_v41 = vld [vmem:[#allocation5 + $0x11c] sm:$0xff]   ;;  %v6709_v42 = vld [vmem:[#allocation5 + $0xf0] sm:$0xff]  }
 0x1dc   :  { %v6710_v43 = vld [vmem:[#allocation5 + $0x124] sm:$0xff]   ;;  %v6713_v44 = vld [vmem:[#allocation5 + $0x100] ss:$0 sps:$4 sm:$0x33]   ;;  %v6711_v45 = vld [vmem:[#allocation5 + $0xf8] sm:$0xff]  }
 0x1dd   :  { %v6714_v46 = vld [vmem:[#allocation5 + $0x134] ss:$0 sps:$4 sm:$0x33]   ;;  %v6712_v47 = vld [vmem:[#allocation5 + $0x12c] sm:$0xff]   ;;  %v802_v48 = vsel %vm413_vm1, %v6713_v44, 0  ;;  %v6715_v50 = vld [vmem:[#allocation5 + $0x138] sm:$0xff]  }
 0x1de   :  { %5795 = vmatpush3.bf16.msra.mxu0 %v6679_v7  ;;  %5813 = vmatpush3.bf16.msra.mxu1 %v6680_v8  ;;  %v899_v49 = vsel %vm413_vm1, %v6714_v46, 0  ;;  %v6716_v51 = vld [vmem:[#allocation5 + $0x16c] sm:$0xff]   ;;  %v6717_v52 = vld [vmem:[#allocation5 + $0x140] sm:$0xff]   ;;  %v6718_v53 = vld [vmem:[#allocation5 + $0x174] sm:$0xff]  }
 0x1df   :  { %5796 = vmatprep.subr.bf16.mxu0 %v7539_v0  ;;  %5814 = vmatprep.subr.bf16.mxu1 %v7539_v0  ;;  %v6719_v54 = vld [vmem:[#allocation5 + $0x148] sm:$0xff]   ;;  %v6720_v55 = vld [vmem:[#allocation5 + $0x17c] sm:$0xff]   ;;  %v6721_v56 = vld [vmem:[#allocation5 + $0x150] sm:$0xff]  }
 0x1e0   :  { %v6722_v57 = vld [vmem:[#allocation5 + $0x184] sm:$0xff]   ;;  %v6723_v58 = vld [vmem:[#allocation5 + $0x158] sm:$0xff]   ;;  %v6724_v59 = vld [vmem:[#allocation5 + $0x18c] sm:$0xff]  }
 0x1e1   :  { %v6727_v60 = vld [vmem:[#allocation5 + $0x168] ss:$0 sps:$4 sm:$0x33]   ;;  %v6725_v61 = vld [vmem:[#allocation5 + $0x160] sm:$0xff]   ;;  %v6726_v63 = vld [vmem:[#allocation5 + $0x194] sm:$0xff]  }
 0x1e2   :  { %5797 = vmatpush3.bf16.msra.mxu0 %v6681_v9  ;;  %5815 = vmatpush3.bf16.msra.mxu1 %v6682_v10  ;;  %v6728_v62 = vld [vmem:[#allocation5 + $0x19c] ss:$0 sps:$4 sm:$0x33]   ;;  %v996_v1 = vsel %vm413_vm1, %v6727_v60, 0  ;;  %v6729_v3 = vld [vmem:[#allocation5 + $0x1a0] sm:$0xff]   ;;  %v6730_v4 = vld [vmem:[#allocation5 + $0x1d4] sm:$0xff]  }
 0x1e3   :  { %5798 = vmatprep.subr.bf16.mxu0 %v7539_v0  ;;  %5816 = vmatprep.subr.bf16.mxu1 %v7539_v0  ;;  %v1093_v2 = vsel %vm413_vm1, %v6728_v62, 0  ;;  %v6731_v5 = vld [vmem:[#allocation5 + $0x1a8] sm:$0xff]   ;;  %v6732_v6 = vld [vmem:[#allocation5 + $0x1dc] sm:$0xff]   ;;  %v6733_v7 = vld [vmem:[#allocation5 + $0x1b0] sm:$0xff]  }
 0x1e4   :  { %v6734_v8 = vld [vmem:[#allocation5 + $0x1e4] sm:$0xff]   ;;  %v6735_v9 = vld [vmem:[#allocation5 + $0x1b8] sm:$0xff]   ;;  %v6736_v10 = vld [vmem:[#allocation5 + $0x1ec] sm:$0xff]  }
 0x1e5   :  { %v6737_v11 = vld [vmem:[#allocation5 + $0x1c0] sm:$0xff]   ;;  %v6741_v13 = vld [vmem:[#allocation5 + $0x1d0] ss:$0 sps:$4 sm:$0x33]   ;;  %v6779_v60 = vld [vmem:[#allocation5 + $0x2f8] sm:$0xff]  }
 0x1e6   :  { %5799 = vmatpush3.bf16.msra.mxu0 %v6683_v12  ;;  %5817 = vmatpush3.bf16.msra.mxu1 %v6684_v14  ;;  %v6738_v12 = vld [vmem:[#allocation5 + $0x1f4] sm:$0xff]   ;;  %v6742_v14 = vld [vmem:[#allocation5 + $0x204] ss:$0 sps:$4 sm:$0x33]   ;;  %v6752_v28 = vld [vmem:[#allocation5 + $0x25c] sm:$0xff]  }
 0x1e7   :  { %5800 = vmatprep.subr.bf16.mxu0 %v7539_v0  ;;  %5818 = vmatprep.subr.bf16.mxu1 %v7539_v0  ;;  %v6756_v30 = vld [vmem:[#allocation5 + $0x26c] ss:$0 sps:$4 sm:$0x33]   ;;  %v6765_v44 = vld [vmem:[#allocation5 + $0x290] sm:$0xff]   ;;  %v6781_v62 = vld [vmem:[#allocation5 + $0x300] sm:$0xff]  }
 0x1e8   :  { %v6769_v46 = vld [vmem:[#allocation5 + $0x2a0] ss:$0 sps:$4 sm:$0x33]  }
 0x1ea   :  { %5801 = vmatpush3.bf16.msra.mxu0 %v415_v15  ;;  %5819 = vmatpush3.bf16.msra.mxu1 %v511_v16  ;;  %v6739_v15 = vld [vmem:[#allocation5 + $0x1c8] sm:$0xff]   ;;  %v6740_v16 = vld [vmem:[#allocation5 + $0x1fc] sm:$0xff]  }
 0x1eb   :  { %5824 = vmatprep.subr.bf16.mxu0 %v7539_v0  ;;  %5842 = vmatprep.subr.bf16.mxu1 %v7539_v0 }
 0x1ed   :  { %5803 = vmatmul.mubr.msk.bf16.vlgmr.msra.gmra.mrb[0].mxu0 %vm409_vm2, %v7993_v17  ;;  %5821 = vmatmul.mubr.msk.bf16.vlgmr.msra.gmra.mrb[0].mxu1 %vm409_vm2, %v7993_v17 }
 0x1ee   :  { %5825 = vmatpush3.bf16.msra.mxu0 %v6687_v18  ;;  %5843 = vmatpush3.bf16.msra.mxu1 %v6688_v19  ;;  %v1190_v18 = vsel %vm413_vm1, %v6741_v13, 0  ;;  %v1287_v19 = vsel %vm413_vm1, %v6742_v14, 0  ;;  %v6793_v13 = vld [vmem:[#allocation5 + $0x360] sm:$0xff]   ;;  %v6797_v14 = vld [vmem:[#allocation5 + $0x370] ss:$0 sps:$4 sm:$0x33]  }
 0x1ef   :  { %5826 = vmatprep.subr.bf16.mxu0 %v7539_v0  ;;  %5844 = vmatprep.subr.bf16.mxu1 %v7539_v0 }
 0x1f0   :  { %5838 = vmatprep.mubr.msk.bf16.mxu0 %vm7540_vm0, %v7539_v0  ;;  %5856 = vmatprep.mubr.msk.bf16.mxu1 %vm7540_vm0, %v7539_v0 }
 0x1f2   :  { %5827 = vmatpush3.bf16.msra.mxu0 %v6689_v20  ;;  %5845 = vmatpush3.bf16.msra.mxu1 %v6690_v21  ;;  %v6743_v20 = vld [vmem:[#allocation5 + $0x208] sm:$0xff]   ;;  %v6744_v21 = vld [vmem:[#allocation5 + $0x23c] sm:$0xff]  }
 0x1f3   :  { %5828 = vmatprep.subr.bf16.mxu0 %v7539_v0  ;;  %5846 = vmatprep.subr.bf16.mxu1 %v7539_v0 }
 0x1f6   :  { %5829 = vmatpush3.bf16.msra.mxu0 %v6691_v22  ;;  %5847 = vmatpush3.bf16.msra.mxu1 %v6692_v23  ;;  %v6745_v22 = vld [vmem:[#allocation5 + $0x210] sm:$0xff]   ;;  %v6746_v23 = vld [vmem:[#allocation5 + $0x244] sm:$0xff]  }
 0x1f7   :  { %5830 = vmatprep.subr.bf16.mxu0 %v7539_v0  ;;  %5848 = vmatprep.subr.bf16.mxu1 %v7539_v0 }
 0x1fa   :  { %5831 = vmatpush3.bf16.msra.mxu0 %v6693_v24  ;;  %5849 = vmatpush3.bf16.msra.mxu1 %v6694_v25  ;;  %v6747_v24 = vld [vmem:[#allocation5 + $0x218] sm:$0xff]   ;;  %v6748_v25 = vld [vmem:[#allocation5 + $0x24c] sm:$0xff]  }
 0x1fb   :  { %5832 = vmatprep.subr.bf16.mxu0 %v7539_v0  ;;  %5850 = vmatprep.subr.bf16.mxu1 %v7539_v0 }
 0x1fe   :  { %5833 = vmatpush3.bf16.msra.mxu0 %v6695_v26  ;;  %5851 = vmatpush3.bf16.msra.mxu1 %v6696_v27  ;;  %v6750_v26 = vld [vmem:[#allocation5 + $0x254] sm:$0xff]   ;;  %v6751_v27 = vld [vmem:[#allocation5 + $0x228] sm:$0xff]  }
 0x1ff   :  { %5834 = vmatprep.subr.bf16.mxu0 %v7539_v0  ;;  %5852 = vmatprep.subr.bf16.mxu1 %v7539_v0 }
 0x202   :  { %5835 = vmatpush3.bf16.msra.mxu0 %v6697_v29  ;;  %5853 = vmatpush3.bf16.msra.mxu1 %v6698_v31  ;;  %v6755_v29 = vld [vmem:[#allocation5 + $0x238] ss:$0 sps:$4 sm:$0x33]   ;;  %v6753_v31 = vld [vmem:[#allocation5 + $0x230] sm:$0xff]  }
 0x203   :  { %5836 = vmatprep.subr.bf16.mxu0 %v7539_v0  ;;  %5854 = vmatprep.subr.bf16.mxu1 %v7539_v0 }
 0x206   :  { %5837 = vmatpush3.bf16.msra.mxu0 %v608_v32  ;;  %5855 = vmatpush3.bf16.msra.mxu1 %v705_v33  ;;  %v6754_v32 = vld [vmem:[#allocation5 + $0x264] sm:$0xff]   ;;  %v1384_v33 = vsel %vm413_vm1, %v6755_v29, 0 }
 0x207   :  { %5860 = vmatprep.subr.bf16.mxu0 %v7539_v0  ;;  %5878 = vmatprep.subr.bf16.mxu1 %v7539_v0 }
 0x209   :  { %5839 = vmatmul.mubr.msk.bf16.vlgmr.msra.gmra.mrb[4].mxu0 %vm409_vm2, %v7993_v17  ;;  %5857 = vmatmul.mubr.msk.bf16.vlgmr.msra.gmra.mrb[4].mxu1 %vm409_vm2, %v7993_v17 }
 0x20a   :  { %5861 = vmatpush3.bf16.msra.mxu0 %v6701_v34  ;;  %5879 = vmatpush3.bf16.msra.mxu1 %v6702_v35  ;;  %v1481_v34 = vsel %vm413_vm1, %v6756_v30, 0  ;;  %v6757_v35 = vld [vmem:[#allocation5 + $0x270] sm:$0xff]   ;;  %v6799_v30 = vld [vmem:[#allocation5 + $0x3a8] sm:$0xff]  }
 0x20b   :  { %5862 = vmatprep.subr.bf16.mxu0 %v7539_v0  ;;  %5880 = vmatprep.subr.bf16.mxu1 %v7539_v0 }
 0x20c   :  { %5874 = vmatprep.mubr.msk.bf16.mxu0 %vm7540_vm0, %v7539_v0  ;;  %5892 = vmatprep.mubr.msk.bf16.mxu1 %vm7540_vm0, %v7539_v0 }
 0x20e   :  { %5863 = vmatpush3.bf16.msra.mxu0 %v6703_v36  ;;  %5881 = vmatpush3.bf16.msra.mxu1 %v6704_v37  ;;  %v6758_v36 = vld [vmem:[#allocation5 + $0x2a4] sm:$0xff]   ;;  %v8117_v37 = vld [vmem:[#allocation2] sm:$0xf] }
 0x20f   :  { %5864 = vmatprep.subr.bf16.mxu0 %v7539_v0  ;;  %5882 = vmatprep.subr.bf16.mxu1 %v7539_v0 }
 0x212   :  { %5865 = vmatpush3.bf16.msra.mxu0 %v6705_v38  ;;  %5883 = vmatpush3.bf16.msra.mxu1 %v6706_v39  ;;  %v6759_v38 = vld [vmem:[#allocation5 + $0x278] sm:$0xff]   ;;  %v6760_v39 = vld [vmem:[#allocation5 + $0x2ac] sm:$0xff]  }
 0x213   :  { %5866 = vmatprep.subr.bf16.mxu0 %v7539_v0  ;;  %5884 = vmatprep.subr.bf16.mxu1 %v7539_v0 }
 0x216   :  { %5867 = vmatpush3.bf16.msra.mxu0 %v6707_v40  ;;  %5885 = vmatpush3.bf16.msra.mxu1 %v6708_v41  ;;  %v6761_v40 = vld [vmem:[#allocation5 + $0x280] sm:$0xff]   ;;  %v6762_v41 = vld [vmem:[#allocation5 + $0x2b4] sm:$0xff]  }
 0x217   :  { %5868 = vmatprep.subr.bf16.mxu0 %v7539_v0  ;;  %5886 = vmatprep.subr.bf16.mxu1 %v7539_v0 }
 0x21a   :  { %5869 = vmatpush3.bf16.msra.mxu0 %v6709_v42  ;;  %5887 = vmatpush3.bf16.msra.mxu1 %v6710_v43  ;;  %v6763_v42 = vld [vmem:[#allocation5 + $0x288] sm:$0xff]   ;;  %v6764_v43 = vld [vmem:[#allocation5 + $0x2bc] sm:$0xff]  }
 0x21b   :  { %5870 = vmatprep.subr.bf16.mxu0 %v7539_v0  ;;  %5888 = vmatprep.subr.bf16.mxu1 %v7539_v0 }
 0x21e   :  { %5871 = vmatpush3.bf16.msra.mxu0 %v6711_v45  ;;  %5889 = vmatpush3.bf16.msra.mxu1 %v6712_v47  ;;  %v6766_v45 = vld [vmem:[#allocation5 + $0x2c4] sm:$0xff]   ;;  %v6770_v47 = vld [vmem:[#allocation5 + $0x2d4] ss:$0 sps:$4 sm:$0x33]  }
 0x21f   :  { %5872 = vmatprep.subr.bf16.mxu0 %v7539_v0  ;;  %5890 = vmatprep.subr.bf16.mxu1 %v7539_v0 }
 0x222   :  { %5873 = vmatpush3.bf16.msra.mxu0 %v802_v48  ;;  %5891 = vmatpush3.bf16.msra.mxu1 %v899_v49  ;;  %v6767_v48 = vld [vmem:[#allocation5 + $0x298] sm:$0xff]   ;;  %v6768_v49 = vld [vmem:[#allocation5 + $0x2cc] sm:$0xff]  }
 0x223   :  { %5896 = vmatprep.subr.bf16.mxu0 %v7539_v0  ;;  %5914 = vmatprep.subr.bf16.mxu1 %v7539_v0 }
 0x225   :  { %5875 = vmatmul.mubr.msk.bf16.vlgmr.msra.gmra.mrb[8].mxu0 %vm409_vm2, %v7993_v17  ;;  %5893 = vmatmul.mubr.msk.bf16.vlgmr.msra.gmra.mrb[8].mxu1 %vm409_vm2, %v7993_v17 }
 0x226   :  { %5897 = vmatpush3.bf16.msra.mxu0 %v6715_v50  ;;  %5915 = vmatpush3.bf16.msra.mxu1 %v6716_v51  ;;  %v1578_v50 = vsel %vm413_vm1, %v6769_v46, 0  ;;  %v1675_v51 = vsel %vm413_vm1, %v6770_v47, 0 }
 0x227   :  { %5898 = vmatprep.subr.bf16.mxu0 %v7539_v0  ;;  %5916 = vmatprep.subr.bf16.mxu1 %v7539_v0 }
 0x228   :  { %5910 = vmatprep.mubr.msk.bf16.mxu0 %vm7540_vm0, %v7539_v0  ;;  %5928 = vmatprep.mubr.msk.bf16.mxu1 %vm7540_vm0, %v7539_v0 }
 0x22a   :  { %5899 = vmatpush3.bf16.msra.mxu0 %v6717_v52  ;;  %5917 = vmatpush3.bf16.msra.mxu1 %v6718_v53  ;;  %v6771_v52 = vld [vmem:[#allocation5 + $0x2d8] sm:$0xff]   ;;  %v6772_v53 = vld [vmem:[#allocation5 + $0x30c] sm:$0xff]  }
 0x22b   :  { %5900 = vmatprep.subr.bf16.mxu0 %v7539_v0  ;;  %5918 = vmatprep.subr.bf16.mxu1 %v7539_v0 }
 0x22e   :  { %5901 = vmatpush3.bf16.msra.mxu0 %v6719_v54  ;;  %5919 = vmatpush3.bf16.msra.mxu1 %v6720_v55  ;;  %v6773_v54 = vld [vmem:[#allocation5 + $0x2e0] sm:$0xff]   ;;  %v6774_v55 = vld [vmem:[#allocation5 + $0x314] sm:$0xff]  }
 0x22f   :  { %5902 = vmatprep.subr.bf16.mxu0 %v7539_v0  ;;  %5920 = vmatprep.subr.bf16.mxu1 %v7539_v0 }
 0x232   :  { %5903 = vmatpush3.bf16.msra.mxu0 %v6721_v56  ;;  %5921 = vmatpush3.bf16.msra.mxu1 %v6722_v57  ;;  %v6775_v56 = vld [vmem:[#allocation5 + $0x2e8] sm:$0xff]   ;;  %v6776_v57 = vld [vmem:[#allocation5 + $0x31c] sm:$0xff]  }
 0x233   :  { %5904 = vmatprep.subr.bf16.mxu0 %v7539_v0  ;;  %5922 = vmatprep.subr.bf16.mxu1 %v7539_v0 }
 0x236   :  { %5905 = vmatpush3.bf16.msra.mxu0 %v6723_v58  ;;  %5923 = vmatpush3.bf16.msra.mxu1 %v6724_v59  ;;  %v6777_v58 = vld [vmem:[#allocation5 + $0x2f0] sm:$0xff]   ;;  %v6778_v59 = vld [vmem:[#allocation5 + $0x324] sm:$0xff]  }
 0x237   :  { %5906 = vmatprep.subr.bf16.mxu0 %v7539_v0  ;;  %5924 = vmatprep.subr.bf16.mxu1 %v7539_v0 }
 0x23a   :  { %5907 = vmatpush3.bf16.msra.mxu0 %v6725_v61  ;;  %5925 = vmatpush3.bf16.msra.mxu1 %v6726_v63  ;;  %v6780_v61 = vld [vmem:[#allocation5 + $0x32c] sm:$0xff]   ;;  %v6783_v63 = vld [vmem:[#allocation5 + $0x308] ss:$0 sps:$4 sm:$0x33]  }
 0x23b   :  { %5908 = vmatprep.subr.bf16.mxu0 %v7539_v0  ;;  %5926 = vmatprep.subr.bf16.mxu1 %v7539_v0 }
 0x23e   :  { %5909 = vmatpush3.bf16.msra.mxu0 %v996_v1  ;;  %5927 = vmatpush3.bf16.msra.mxu1 %v1093_v2  ;;  %v6784_v1 = vld [vmem:[#allocation5 + $0x33c] ss:$0 sps:$4 sm:$0x33]   ;;  %v6782_v2 = vld [vmem:[#allocation5 + $0x334] sm:$0xff]  }
 0x23f   :  { %5932 = vmatprep.subr.bf16.mxu0 %v7539_v0  ;;  %5950 = vmatprep.subr.bf16.mxu1 %v7539_v0 }
 0x241   :  { %5911 = vmatmul.mubr.msk.bf16.vlgmr.msra.gmra.mrb[12].mxu0 %vm409_vm2, %v7993_v17  ;;  %5929 = vmatmul.mubr.msk.bf16.vlgmr.msra.gmra.mrb[12].mxu1 %vm409_vm2, %v7993_v17 }
 0x242   :  { %5933 = vmatpush3.bf16.msra.mxu0 %v6729_v3  ;;  %5951 = vmatpush3.bf16.msra.mxu1 %v6730_v4  ;;  %v1772_v3 = vsel %vm413_vm1, %v6783_v63, 0  ;;  %v1869_v4 = vsel %vm413_vm1, %v6784_v1, 0  ;;  %v6820_v63 = vld [vmem:[#allocation5 + $0x45c] sm:$0xff]   ;;  %v6821_v1 = vld [vmem:[#allocation5 + $0x430] sm:$0xff]  }
 0x243   :  { %5934 = vmatprep.subr.bf16.mxu0 %v7539_v0  ;;  %5952 = vmatprep.subr.bf16.mxu1 %v7539_v0 }
 0x244   :  { %5946 = vmatprep.mubr.msk.bf16.mxu0 %vm7540_vm0, %v7539_v0  ;;  %5964 = vmatprep.mubr.msk.bf16.mxu1 %vm7540_vm0, %v7539_v0 }
 0x246   :  { %5935 = vmatpush3.bf16.msra.mxu0 %v6731_v5  ;;  %5953 = vmatpush3.bf16.msra.mxu1 %v6732_v6  ;;  %v6785_v5 = vld [vmem:[#allocation5 + $0x340] sm:$0xff]   ;;  %v6786_v6 = vld [vmem:[#allocation5 + $0x374] sm:$0xff]  }
 0x247   :  { %5936 = vmatprep.subr.bf16.mxu0 %v7539_v0  ;;  %5954 = vmatprep.subr.bf16.mxu1 %v7539_v0 }
 0x24a   :  { %5937 = vmatpush3.bf16.msra.mxu0 %v6733_v7  ;;  %5955 = vmatpush3.bf16.msra.mxu1 %v6734_v8  ;;  %v6787_v7 = vld [vmem:[#allocation5 + $0x348] sm:$0xff]   ;;  %v6788_v8 = vld [vmem:[#allocation5 + $0x37c] sm:$0xff]  }
 0x24b   :  { %5938 = vmatprep.subr.bf16.mxu0 %v7539_v0  ;;  %5956 = vmatprep.subr.bf16.mxu1 %v7539_v0 }
 0x24e   :  { %5939 = vmatpush3.bf16.msra.mxu0 %v6735_v9  ;;  %5957 = vmatpush3.bf16.msra.mxu1 %v6736_v10  ;;  %v6789_v9 = vld [vmem:[#allocation5 + $0x350] sm:$0xff]   ;;  %v6790_v10 = vld [vmem:[#allocation5 + $0x384] sm:$0xff]  }
 0x24f   :  { %5940 = vmatprep.subr.bf16.mxu0 %v7539_v0  ;;  %5958 = vmatprep.subr.bf16.mxu1 %v7539_v0 }
 0x252   :  { %5941 = vmatpush3.bf16.msra.mxu0 %v6737_v11  ;;  %5959 = vmatpush3.bf16.msra.mxu1 %v6738_v12  ;;  %v6791_v11 = vld [vmem:[#allocation5 + $0x358] sm:$0xff]   ;;  %v6792_v12 = vld [vmem:[#allocation5 + $0x38c] sm:$0xff]  }
 0x253   :  { %5942 = vmatprep.subr.bf16.mxu0 %v7539_v0  ;;  %5960 = vmatprep.subr.bf16.mxu1 %v7539_v0 }
 0x256   :  { %5943 = vmatpush3.bf16.msra.mxu0 %v6739_v15  ;;  %5961 = vmatpush3.bf16.msra.mxu1 %v6740_v16  ;;  %v6798_v15 = vld [vmem:[#allocation5 + $0x3a4] ss:$0 sps:$4 sm:$0x33]   ;;  %v6794_v16 = vld [vmem:[#allocation5 + $0x394] sm:$0xff]  }
 0x257   :  { %5944 = vmatprep.subr.bf16.mxu0 %v7539_v0  ;;  %5962 = vmatprep.subr.bf16.mxu1 %v7539_v0 }
 0x25a   :  { %5945 = vmatpush3.bf16.msra.mxu0 %v1190_v18  ;;  %5963 = vmatpush3.bf16.msra.mxu1 %v1287_v19  ;;  %v6795_v19 = vld [vmem:[#allocation5 + $0x368] sm:$0xff]  }
 0x25b   :  { %5968 = vmatprep.subr.bf16.mxu0 %v7539_v0  ;;  %5986 = vmatprep.subr.bf16.mxu1 %v7539_v0 }
 0x25d   :  { %5947 = vmatmul.mubr.msk.bf16.vlgmr.msra.gmra.mrb[16].mxu0 %vm409_vm2, %v7993_v17  ;;  %5965 = vmatmul.mubr.msk.bf16.vlgmr.msra.gmra.mrb[16].mxu1 %vm409_vm2, %v7993_v17  ;;  %v6749_v17 = vld [vmem:[#allocation5 + $0x220] sm:$0xff]  }
 0x25e   :  { %5969 = vmatpush3.bf16.msra.mxu0 %v6743_v20  ;;  %5987 = vmatpush3.bf16.msra.mxu1 %v6744_v21 }
 0x25f   :  { %5970 = vmatprep.subr.bf16.mxu0 %v7539_v0  ;;  %5988 = vmatprep.subr.bf16.mxu1 %v7539_v0 }
 0x260   :  { %5982 = vmatprep.mubr.msk.bf16.mxu0 %vm7540_vm0, %v7539_v0  ;;  %6000 = vmatprep.mubr.msk.bf16.mxu1 %vm7540_vm0, %v7539_v0 }
 0x262   :  { %5971 = vmatpush3.bf16.msra.mxu0 %v6745_v22  ;;  %5989 = vmatpush3.bf16.msra.mxu1 %v6746_v23 }
 0x263   :  { %5972 = vmatprep.subr.bf16.mxu0 %v7539_v0  ;;  %5990 = vmatprep.subr.bf16.mxu1 %v7539_v0 }
 0x266   :  { %5973 = vmatpush3.bf16.msra.mxu0 %v6747_v24  ;;  %5991 = vmatpush3.bf16.msra.mxu1 %v6748_v25 }
 0x267   :  { %5974 = vmatprep.subr.bf16.mxu0 %v7539_v0  ;;  %5992 = vmatprep.subr.bf16.mxu1 %v7539_v0 }
 0x26a   :  { %5975 = vmatpush3.bf16.msra.mxu0 %v6749_v17  ;;  %5993 = vmatpush3.bf16.msra.mxu1 %v6750_v26  ;;  %v6796_v17 = vld [vmem:[#allocation5 + $0x39c] sm:$0xff]   ;;  %v1966_v26 = vsel %vm413_vm1, %v6797_v14, 0 }
 0x26b   :  { %5976 = vmatprep.subr.bf16.mxu0 %v7539_v0  ;;  %5994 = vmatprep.subr.bf16.mxu1 %v7539_v0 }
 0x26e   :  { %5977 = vmatpush3.bf16.msra.mxu0 %v6751_v27  ;;  %5995 = vmatpush3.bf16.msra.mxu1 %v6752_v28  ;;  %v2063_v28 = vsel %vm413_vm1, %v6798_v15, 0  ;;  %v6826_v15 = vld [vmem:[#allocation5 + $0x474] ss:$0 sps:$4 sm:$0x33]  }
 0x26f   :  { %5978 = vmatprep.subr.bf16.mxu0 %v7539_v0  ;;  %5996 = vmatprep.subr.bf16.mxu1 %v7539_v0 }
 0x272   :  { %5979 = vmatpush3.bf16.msra.mxu0 %v6753_v31  ;;  %5997 = vmatpush3.bf16.msra.mxu1 %v6754_v32  ;;  %v6800_v31 = vld [vmem:[#allocation5 + $0x3dc] sm:$0xff]   ;;  %v6801_v32 = vld [vmem:[#allocation5 + $0x3b0] sm:$0xff]  }
 0x273   :  { %5980 = vmatprep.subr.bf16.mxu0 %v7539_v0  ;;  %5998 = vmatprep.subr.bf16.mxu1 %v7539_v0 }
 0x276   :  { %5981 = vmatpush3.bf16.msra.mxu0 %v1384_v33  ;;  %5999 = vmatpush3.bf16.msra.mxu1 %v1481_v34  ;;  %v6802_v33 = vld [vmem:[#allocation5 + $0x3e4] sm:$0xff]   ;;  %v6803_v34 = vld [vmem:[#allocation5 + $0x3b8] sm:$0xff]  }
 0x277   :  { %6004 = vmatprep.subr.bf16.mxu0 %v7539_v0  ;;  %6022 = vmatprep.subr.bf16.mxu1 %v7539_v0 }
 0x279   :  { %5983 = vmatmul.mubr.msk.bf16.vlgmr.msra.gmra.mrb[20].mxu0 %vm409_vm2, %v8117_v37  ;;  %6001 = vmatmul.mubr.msk.bf16.vlgmr.msra.gmra.mrb[20].mxu1 %vm409_vm2, %v8117_v37 }
 0x27a   :  { %6005 = vmatpush3.bf16.msra.mxu0 %v6757_v35  ;;  %6023 = vmatpush3.bf16.msra.mxu1 %v6758_v36  ;;  %v6804_v35 = vld [vmem:[#allocation5 + $0x3ec] sm:$0xff]   ;;  %v6805_v36 = vld [vmem:[#allocation5 + $0x3c0] sm:$0xff]  }
 0x27b   :  { %6006 = vmatprep.subr.bf16.mxu0 %v7539_v0  ;;  %6024 = vmatprep.subr.bf16.mxu1 %v7539_v0 }
 0x27c   :  { %6018 = vmatprep.mubr.msk.bf16.mxu0 %vm7540_vm0, %v7539_v0  ;;  %6036 = vmatprep.mubr.msk.bf16.mxu1 %vm7540_vm0, %v7539_v0 }
 0x27e   :  { %6007 = vmatpush3.bf16.msra.mxu0 %v6759_v38  ;;  %6025 = vmatpush3.bf16.msra.mxu1 %v6760_v39  ;;  %v6806_v38 = vld [vmem:[#allocation5 + $0x3f4] sm:$0xff]  }
 0x27f   :  { %6008 = vmatprep.subr.bf16.mxu0 %v7539_v0  ;;  %6026 = vmatprep.subr.bf16.mxu1 %v7539_v0  ;;  %v6811_v39 = vld [vmem:[#allocation5 + $0x3d8] ss:$0 sps:$4 sm:$0x33]  }
 0x282   :  { %6009 = vmatpush3.bf16.msra.mxu0 %v6761_v40  ;;  %6027 = vmatpush3.bf16.msra.mxu1 %v6762_v41  ;;  %v6807_v40 = vld [vmem:[#allocation5 + $0x3c8] sm:$0xff]   ;;  %v6808_v41 = vld [vmem:[#allocation5 + $0x3fc] sm:$0xff]  }
 0x283   :  { %6010 = vmatprep.subr.bf16.mxu0 %v7539_v0  ;;  %6028 = vmatprep.subr.bf16.mxu1 %v7539_v0 }
 0x286   :  { %6011 = vmatpush3.bf16.msra.mxu0 %v6763_v42  ;;  %6029 = vmatpush3.bf16.msra.mxu1 %v6764_v43  ;;  %v6812_v42 = vld [vmem:[#allocation5 + $0x40c] ss:$0 sps:$4 sm:$0x33]  }
 0x287   :  { %6012 = vmatprep.subr.bf16.mxu0 %v7539_v0  ;;  %6030 = vmatprep.subr.bf16.mxu1 %v7539_v0 }
 0x28a   :  { %6013 = vmatpush3.bf16.msra.mxu0 %v6765_v44  ;;  %6031 = vmatpush3.bf16.msra.mxu1 %v6766_v45  ;;  %v6809_v44 = vld [vmem:[#allocation5 + $0x3d0] sm:$0xff]   ;;  %v2160_v45 = vsel %vm413_vm1, %v6811_v39, 0 }
 0x28b   :  { %6014 = vmatprep.subr.bf16.mxu0 %v7539_v0  ;;  %6032 = vmatprep.subr.bf16.mxu1 %v7539_v0 }
 0x28e   :  { %6015 = vmatpush3.bf16.msra.mxu0 %v6767_v48  ;;  %6033 = vmatpush3.bf16.msra.mxu1 %v6768_v49  ;;  %v6810_v49 = vld [vmem:[#allocation5 + $0x404] sm:$0xff]  }
 0x28f   :  { %6016 = vmatprep.subr.bf16.mxu0 %v7539_v0  ;;  %6034 = vmatprep.subr.bf16.mxu1 %v7539_v0 }
 0x292   :  { %6017 = vmatpush3.bf16.msra.mxu0 %v1578_v50  ;;  %6035 = vmatpush3.bf16.msra.mxu1 %v1675_v51 }
 0x293   :  { %6040 = vmatprep.subr.bf16.mxu0 %v7539_v0  ;;  %6058 = vmatprep.subr.bf16.mxu1 %v7539_v0 }
 0x295   :  { %6019 = vmatmul.mubr.msk.bf16.vlgmr.msra.gmra.mrb[24].mxu0 %vm409_vm2, %v8117_v37  ;;  %6037 = vmatmul.mubr.msk.bf16.vlgmr.msra.gmra.mrb[24].mxu1 %vm409_vm2, %v8117_v37 }
 0x296   :  { %6041 = vmatpush3.bf16.msra.mxu0 %v6771_v52  ;;  %6059 = vmatpush3.bf16.msra.mxu1 %v6772_v53 }
 0x297   :  { %6042 = vmatprep.subr.bf16.mxu0 %v7539_v0  ;;  %6060 = vmatprep.subr.bf16.mxu1 %v7539_v0 }
 0x298   :  { %6054 = vmatprep.mubr.msk.bf16.mxu0 %vm7540_vm0, %v7539_v0  ;;  %6072 = vmatprep.mubr.msk.bf16.mxu1 %vm7540_vm0, %v7539_v0 }
 0x29a   :  { %6043 = vmatpush3.bf16.msra.mxu0 %v6773_v54  ;;  %6061 = vmatpush3.bf16.msra.mxu1 %v6774_v55  ;;  %v2257_v55 = vsel %vm413_vm1, %v6812_v42, 0 }
 0x29b   :  { %6044 = vmatprep.subr.bf16.mxu0 %v7539_v0  ;;  %6062 = vmatprep.subr.bf16.mxu1 %v7539_v0 }
 0x29e   :  { %6045 = vmatpush3.bf16.msra.mxu0 %v6775_v56  ;;  %6063 = vmatpush3.bf16.msra.mxu1 %v6776_v57  ;;  %v6813_v57 = vld [vmem:[#allocation5 + $0x410] sm:$0xff]  }
 0x29f   :  { %6046 = vmatprep.subr.bf16.mxu0 %v7539_v0  ;;  %6064 = vmatprep.subr.bf16.mxu1 %v7539_v0 }
 0x2a2   :  { %6047 = vmatpush3.bf16.msra.mxu0 %v6777_v58  ;;  %6065 = vmatpush3.bf16.msra.mxu1 %v6778_v59  ;;  %v6814_v58 = vld [vmem:[#allocation5 + $0x444] sm:$0xff]   ;;  %v6815_v59 = vld [vmem:[#allocation5 + $0x418] sm:$0xff]  }
 0x2a3   :  { %6048 = vmatprep.subr.bf16.mxu0 %v7539_v0  ;;  %6066 = vmatprep.subr.bf16.mxu1 %v7539_v0 }
 0x2a6   :  { %6049 = vmatpush3.bf16.msra.mxu0 %v6779_v60  ;;  %6067 = vmatpush3.bf16.msra.mxu1 %v6780_v61  ;;  %v6816_v60 = vld [vmem:[#allocation5 + $0x44c] sm:$0xff]   ;;  %v6817_v61 = vld [vmem:[#allocation5 + $0x420] sm:$0xff]  }
 0x2a7   :  { %6050 = vmatprep.subr.bf16.mxu0 %v7539_v0  ;;  %6068 = vmatprep.subr.bf16.mxu1 %v7539_v0 }
 0x2aa   :  { %6051 = vmatpush3.bf16.msra.mxu0 %v6781_v62  ;;  %6069 = vmatpush3.bf16.msra.mxu1 %v6782_v2  ;;  %v6818_v62 = vld [vmem:[#allocation5 + $0x454] sm:$0xff]   ;;  %v6822_v2 = vld [vmem:[#allocation5 + $0x464] sm:$0xff]  }
 0x2ab   :  { %6052 = vmatprep.subr.bf16.mxu0 %v7539_v0  ;;  %6070 = vmatprep.subr.bf16.mxu1 %v7539_v0 }
 0x2ae   :  { %6053 = vmatpush3.bf16.msra.mxu0 %v1772_v3  ;;  %6071 = vmatpush3.bf16.msra.mxu1 %v1869_v4 }
 0x2af   :  { %6076 = vmatprep.subr.bf16.mxu0 %v7539_v0  ;;  %6094 = vmatprep.subr.bf16.mxu1 %v7539_v0 }
 0x2b1   :  { %6055 = vmatmul.mubr.msk.bf16.vlgmr.msra.gmra.mrb[28].mxu0 %vm409_vm2, %v8117_v37  ;;  %6073 = vmatmul.mubr.msk.bf16.vlgmr.msra.gmra.mrb[28].mxu1 %vm409_vm2, %v8117_v37 }
 0x2b2   :  { %6077 = vmatpush3.bf16.msra.mxu0 %v6785_v5  ;;  %6095 = vmatpush3.bf16.msra.mxu1 %v6786_v6 }
 0x2b3   :  { %6078 = vmatprep.subr.bf16.mxu0 %v7539_v0  ;;  %6096 = vmatprep.subr.bf16.mxu1 %v7539_v0 }
 0x2b4   :  { %6090 = vmatprep.mubr.msk.bf16.mxu0 %vm7540_vm0, %v7539_v0  ;;  %6108 = vmatprep.mubr.msk.bf16.mxu1 %vm7540_vm0, %v7539_v0 }
 0x2b6   :  { %6079 = vmatpush3.bf16.msra.mxu0 %v6787_v7  ;;  %6097 = vmatpush3.bf16.msra.mxu1 %v6788_v8  ;;  %v6823_v8 = vld [vmem:[#allocation5 + $0x438] sm:$0xff]  }
 0x2b7   :  { %6080 = vmatprep.subr.bf16.mxu0 %v7539_v0  ;;  %6098 = vmatprep.subr.bf16.mxu1 %v7539_v0 }
 0x2ba   :  { %6081 = vmatpush3.bf16.msra.mxu0 %v6789_v9  ;;  %6099 = vmatpush3.bf16.msra.mxu1 %v6790_v10 }
 0x2bb   :  { %6082 = vmatprep.subr.bf16.mxu0 %v7539_v0  ;;  %6100 = vmatprep.subr.bf16.mxu1 %v7539_v0 }
 0x2be   :  { %6083 = vmatpush3.bf16.msra.mxu0 %v6791_v11  ;;  %6101 = vmatpush3.bf16.msra.mxu1 %v6792_v12  ;;  %v6824_v12 = vld [vmem:[#allocation5 + $0x46c] sm:$0xff]  }
 0x2bf   :  { %6084 = vmatprep.subr.bf16.mxu0 %v7539_v0  ;;  %6102 = vmatprep.subr.bf16.mxu1 %v7539_v0 }
 0x2c0   :  { %v451_v18 = vpop.f32.mrb[0].mxu0  ;;  %v547_v21 = vpop.f32.mrb[0].mxu1 }
 0x2c1   :  { %v5804_v20 = vpop.f32.mrb[1].mxu0  ;;  %v553_v22 = vmax.f32 %v451_v18, %v547_v21  ;;  %v5822_v24 = vpop.f32.mrb[1].mxu1  ;;  %v6828_v21 = vld [vmem:[#allocation5 + $0x4ac] sm:$0xff]  }
 0x2c2   :  { %v454_v23 = vpop.f32.mrb[2].mxu0  ;;  %6085 = vmatpush3.bf16.msra.mxu0 %v6793_v13  ;;  %6103 = vmatpush3.bf16.msra.mxu1 %v6794_v16  ;;  %v550_v27 = vpop.f32.mrb[2].mxu1  ;;  %v6825_v13 = vld [vmem:[#allocation5 + $0x440] ss:$0 sps:$4 sm:$0x33]   ;;  %v6827_v20 = vld [vmem:[#allocation5 + $0x478] sm:$0xff]  }
 0x2c3   :  { %v5805_v25 = vpop.f32.mrb[3].mxu0  ;;  %6086 = vmatprep.subr.bf16.mxu0 %v7539_v0  ;;  %6104 = vmatprep.subr.bf16.mxu1 %v7539_v0  ;;  %v5823_v29 = vpop.f32.mrb[3].mxu1  ;;  %v2354_v18 = vsel %vm413_vm1, %v6825_v13, 0  ;;  %v6829_v23 = vld [vmem:[#allocation5 + $0x480] sm:$0xff]   ;;  %v6830_v24 = vld [vmem:[#allocation5 + $0x4b4] sm:$0xff]  }
 0x2c4   :  { %v6831_v25 = vld [vmem:[#allocation5 + $0x488] sm:$0xff]  }
 0x2c5   :  { %v6834_v27 = vld [vmem:[#allocation5 + $0x4c4] sm:$0xff]   ;;  %v6836_v29 = vld [vmem:[#allocation5 + $0x4cc] sm:$0xff]  }
 0x2c6   :  { %6087 = vmatpush3.bf16.msra.mxu0 %v6795_v19  ;;  %6105 = vmatpush3.bf16.msra.mxu1 %v6796_v17  ;;  %v2451_v19 = vsel %vm413_vm1, %v6826_v15, 0  ;;  %v6832_v17 = vld [vmem:[#allocation5 + $0x4bc] sm:$0xff]  }
 0x2c7   :  { %6088 = vmatprep.subr.bf16.mxu0 %v7539_v0  ;;  %6106 = vmatprep.subr.bf16.mxu1 %v7539_v0  ;;  %v6854_v15 = vld [vmem:[#allocation11 + $0x30] ss:$0 sps:$4 sm:$0x33]  }
 0x2ca   :  { %6089 = vmatpush3.bf16.msra.mxu0 %v1966_v26  ;;  %6107 = vmatpush3.bf16.msra.mxu1 %v2063_v28  ;;  %v6833_v26 = vld [vmem:[#allocation5 + $0x490] sm:$0xff]   ;;  %v6835_v28 = vld [vmem:[#allocation5 + $0x498] sm:$0xff]  }
 0x2cb   :  { %6112 = vmatprep.subr.bf16.mxu0 %v7539_v0  ;;  %6130 = vmatprep.subr.bf16.mxu1 %v7539_v0 }
 0x2cd   :  { %6091 = vmatmul.mubr.msk.bf16.vlgmr.msra.gmra.mrb[32].mxu0 %vm409_vm2, %v8117_v37  ;;  %6109 = vmatmul.mubr.msk.bf16.vlgmr.msra.gmra.mrb[32].mxu1 %vm409_vm2, %v8117_v37 }
 0x2ce   :  { %6113 = vmatpush3.bf16.msra.mxu0 %v6799_v30  ;;  %6131 = vmatpush3.bf16.msra.mxu1 %v6800_v31 }
 0x2cf   :  { %6114 = vmatprep.subr.bf16.mxu0 %v7539_v0  ;;  %6132 = vmatprep.subr.bf16.mxu1 %v7539_v0 }
 0x2d0   :  { %6126 = vmatprep.mubr.msk.bf16.mxu0 %vm7540_vm0, %v7539_v0  ;;  %6144 = vmatprep.mubr.msk.bf16.mxu1 %vm7540_vm0, %v7539_v0 }
 0x2d2   :  { %6115 = vmatpush3.bf16.msra.mxu0 %v6801_v32  ;;  %6133 = vmatpush3.bf16.msra.mxu1 %v6802_v33 }
 0x2d3   :  { %6116 = vmatprep.subr.bf16.mxu0 %v7539_v0  ;;  %6134 = vmatprep.subr.bf16.mxu1 %v7539_v0 }
 0x2d6   :  { %6117 = vmatpush3.bf16.msra.mxu0 %v6803_v34  ;;  %6135 = vmatpush3.bf16.msra.mxu1 %v6804_v35  ;;  %v6837_v35 = vld [vmem:[#allocation5 + $0x4a0] sm:$0xff]  }
 0x2d7   :  { %6118 = vmatprep.subr.bf16.mxu0 %v7539_v0  ;;  %6136 = vmatprep.subr.bf16.mxu1 %v7539_v0 }
 0x2da   :  { %6119 = vmatpush3.bf16.msra.mxu0 %v6805_v36  ;;  %6137 = vmatpush3.bf16.msra.mxu1 %v6806_v38 }
 0x2db   :  { %6120 = vmatprep.subr.bf16.mxu0 %v7539_v0  ;;  %6138 = vmatprep.subr.bf16.mxu1 %v7539_v0 }
 0x2dc   :  { %v644_v43 = vpop.f32.mrb[4].mxu0  ;;  %v741_v48 = vpop.f32.mrb[4].mxu1 }
 0x2dd   :  { %v650_v46 = vmax.f32 %v553_v22, %v644_v43  ;;  %v5840_v47 = vpop.f32.mrb[5].mxu0  ;;  %v5858_v51 = vpop.f32.mrb[5].mxu1  ;;  %v8239_v22 = vld [vmem:[#allocation2] sm:$0xf] }
 0x2de   :  { %v647_v50 = vpop.f32.mrb[6].mxu0  ;;  %6121 = vmatpush3.bf16.msra.mxu0 %v6807_v40  ;;  %6139 = vmatpush3.bf16.msra.mxu1 %v6808_v41  ;;  %v744_v54 = vpop.f32.mrb[6].mxu1  ;;  %v6838_v40 = vld [vmem:[#allocation5 + $0x4d4] sm:$0xff]   ;;  %v6839_v41 = vld [vmem:[#allocation5 + $0x4a8] ss:$0 sps:$4 sm:$0x33]  }
 0x2df   :  { %v747_v52 = vmax.f32 %v650_v46, %v741_v48  ;;  %v5841_v53 = vpop.f32.mrb[7].mxu0  ;;  %6122 = vmatprep.subr.bf16.mxu0 %v7539_v0  ;;  %6140 = vmatprep.subr.bf16.mxu1 %v7539_v0  ;;  %v5859_v56 = vpop.f32.mrb[7].mxu1  ;;  %v6840_v43 = vld [vmem:[#allocation5 + $0x4dc] ss:$0 sps:$4 sm:$0x33]   ;;  %v6841_v47 = vld [vmem:[#allocation5 + $0x4e0] sm:$0xff]  }
 0x2e0   :  { %v2645_v46 = vsel %vm413_vm1, %v6840_v43, 0  ;;  %v6842_v48 = vld [vmem:[#allocation5 + $0x4e8] sm:$0xff]   ;;  %v6844_v50 = vld [vmem:[#allocation5 + $0x4f8] sm:$0xff]   ;;  %v6845_v51 = vld [vmem:[#allocation5 + $0x500] sm:$0xff]  }
 0x2e2   :  { %6123 = vmatpush3.bf16.msra.mxu0 %v6809_v44  ;;  %6141 = vmatpush3.bf16.msra.mxu1 %v6810_v49  ;;  %v6843_v49 = vld [vmem:[#allocation5 + $0x4f0] sm:$0xff]  }
 0x2e3   :  { %6124 = vmatprep.subr.bf16.mxu0 %v7539_v0  ;;  %6142 = vmatprep.subr.bf16.mxu1 %v7539_v0 }
 0x2e6   :  { %6125 = vmatpush3.bf16.msra.mxu0 %v2160_v45  ;;  %6143 = vmatpush3.bf16.msra.mxu1 %v2257_v55  ;;  %v2548_v45 = vsel %vm413_vm1, %v6839_v41, 0 }
 0x2e7   :  { %6148 = vmatprep.subr.bf16.mxu0 %v7539_v0  ;;  %6166 = vmatprep.subr.bf16.mxu1 %v7539_v0 }
 0x2e9   :  { %6127 = vmatmul.mubr.msk.bf16.vlgmr.msra.gmra.mrb[36].mxu0 %vm409_vm2, %v8117_v37  ;;  %6145 = vmatmul.mubr.msk.bf16.vlgmr.msra.gmra.mrb[36].mxu1 %vm409_vm2, %v8117_v37  ;;  %v6819_v37 = vld [vmem:[#allocation5 + $0x428] sm:$0xff]  }
 0x2ea   :  { %6149 = vmatpush3.bf16.msra.mxu0 %v6813_v57  ;;  %6167 = vmatpush3.bf16.msra.mxu1 %v6814_v58  ;;  %v6846_v57 = vld [vmem:[#allocation5 + $0x508] sm:$0xff]  }
 0x2eb   :  { %6150 = vmatprep.subr.bf16.mxu0 %v7539_v0  ;;  %6168 = vmatprep.subr.bf16.mxu1 %v7539_v0 }
 0x2ec   :  { %6162 = vmatprep.mubr.msk.bf16.mxu0 %vm7540_vm0, %v7539_v0  ;;  %6180 = vmatprep.mubr.msk.bf16.mxu1 %vm7540_vm0, %v7539_v0 }
 0x2ee   :  { %6151 = vmatpush3.bf16.msra.mxu0 %v6815_v59  ;;  %6169 = vmatpush3.bf16.msra.mxu1 %v6816_v60 }
 0x2ef   :  { %6152 = vmatprep.subr.bf16.mxu0 %v7539_v0  ;;  %6170 = vmatprep.subr.bf16.mxu1 %v7539_v0 }
 0x2f2   :  { %6153 = vmatpush3.bf16.msra.mxu0 %v6817_v61  ;;  %6171 = vmatpush3.bf16.msra.mxu1 %v6818_v62  ;;  %v6847_v61 = vld [vmem:[#allocation5 + $0x510] ss:$0 sps:$4 sm:$0x33]  }
 0x2f3   :  { %6154 = vmatprep.subr.bf16.mxu0 %v7539_v0  ;;  %6172 = vmatprep.subr.bf16.mxu1 %v7539_v0 }
 0x2f6   :  { %6155 = vmatpush3.bf16.msra.mxu0 %v6819_v37  ;;  %6173 = vmatpush3.bf16.msra.mxu1 %v6820_v63  ;;  %v2742_v63 = vsel %vm413_vm1, %v6847_v61, 0 }
 0x2f7   :  { %6156 = vmatprep.subr.bf16.mxu0 %v7539_v0  ;;  %6174 = vmatprep.subr.bf16.mxu1 %v7539_v0 }
 0x2f8   :  { %v838_v3 = vpop.f32.mrb[8].mxu0  ;;  %v935_v6 = vpop.f32.mrb[8].mxu1 }
 0x2f9   :  { %v844_v4 = vmax.f32 %v747_v52, %v838_v3  ;;  %v5876_v5 = vpop.f32.mrb[9].mxu0  ;;  %v5894_v9 = vpop.f32.mrb[9].mxu1  ;;  %v6850_v3 = vld [vmem:[#allocation11 + $0x10] sm:$0xff]  }
 0x2fa   :  { %v841_v7 = vpop.f32.mrb[10].mxu0  ;;  %6157 = vmatpush3.bf16.msra.mxu0 %v6821_v1  ;;  %6175 = vmatpush3.bf16.msra.mxu1 %v6822_v2  ;;  %v938_v14 = vpop.f32.mrb[10].mxu1  ;;  %v6848_v1 = vld [vmem:[#allocation11] sm:$0xff]   ;;  %v6849_v2 = vld [vmem:[#allocation11 + $0x8] sm:$0xff]  }
 0x2fb   :  { %v941_v10 = vmax.f32 %v844_v4, %v935_v6  ;;  %v5877_v11 = vpop.f32.mrb[11].mxu0  ;;  %6158 = vmatprep.subr.bf16.mxu0 %v7539_v0  ;;  %6176 = vmatprep.subr.bf16.mxu1 %v7539_v0  ;;  %v5895_v16 = vpop.f32.mrb[11].mxu1  ;;  %v6851_v4 = vld [vmem:[#allocation11 + $0x18] sm:$0xff]   ;;  %v6852_v5 = vld [vmem:[#allocation11 + $0x20] sm:$0xff]  }
 0x2fc   :  { %v6853_v11 = vld [vmem:[#allocation11 + $0x28] sm:$0xff]  }
 0x2fe   :  { %6159 = vmatpush3.bf16.msra.mxu0 %v6823_v8  ;;  %6177 = vmatpush3.bf16.msra.mxu1 %v6824_v12 }
 0x2ff   :  { %6160 = vmatprep.subr.bf16.mxu0 %v7539_v0  ;;  %6178 = vmatprep.subr.bf16.mxu1 %v7539_v0 }
 0x302   :  { %6161 = vmatpush3.bf16.msra.mxu0 %v2354_v18  ;;  %6179 = vmatpush3.bf16.msra.mxu1 %v2451_v19  ;;  %v2965_v19 = vsel %vm413_vm1, %v6854_v15, 0 }
 0x303   :  { %6184 = vmatprep.subr.bf16.mxu0 %v7539_v0  ;;  %6202 = vmatprep.subr.bf16.mxu1 %v7539_v0 }
 0x305   :  { %6163 = vmatmul.mubr.msk.bf16.vlgmr.msra.gmra.mrb[40].mxu0 %vm409_vm2, %v8239_v22  ;;  %6181 = vmatmul.mubr.msk.bf16.vlgmr.msra.gmra.mrb[40].mxu1 %vm409_vm2, %v8239_v22 }
 0x306   :  { %6185 = vmatpush3.bf16.msra.mxu0 %v6827_v20  ;;  %6203 = vmatpush3.bf16.msra.mxu1 %v6828_v21 }
 0x307   :  { %6186 = vmatprep.subr.bf16.mxu0 %v7539_v0  ;;  %6204 = vmatprep.subr.bf16.mxu1 %v7539_v0 }
 0x308   :  { %6198 = vmatprep.mubr.msk.bf16.mxu0 %vm7540_vm0, %v7539_v0  ;;  %6216 = vmatprep.mubr.msk.bf16.mxu1 %vm7540_vm0, %v7539_v0 }
 0x30a   :  { %6187 = vmatpush3.bf16.msra.mxu0 %v6829_v23  ;;  %6205 = vmatpush3.bf16.msra.mxu1 %v6830_v24 }
 0x30b   :  { %6188 = vmatprep.subr.bf16.mxu0 %v7539_v0  ;;  %6206 = vmatprep.subr.bf16.mxu1 %v7539_v0 }
 0x30e   :  { %6189 = vmatpush3.bf16.msra.mxu0 %v6831_v25  ;;  %6207 = vmatpush3.bf16.msra.mxu1 %v6832_v17 }
 0x30f   :  { %6190 = vmatprep.subr.bf16.mxu0 %v7539_v0  ;;  %6208 = vmatprep.subr.bf16.mxu1 %v7539_v0 }
 0x312   :  { %6191 = vmatpush3.bf16.msra.mxu0 %v6833_v26  ;;  %6209 = vmatpush3.bf16.msra.mxu1 %v6834_v27 }
 0x313   :  { %6192 = vmatprep.subr.bf16.mxu0 %v7539_v0  ;;  %6210 = vmatprep.subr.bf16.mxu1 %v7539_v0 }
 0x314   :  { %v1032_v30 = vpop.f32.mrb[12].mxu0  ;;  %v1129_v33 = vpop.f32.mrb[12].mxu1 }
 0x315   :  { %v1038_v31 = vmax.f32 %v941_v10, %v1032_v30  ;;  %v5912_v32 = vpop.f32.mrb[13].mxu0  ;;  %v5930_v36 = vpop.f32.mrb[13].mxu1  ;;  %v6855_v30 = vld [vmem:[#allocation14] sm:$0xff]  }
 0x316   :  { %v1035_v34 = vpop.f32.mrb[14].mxu0  ;;  %6193 = vmatpush3.bf16.msra.mxu0 %v6835_v28  ;;  %6211 = vmatpush3.bf16.msra.mxu1 %v6836_v29  ;;  %v1132_v42 = vpop.f32.mrb[14].mxu1  ;;  %v6857_v32 = vld [vmem:[#allocation14 + $0x10] sm:$0xff]  }
 0x317   :  { %v1135_v38 = vmax.f32 %v1038_v31, %v1129_v33  ;;  %v5913_v39 = vpop.f32.mrb[15].mxu0  ;;  %6194 = vmatprep.subr.bf16.mxu0 %v7539_v0  ;;  %6212 = vmatprep.subr.bf16.mxu1 %v7539_v0  ;;  %v5931_v44 = vpop.f32.mrb[15].mxu1  ;;  %v6856_v31 = vld [vmem:[#allocation14 + $0x8] sm:$0xff]   ;;  %v6858_v33 = vld [vmem:[#allocation14 + $0x18] sm:$0xff]   ;;  %v6859_v34 = vld [vmem:[#allocation14 + $0x20] sm:$0xff]  }
 0x31a   :  { %6195 = vmatpush3.bf16.msra.mxu0 %v6837_v35  ;;  %6213 = vmatpush3.bf16.msra.mxu1 %v6838_v40 }
 0x31b   :  { %6196 = vmatprep.subr.bf16.mxu0 %v7539_v0  ;;  %6214 = vmatprep.subr.bf16.mxu1 %v7539_v0 }
 0x31e   :  { %6197 = vmatpush3.bf16.msra.mxu0 %v2548_v45  ;;  %6215 = vmatpush3.bf16.msra.mxu1 %v2645_v46  ;;  %v6860_v45 = vld [vmem:[#allocation14 + $0x28] sm:$0xff]  }
 0x31f   :  { %6220 = vmatprep.subr.bf16.mxu0 %v7539_v0  ;;  %6238 = vmatprep.subr.bf16.mxu1 %v7539_v0 }
 0x321   :  { %6199 = vmatmul.mubr.msk.bf16.vlgmr.msra.gmra.mrb[44].mxu0 %vm409_vm2, %v8239_v22  ;;  %6217 = vmatmul.mubr.msk.bf16.vlgmr.msra.gmra.mrb[44].mxu1 %vm409_vm2, %v8239_v22 }
 0x322   :  { %6221 = vmatpush3.bf16.msra.mxu0 %v6841_v47  ;;  %6234 = vmatprep.mubr.msk.bf16.mxu0 %vm7540_vm0, %v7539_v0  ;;  %v6861_v47 = vld [vmem:[#allocation14 + $0x30] sm:$0xff]  }
 0x323   :  { %6222 = vmatprep.subr.bf16.mxu0 %v7539_v0  ;;  %6254 = vmatprep.mubr.msk.bf16.mxu1 %vm7540_vm0, %v7539_v0 }
 0x324   :  { %6239 = vmatpush3.bf16.msra.mxu1 %v6855_v30 }
 0x325   :  { %6240 = vmatprep.subr.bf16.mxu1 %v7539_v0 }
 0x326   :  { %6223 = vmatpush3.bf16.msra.mxu0 %v6842_v48  ;;  %v6862_v48 = vld [vmem:[#allocation14 + $0x38] sm:$0xff]  }
 0x327   :  { %6224 = vmatprep.subr.bf16.mxu0 %v7539_v0 }
 0x328   :  { %6241 = vmatpush3.bf16.msra.mxu1 %v6856_v31 }
 0x329   :  { %6242 = vmatprep.subr.bf16.mxu1 %v7539_v0 }
 0x32a   :  { %6225 = vmatpush3.bf16.msra.mxu0 %v6843_v49  ;;  %v6864_v49 = vld [vmem:[#allocation8] sm:$0xff]  }
 0x32b   :  { %6226 = vmatprep.subr.bf16.mxu0 %v7539_v0 }
 0x32c   :  { %6243 = vmatpush3.bf16.msra.mxu1 %v6857_v32 }
 0x32d   :  { %6244 = vmatprep.subr.bf16.mxu1 %v7539_v0 }
 0x32e   :  { %6227 = vmatpush3.bf16.msra.mxu0 %v6844_v50  ;;  %v6866_v50 = vld [vmem:[#allocation8 + $0x8] sm:$0xff]  }
 0x32f   :  { %6228 = vmatprep.subr.bf16.mxu0 %v7539_v0 }
 0x330   :  { %v1226_v52 = vpop.f32.mrb[16].mxu0  ;;  %v1323_v55 = vpop.f32.mrb[16].mxu1  ;;  %6245 = vmatpush3.bf16.msra.mxu1 %v6858_v33 }
 0x331   :  { %v1232_v53 = vmax.f32 %v1135_v38, %v1226_v52  ;;  %v5948_v54 = vpop.f32.mrb[17].mxu0  ;;  %v5966_v58 = vpop.f32.mrb[17].mxu1  ;;  %6246 = vmatprep.subr.bf16.mxu1 %v7539_v0 }
 0x332   :  { %v1229_v56 = vpop.f32.mrb[18].mxu0  ;;  %6229 = vmatpush3.bf16.msra.mxu0 %v6845_v51  ;;  %v1326_v62 = vpop.f32.mrb[18].mxu1 }
 0x333   :  { %v1329_v59 = vmax.f32 %v1232_v53, %v1323_v55  ;;  %v5949_v60 = vpop.f32.mrb[19].mxu0  ;;  %6230 = vmatprep.subr.bf16.mxu0 %v7539_v0  ;;  %v5967_v37 = vpop.f32.mrb[19].mxu1  ;;  %v6868_v55 = vld [vmem:[#allocation8 + $0x10] sm:$0xff]   ;;  %v6870_v62 = vld [vmem:[#allocation8 + $0x18] sm:$0xff]  }
 0x334   :  { %6247 = vmatpush3.bf16.msra.mxu1 %v6859_v34  ;;  %v6872_v37 = vld [vmem:[#allocation8 + $0x20] sm:$0xff]  }
 0x335   :  { %6248 = vmatprep.subr.bf16.mxu1 %v7539_v0 }
 0x336   :  { %6231 = vmatpush3.bf16.msra.mxu0 %v6846_v57 }
 0x337   :  { %6232 = vmatprep.subr.bf16.mxu0 %v7539_v0 }
 0x338   :  { %6249 = vmatpush3.bf16.msra.mxu1 %v6860_v45 }
 0x339   :  { %6250 = vmatprep.subr.bf16.mxu1 %v7539_v0 }
 0x33a   :  { %6233 = vmatpush3.bf16.msra.mxu0 %v2742_v63  ;;  %v6874_v63 = vld [vmem:[#allocation8 + $0x28] sm:$0xff]  }
 0x33b   :  { %6258 = vmatprep.subr.bf16.mxu0 %v7539_v0 }
 0x33c   :  { %6251 = vmatpush3.bf16.msra.mxu1 %v6861_v47  ;;  %v6910_v47 = vld [vmem:[#allocation8 + $0x148] sm:$0xff]  }
 0x33d   :  { %6235 = vmatmul.mubr.msk.bf16.vlgmr.msra.gmra.mrb[48].mxu0 %vm409_vm2, %v8239_v22  ;;  %6252 = vmatprep.subr.bf16.mxu1 %v7539_v0 }
 0x33e   :  { %6259 = vmatpush3.bf16.msra.mxu0 %v6848_v1  ;;  %6272 = vmatprep.mubr.msk.bf16.mxu0 %vm7540_vm0, %v7539_v0  ;;  %v6876_v1 = vld [vmem:[#allocation8 + $0x30] ss:$0 sps:$4 sm:$0x33]  }
 0x33f   :  { %6260 = vmatprep.subr.bf16.mxu0 %v7539_v0 }
 0x340   :  { %6253 = vmatpush3.bf16.msra.mxu1 %v6862_v48 }
 0x341   :  { %6276 = vmatprep.subr.bf16.mxu1 %v7539_v0 }
 0x342   :  { %6261 = vmatpush3.bf16.msra.mxu0 %v6849_v2  ;;  %v3166_v2 = vsel %vm413_vm1, %v6876_v1, 0  ;;  %v6924_v1 = vld [vmem:[#allocation8 + $0x1b0] sm:$0xff]  }
 0x343   :  { %6262 = vmatprep.subr.bf16.mxu0 %v7539_v0 }
 0x346   :  { %6263 = vmatpush3.bf16.msra.mxu0 %v6850_v3  ;;  %v6878_v3 = vld [vmem:[#allocation8 + $0x68] sm:$0xff]  }
 0x347   :  { %6264 = vmatprep.subr.bf16.mxu0 %v7539_v0 }
 0x34a   :  { %6265 = vmatpush3.bf16.msra.mxu0 %v6851_v4  ;;  %v6880_v4 = vld [vmem:[#allocation8 + $0x70] sm:$0xff]  }
 0x34b   :  { %6266 = vmatprep.subr.bf16.mxu0 %v7539_v0 }
 0x34c   :  { %v1420_v6 = vpop.f32.mrb[20].mxu0  ;;  %v1517_v9 = vpop.f32.mrb[20].mxu1 }
 0x34d   :  { %v1426_v7 = vmax.f32 %v1329_v59, %v1420_v6  ;;  %v5984_v8 = vpop.f32.mrb[21].mxu0  ;;  %v6002_v12 = vpop.f32.mrb[21].mxu1 }
 0x34e   :  { %v1423_v10 = vpop.f32.mrb[22].mxu0  ;;  %6267 = vmatpush3.bf16.msra.mxu0 %v6852_v5  ;;  %v1520_v16 = vpop.f32.mrb[22].mxu1 }
 0x34f   :  { %v1523_v13 = vmax.f32 %v1426_v7, %v1517_v9  ;;  %v5985_v14 = vpop.f32.mrb[23].mxu0  ;;  %6268 = vmatprep.subr.bf16.mxu0 %v7539_v0  ;;  %v6003_v18 = vpop.f32.mrb[23].mxu1  ;;  %v6882_v9 = vld [vmem:[#allocation8 + $0x78] sm:$0xff]   ;;  %v6884_v16 = vld [vmem:[#allocation8 + $0x80] sm:$0xff]  }
 0x350   :  { %v6886_v18 = vld [vmem:[#allocation8 + $0x88] sm:$0xff]  }
 0x352   :  { %6269 = vmatpush3.bf16.msra.mxu0 %v6853_v11 }
 0x353   :  { %6270 = vmatprep.subr.bf16.mxu0 %v7539_v0 }
 0x356   :  { %6271 = vmatpush3.bf16.msra.mxu0 %v2965_v19  ;;  %v6888_v19 = vld [vmem:[#allocation8 + $0x90] sm:$0xff]  }
 0x357   :  { %6296 = vmatprep.subr.bf16.mxu0 %v7539_v0 }
 0x359   :  { %6273 = vmatmul.mubr.msk.bf16.vlgmr.msra.gmra.mrb[52].mxu0 %vm409_vm2, %v8239_v22 }
 0x35a   :  { %6310 = vmatprep.mubr.msk.bf16.mxu0 %vm7540_vm0, %v7539_v0  ;;  %6297 = vmatpush3.bf16.msra.mxu0 %v6864_v49 }
 0x35b   :  { %6298 = vmatprep.subr.bf16.mxu0 %v7539_v0 }
 0x35e   :  { %6299 = vmatpush3.bf16.msra.mxu0 %v6866_v50 }
 0x35f   :  { %6300 = vmatprep.subr.bf16.mxu0 %v7539_v0 }
 0x362   :  { %6301 = vmatpush3.bf16.msra.mxu0 %v6868_v55  ;;  %v6914_v55 = vld [vmem:[#allocation8 + $0x158] sm:$0xff]  }
 0x363   :  { %6302 = vmatprep.subr.bf16.mxu0 %v7539_v0 }
 0x366   :  { %6303 = vmatpush3.bf16.msra.mxu0 %v6870_v62  ;;  %v5229_v62 = vld [vmem:[#allocation7] ss:$0 sm:$0xff] }
 0x367   :  { %6304 = vmatprep.subr.bf16.mxu0 %v7539_v0 }
 0x368   :  { %v1614_v20 = vpop.f32.mrb[24].mxu0  ;;  %v1711_v24 = vpop.f32.mrb[24].mxu1 }
 0x369   :  { %v1620_v21 = vmax.f32 %v1523_v13, %v1614_v20  ;;  %v6020_v23 = vpop.f32.mrb[25].mxu0  ;;  %v6038_v17 = vpop.f32.mrb[25].mxu1  ;;  %v6890_v20 = vld [vmem:[#allocation8 + $0x98] ss:$0 sps:$4 sm:$0x33]  }
 0x36a   :  { %v1617_v25 = vpop.f32.mrb[26].mxu0  ;;  %v1714_v28 = vpop.f32.mrb[26].mxu1  ;;  %6305 = vmatpush3.bf16.msra.mxu0 %v6872_v37  ;;  %v6892_v23 = vld [vmem:[#allocation8 + $0xd0] sm:$0xff]  }
 0x36b   :  { %v1717_v26 = vmax.f32 %v1620_v21, %v1711_v24  ;;  %v6021_v27 = vpop.f32.mrb[27].mxu0  ;;  %v6039_v29 = vpop.f32.mrb[27].mxu1  ;;  %6306 = vmatprep.subr.bf16.mxu0 %v7539_v0  ;;  %v3359_v21 = vsel %vm413_vm1, %v6890_v20, 0  ;;  %v6894_v24 = vld [vmem:[#allocation8 + $0xd8] sm:$0xff]   ;;  %v6896_v28 = vld [vmem:[#allocation8 + $0xe0] sm:$0xff]  }
 0x36c   :  { %v6875_v20 = vld [vmem:[#allocation17 + $0x30] sm:$0xff]  }
 0x36e   :  { %6307 = vmatpush3.bf16.msra.mxu0 %v6874_v63 }
 0x36f   :  { %6308 = vmatprep.subr.bf16.mxu0 %v7539_v0 }
 0x372   :  { %6309 = vmatpush3.bf16.msra.mxu0 %v3166_v2 }
 0x373   :  { %6332 = vmatprep.subr.bf16.mxu0 %v7539_v0 }
 0x375   :  { %6311 = vmatmul.mubr.msk.bf16.vlgmr.msra.gmra.mrb[56].mxu0 %vm409_vm2, %v8239_v22 }
 0x376   :  { %6333 = vmatpush3.bf16.msra.mxu0 %v6878_v3  ;;  %6346 = vmatprep.mubr.msk.bf16.mxu0 %vm7540_vm0, %v7539_v0 }
 0x377   :  { %6334 = vmatprep.subr.bf16.mxu0 %v7539_v0 }
 0x37a   :  { %6335 = vmatpush3.bf16.msra.mxu0 %v6880_v4 }
 0x37b   :  { %6336 = vmatprep.subr.bf16.mxu0 %v7539_v0 }
 0x37e   :  { %6337 = vmatpush3.bf16.msra.mxu0 %v6882_v9  ;;  %v6928_v9 = vld [vmem:[#allocation8 + $0x1c0] sm:$0xff]  }
 0x37f   :  { %6338 = vmatprep.subr.bf16.mxu0 %v7539_v0 }
 0x382   :  { %6339 = vmatpush3.bf16.msra.mxu0 %v6884_v16  ;;  %v6873_v16 = vld [vmem:[#allocation17 + $0x28] sm:$0xff]  }
 0x383   :  { %6340 = vmatprep.subr.bf16.mxu0 %v7539_v0 }
 0x384   :  { %v1808_v35 = vpop.f32.mrb[28].mxu0  ;;  %v1905_v39 = vpop.f32.mrb[28].mxu1 }
 0x385   :  { %v1814_v36 = vmax.f32 %v1717_v26, %v1808_v35  ;;  %v6056_v38 = vpop.f32.mrb[29].mxu0  ;;  %v6074_v41 = vpop.f32.mrb[29].mxu1  ;;  %v6898_v35 = vld [vmem:[#allocation8 + $0xe8] sm:$0xff]  }
 0x386   :  { %v1811_v40 = vpop.f32.mrb[30].mxu0  ;;  %v1908_v44 = vpop.f32.mrb[30].mxu1  ;;  %6341 = vmatpush3.bf16.msra.mxu0 %v6886_v18  ;;  %v6902_v38 = vld [vmem:[#allocation8 + $0xf8] sm:$0xff]   ;;  %v5239_v18 = vld [vmem:[#allocation13] ss:$0 sm:$0xff] }
 0x387   :  { %v1911_v42 = vmax.f32 %v1814_v36, %v1905_v39  ;;  %v6057_v43 = vpop.f32.mrb[31].mxu0  ;;  %v6075_v46 = vpop.f32.mrb[31].mxu1  ;;  %6342 = vmatprep.subr.bf16.mxu0 %v7539_v0  ;;  %v6900_v36 = vld [vmem:[#allocation8 + $0xf0] sm:$0xff]   ;;  %v6904_v39 = vld [vmem:[#allocation8 + $0x100] ss:$0 sps:$4 sm:$0x33]  }
 0x388   :  { %v3553_v40 = vsel %vm413_vm1, %v6904_v39, 0  ;;  %v6906_v41 = vld [vmem:[#allocation8 + $0x138] sm:$0xff]  }
 0x389   :  { %v6899_v39 = vld [vmem:[#allocation8 + $0xb4] sm:$0xff]  }
 0x38a   :  { %6343 = vmatpush3.bf16.msra.mxu0 %v6888_v19 }
 0x38b   :  { %6344 = vmatprep.subr.bf16.mxu0 %v7539_v0 }
 0x38e   :  { %6345 = vmatpush3.bf16.msra.mxu0 %v3359_v21 }
 0x38f   :  { %6368 = vmatprep.subr.bf16.mxu0 %v7539_v0 }
 0x391   :  { %6347 = vmatmul.mubr.msk.bf16.vlgmr.msra.gmra.mrb[60].mxu0 %vm409_vm2, %v8239_v22 }
 0x392   :  { %6369 = vmatpush3.bf16.msra.mxu0 %v6892_v23  ;;  %6382 = vmatprep.mubr.msk.bf16.mxu0 %vm7540_vm0, %v7539_v0 }
 0x393   :  { %6370 = vmatprep.subr.bf16.mxu0 %v7539_v0 }
 0x396   :  { %6371 = vmatpush3.bf16.msra.mxu0 %v6894_v24 }
 0x397   :  { %6372 = vmatprep.subr.bf16.mxu0 %v7539_v0 }
 0x39a   :  { %6373 = vmatpush3.bf16.msra.mxu0 %v6896_v28  ;;  %v6881_v28 = vld [vmem:[#allocation8 + $0x3c] sm:$0xff]  }
 0x39b   :  { %6374 = vmatprep.subr.bf16.mxu0 %v7539_v0 }
 0x39e   :  { %6375 = vmatpush3.bf16.msra.mxu0 %v6898_v35  ;;  %v6893_v35 = vld [vmem:[#allocation8 + $0x9c] sm:$0xff]  }
 0x39f   :  { %6376 = vmatprep.subr.bf16.mxu0 %v7539_v0 }
 0x3a0   :  { %v2002_v51 = vpop.f32.mrb[32].mxu0  ;;  %v2099_v54 = vpop.f32.mrb[32].mxu1 }
 0x3a1   :  { %v2008_v52 = vmax.f32 %v1911_v42, %v2002_v51  ;;  %v6092_v53 = vpop.f32.mrb[33].mxu0  ;;  %v6110_v57 = vpop.f32.mrb[33].mxu1  ;;  %v6908_v42 = vld [vmem:[#allocation8 + $0x140] sm:$0xff]  }
 0x3a2   :  { %v2005_v56 = vpop.f32.mrb[34].mxu0  ;;  %v2102_v60 = vpop.f32.mrb[34].mxu1  ;;  %6377 = vmatpush3.bf16.msra.mxu0 %v6900_v36  ;;  %v6918_v57 = vld [vmem:[#allocation8 + $0x168] ss:$0 sps:$4 sm:$0x33]  }
 0x3a3   :  { %v2105_v58 = vmax.f32 %v2008_v52, %v2099_v54  ;;  %v6093_v59 = vpop.f32.mrb[35].mxu0  ;;  %v6111_v61 = vpop.f32.mrb[35].mxu1  ;;  %6378 = vmatprep.subr.bf16.mxu0 %v7539_v0  ;;  %v6912_v54 = vld [vmem:[#allocation8 + $0x150] sm:$0xff]   ;;  %v6916_v56 = vld [vmem:[#allocation8 + $0x160] sm:$0xff]   ;;  %v6922_v60 = vld [vmem:[#allocation8 + $0x1a8] sm:$0xff]  }
 0x3a4   :  { %v6920_v59 = vld [vmem:[#allocation8 + $0x1a0] sm:$0xff]  }
 0x3a5   :  { %v6895_v36 = vld [vmem:[#allocation8 + $0xa4] sm:$0xff]  }
 0x3a6   :  { %6379 = vmatpush3.bf16.msra.mxu0 %v6902_v38  ;;  %v6897_v38 = vld [vmem:[#allocation8 + $0xac] sm:$0xff]  }
 0x3a7   :  { %6380 = vmatprep.subr.bf16.mxu0 %v7539_v0 }
 0x3aa   :  { %6381 = vmatpush3.bf16.msra.mxu0 %v3553_v40  ;;  %v6901_v40 = vld [vmem:[#allocation8 + $0xbc] sm:$0xff]  }
 0x3ab   :  { %6404 = vmatprep.subr.bf16.mxu0 %v7539_v0 }
 0x3ad   :  { %6383 = vmatmul.mubr.msk.bf16.vlgmr.msra.gmra.mrb[64].mxu0 %vm409_vm2, %v8239_v22 }
 0x3ae   :  { %6405 = vmatpush3.bf16.msra.mxu0 %v6906_v41  ;;  %6418 = vmatprep.mubr.msk.bf16.mxu0 %vm7540_vm0, %v7539_v0  ;;  %v6903_v41 = vld [vmem:[#allocation8 + $0xc4] sm:$0xff]  }
 0x3af   :  { %6406 = vmatprep.subr.bf16.mxu0 %v7539_v0 }
 0x3b2   :  { %6407 = vmatpush3.bf16.msra.mxu0 %v6908_v42  ;;  %v6905_v42 = vld [vmem:[#allocation8 + $0xcc] ss:$0 sps:$4 sm:$0x33]  }
 0x3b3   :  { %6408 = vmatprep.subr.bf16.mxu0 %v7539_v0 }
 0x3b6   :  { %6409 = vmatpush3.bf16.msra.mxu0 %v6910_v47  ;;  %v6913_v47 = vld [vmem:[#allocation8 + $0x11c] sm:$0xff]  }
 0x3b7   :  { %6410 = vmatprep.subr.bf16.mxu0 %v7539_v0 }
 0x3ba   :  { %6411 = vmatpush3.bf16.msra.mxu0 %v6912_v54 }
 0x3bb   :  { %6412 = vmatprep.subr.bf16.mxu0 %v7539_v0 }
 0x3bc   :  { %v2196_v5 = vpop.f32.mrb[36].mxu0  ;;  %v2293_v8 = vpop.f32.mrb[36].mxu1 }
 0x3bd   :  { %v2202_v6 = vmax.f32 %v2105_v58, %v2196_v5  ;;  %v6128_v7 = vpop.f32.mrb[37].mxu0  ;;  %v6146_v11 = vpop.f32.mrb[37].mxu1  ;;  %v3747_v58 = vsel %vm413_vm1, %v6918_v57, 0  ;;  %v6863_v5 = vld [vmem:[#allocation17] sm:$0xff]  }
 0x3be   :  { %v2199_v10 = vpop.f32.mrb[38].mxu0  ;;  %v2296_v14 = vpop.f32.mrb[38].mxu1  ;;  %6413 = vmatpush3.bf16.msra.mxu0 %v6914_v55  ;;  %v6926_v7 = vld [vmem:[#allocation8 + $0x1b8] sm:$0xff]   ;;  %v6930_v11 = vld [vmem:[#allocation8 + $0x1c8] sm:$0xff]  }
 0x3bf   :  { %v2299_v12 = vmax.f32 %v2202_v6, %v2293_v8  ;;  %v6129_v13 = vpop.f32.mrb[39].mxu0  ;;  %v6147_v15 = vpop.f32.mrb[39].mxu1  ;;  %6414 = vmatprep.subr.bf16.mxu0 %v7539_v0  ;;  %v6865_v8 = vld [vmem:[#allocation17 + $0x8] sm:$0xff]   ;;  %v6867_v10 = vld [vmem:[#allocation17 + $0x10] sm:$0xff]  }
 0x3c0   :  { %v6932_v13 = vld [vmem:[#allocation8 + $0x1d0] ss:$0 sps:$4 sm:$0x33]  }
 0x3c1   :  { %v3941_v14 = vsel %vm413_vm1, %v6932_v13, 0  ;;  %v6871_v15 = vld [vmem:[#allocation17 + $0x20] sm:$0xff]   ;;  %v6935_v13 = vld [vmem:[#allocation16 + $0x8] sm:$0xff]  }
 0x3c2   :  { %6415 = vmatpush3.bf16.msra.mxu0 %v6916_v56  ;;  %v6923_v56 = vld [vmem:[#allocation8 + $0x174] sm:$0xff]  }
 0x3c3   :  { %6416 = vmatprep.subr.bf16.mxu0 %v7539_v0 }
 0x3c6   :  { %6417 = vmatpush3.bf16.msra.mxu0 %v3747_v58  ;;  %v6925_v58 = vld [vmem:[#allocation8 + $0x17c] sm:$0xff]  }
 0x3c7   :  { %6440 = vmatprep.subr.bf16.mxu0 %v7539_v0 }
 0x3c9   :  { %6419 = vmatmul.mubr.msk.bf16.vlgmr.msra.gmra.mrb[68].mxu0 %vm409_vm2, %v8239_v22 }
 0x3ca   :  { %6441 = vmatpush3.bf16.msra.mxu0 %v6920_v59  ;;  %6454 = vmatprep.mubr.msk.bf16.mxu0 %vm7540_vm0, %v7539_v0  ;;  %v6927_v59 = vld [vmem:[#allocation8 + $0x184] sm:$0xff]  }
 0x3cb   :  { %6442 = vmatprep.subr.bf16.mxu0 %v7539_v0 }
 0x3ce   :  { %6443 = vmatpush3.bf16.msra.mxu0 %v6922_v60  ;;  %v6929_v60 = vld [vmem:[#allocation8 + $0x18c] sm:$0xff]  }
 0x3cf   :  { %6444 = vmatprep.subr.bf16.mxu0 %v7539_v0 }
 0x3d2   :  { %6445 = vmatpush3.bf16.msra.mxu0 %v6924_v1 }
 0x3d3   :  { %6446 = vmatprep.subr.bf16.mxu0 %v7539_v0 }
 0x3d6   :  { %6447 = vmatpush3.bf16.msra.mxu0 %v6926_v7 }
 0x3d7   :  { %6448 = vmatprep.subr.bf16.mxu0 %v7539_v0 }
 0x3d8   :  { %v2390_v25 = vpop.f32.mrb[40].mxu0  ;;  %v2487_v27 = vpop.f32.mrb[40].mxu1 }
 0x3d9   :  { %v2396_v17 = vmax.f32 %v2299_v12, %v2390_v25  ;;  %v6164_v26 = vpop.f32.mrb[41].mxu0  ;;  %v6182_v30 = vpop.f32.mrb[41].mxu1  ;;  %v6869_v12 = vld [vmem:[#allocation17 + $0x18] sm:$0xff]  }
 0x3da   :  { %v2393_v29 = vpop.f32.mrb[42].mxu0  ;;  %v2490_v33 = vpop.f32.mrb[42].mxu1  ;;  %6449 = vmatpush3.bf16.msra.mxu0 %v6928_v9  ;;  %v6885_v30 = vld [vmem:[#allocation8 + $0x4c] sm:$0xff]  }
 0x3db   :  { %v2493_v31 = vmax.f32 %v2396_v17, %v2487_v27  ;;  %v6165_v32 = vpop.f32.mrb[43].mxu0  ;;  %v6183_v34 = vpop.f32.mrb[43].mxu1  ;;  %6450 = vmatprep.subr.bf16.mxu0 %v7539_v0  ;;  %v6877_v17 = vld [vmem:[#allocation17 + $0x38] sm:$0xff]   ;;  %v6879_v27 = vld [vmem:[#allocation8 + $0x34] sm:$0xff]  }
 0x3dc   :  { %v6883_v29 = vld [vmem:[#allocation8 + $0x44] sm:$0xff]   ;;  %v6889_v32 = vld [vmem:[#allocation8 + $0x5c] sm:$0xff]  }
 0x3dd   :  { %v6891_v33 = vld [vmem:[#allocation8 + $0x64] ss:$0 sps:$4 sm:$0x33]  }
 0x3de   :  { %6451 = vmatpush3.bf16.msra.mxu0 %v6930_v11  ;;  %v3262_v34 = vsel %vm413_vm1, %v6891_v33, 0 }
 0x3df   :  { %6452 = vmatprep.subr.bf16.mxu0 %v7539_v0 }
 0x3e2   :  { %6453 = vmatpush3.bf16.msra.mxu0 %v3941_v14  ;;  %v6937_v14 = vld [vmem:[#allocation16 + $0x18] sm:$0xff]  }
 0x3e3   :  { %6478 = vmatprep.subr.bf16.mxu0 %v7539_v0 }
 0x3e5   :  { %6455 = vmatmul.mubr.msk.bf16.vlgmr.msra.gmra.mrb[72].mxu0 %vm409_vm2, %v8239_v22 }
 0x3e6   :  { %6494 = vmatprep.mubr.msk.bf16.mxu0 %vm7540_vm0, %v7539_v0 }
 0x3f4   :  { %v2584_v43 = vpop.f32.mrb[44].mxu0  ;;  %v2681_v46 = vpop.f32.mrb[44].mxu1 }
 0x3f5   :  { %v2590_v44 = vmax.f32 %v2493_v31, %v2584_v43  ;;  %v6200_v45 = vpop.f32.mrb[45].mxu0  ;;  %v6218_v49 = vpop.f32.mrb[45].mxu1  ;;  %v6887_v31 = vld [vmem:[#allocation8 + $0x54] sm:$0xff]   ;;  %v3456_v43 = vsel %vm413_vm1, %v6905_v42, 0 }
 0x3f6   :  { %v2587_v48 = vpop.f32.mrb[46].mxu0  ;;  %v2684_v52 = vpop.f32.mrb[46].mxu1  ;;  %v6909_v45 = vld [vmem:[#allocation8 + $0x10c] sm:$0xff]  }
 0x3f7   :  { %v2687_v50 = vmax.f32 %v2590_v44, %v2681_v46  ;;  %v6201_v51 = vpop.f32.mrb[47].mxu0  ;;  %v6219_v53 = vpop.f32.mrb[47].mxu1  ;;  %v6907_v44 = vld [vmem:[#allocation8 + $0x104] sm:$0xff]   ;;  %v6911_v46 = vld [vmem:[#allocation8 + $0x114] sm:$0xff]   ;;  %v6917_v49 = vld [vmem:[#allocation8 + $0x12c] sm:$0xff]  }
 0x3f8   :  { %v6915_v48 = vld [vmem:[#allocation8 + $0x124] sm:$0xff]   ;;  %v6921_v52 = vld [vmem:[#allocation8 + $0x16c] sm:$0xff]  }
 0x410   :  { %v2778_v61 = vpop.f32.mrb[48].mxu0 }
 0x411   :  { %v2784_v37 = vmax.f32 %v2687_v50, %v2778_v61  ;;  %v6236_v63 = vpop.f32.mrb[49].mxu0  ;;  %v6919_v50 = vld [vmem:[#allocation8 + $0x134] ss:$0 sps:$4 sm:$0x33]  }
 0x412   :  { %v2781_v2 = vpop.f32.mrb[50].mxu0  ;;  %v3650_v51 = vsel %vm413_vm1, %v6919_v50, 0  ;;  %v6931_v61 = vld [vmem:[#allocation8 + $0x194] sm:$0xff]  }
 0x413   :  { %v2792_v3 = vadd.f32 %v5229_v62, %v2784_v37  ;;  %v6237_v4 = vpop.f32.mrb[51].mxu0  ;;  %v6933_v62 = vld [vmem:[#allocation8 + $0x19c] ss:$0 sps:$4 sm:$0x33]  }
 0x414   :  { %v3844_v37 = vsel %vm413_vm1, %v6933_v62, 0  ;;  %v6952_v62 = vld [vmem:[#allocation23 + $0x10] sm:$0xff]  }
 0x415   :  { %v2793_v6 = vpack.c.bf16 %v2792_v3, %v2792_v3 }
 0x417   :  { %6255 = vmatmul.mubr.bf16.vlgmr.msra.gmra.mrb[48].mxu1 %v2793_v6 }
 0x418   :  { %6277 = vmatpush3.bf16.msra.mxu1 %v6863_v5  ;;  %6292 = vmatprep.mubr.msk.bf16.mxu1 %vm7540_vm0, %v7539_v0 }
 0x419   :  { %6278 = vmatprep.subr.bf16.mxu1 %v7539_v0 }
 0x41c   :  { %6279 = vmatpush3.bf16.msra.mxu1 %v6865_v8 }
 0x41d   :  { %6280 = vmatprep.subr.bf16.mxu1 %v7539_v0 }
 0x420   :  { %6281 = vmatpush3.bf16.msra.mxu1 %v6867_v10 }
 0x421   :  { %6282 = vmatprep.subr.bf16.mxu1 %v7539_v0 }
 0x424   :  { %6283 = vmatpush3.bf16.msra.mxu1 %v6869_v12  ;;  %v6934_v12 = vld [vmem:[#allocation16] sm:$0xff]  }
 0x425   :  { %6284 = vmatprep.subr.bf16.mxu1 %v7539_v0 }
 0x428   :  { %6285 = vmatpush3.bf16.msra.mxu1 %v6871_v15  ;;  %v6938_v15 = vld [vmem:[#allocation16 + $0x20] sm:$0xff]  }
 0x429   :  { %6286 = vmatprep.subr.bf16.mxu1 %v7539_v0 }
 0x42c   :  { %6287 = vmatpush3.bf16.msra.mxu1 %v6873_v16  ;;  %v3001_v19 = vpop.f32.mrb[52].mxu0  ;;  %v6939_v16 = vld [vmem:[#allocation16 + $0x28] sm:$0xff]  }
 0x42d   :  { %6288 = vmatprep.subr.bf16.mxu1 %v7539_v0  ;;  %v6274_v21 = vpop.f32.mrb[53].mxu0  ;;  %v3002_v24 = vadd.f32 %v5239_v18, %v3001_v19 }
 0x42e   :  { %v3004_v23 = vpop.f32.mrb[54].mxu0 }
 0x42f   :  { %v6275_v25 = vpop.f32.mrb[55].mxu0  ;;  %v3007_v26 = vpack.c.bf16 %v3002_v24, %v3002_v24  ;;  %v6941_v24 = vld [vmem:[#allocation16 + $0x38] sm:$0xff]  }
 0x430   :  { %6289 = vmatpush3.bf16.msra.mxu1 %v6875_v20  ;;  %v6940_v20 = vld [vmem:[#allocation16 + $0x30] sm:$0xff]   ;;  %v6942_v25 = vld [vmem:[#allocation20] sm:$0xff]  }
 0x431   :  { %6290 = vmatprep.subr.bf16.mxu1 %v7539_v0  ;;  %6479 = vmatpush3.bf16.msra.mxu0 %v6942_v25 }
 0x432   :  { %6480 = vmatprep.subr.bf16.mxu0 %v7539_v0 }
 0x434   :  { %6291 = vmatpush3.bf16.msra.mxu1 %v6877_v17  ;;  %v6943_v17 = vld [vmem:[#allocation20 + $0x8] sm:$0xff]  }
 0x435   :  { %6314 = vmatprep.subr.bf16.mxu1 %v7539_v0  ;;  %6481 = vmatpush3.bf16.msra.mxu0 %v6943_v17  ;;  %v6964_v17 = vld [vmem:[#allocation26 + $0x30] sm:$0xff]  }
 0x436   :  { %6482 = vmatprep.subr.bf16.mxu0 %v7539_v0 }
 0x437   :  { %6293 = vmatmul.mubr.bf16.vlgmr.msra.gmra.mrb[48].mxu1 %v3007_v26  ;;  %v6944_v26 = vld [vmem:[#allocation20 + $0x10] sm:$0xff]  }
 0x438   :  { %6315 = vmatpush3.bf16.msra.mxu1 %v6879_v27  ;;  %6328 = vmatprep.mubr.msk.bf16.mxu1 %vm7540_vm0, %v7539_v0  ;;  %v6945_v27 = vld [vmem:[#allocation20 + $0x18] sm:$0xff]  }
 0x439   :  { %6316 = vmatprep.subr.bf16.mxu1 %v7539_v0  ;;  %6483 = vmatpush3.bf16.msra.mxu0 %v6944_v26  ;;  %v6965_v26 = vld [vmem:[#allocation26 + $0x38] sm:$0xff]  }
 0x43a   :  { %6484 = vmatprep.subr.bf16.mxu0 %v7539_v0 }
 0x43c   :  { %6317 = vmatpush3.bf16.msra.mxu1 %v6881_v28  ;;  %v6946_v28 = vld [vmem:[#allocation20 + $0x20] sm:$0xff]  }
 0x43d   :  { %6318 = vmatprep.subr.bf16.mxu1 %v7539_v0  ;;  %6485 = vmatpush3.bf16.msra.mxu0 %v6945_v27  ;;  %v6966_v27 = vld [vmem:[%s8599_s17] sm:$0xff]  }
 0x43e   :  { %6486 = vmatprep.subr.bf16.mxu0 %v7539_v0 }
 0x440   :  { %6319 = vmatpush3.bf16.msra.mxu1 %v6883_v29  ;;  %v6947_v29 = vld [vmem:[#allocation20 + $0x28] sm:$0xff]  }
 0x441   :  { %6320 = vmatprep.subr.bf16.mxu1 %v7539_v0  ;;  %6487 = vmatpush3.bf16.msra.mxu0 %v6946_v28  ;;  %v6967_v28 = vld [vmem:[%s8599_s17 + $0x8] sm:$0xff]  }
 0x442   :  { %6488 = vmatprep.subr.bf16.mxu0 %v7539_v0 }
 0x444   :  { %6321 = vmatpush3.bf16.msra.mxu1 %v6885_v30  ;;  %v6948_v30 = vld [vmem:[#allocation20 + $0x30] sm:$0xff]  }
 0x445   :  { %6322 = vmatprep.subr.bf16.mxu1 %v7539_v0  ;;  %6489 = vmatpush3.bf16.msra.mxu0 %v6947_v29  ;;  %v6968_v29 = vld [vmem:[%s8599_s17 + $0x10] sm:$0xff]  }
 0x446   :  { %6490 = vmatprep.subr.bf16.mxu0 %v7539_v0 }
 0x448   :  { %6323 = vmatpush3.bf16.msra.mxu1 %v6887_v31  ;;  %v8409_v53 = vpop.f32.mrb[56].mxu0 }
 0x449   :  { %6324 = vmatprep.subr.bf16.mxu1 %v7539_v0  ;;  %v6312_v54 = vpop.f32.mrb[57].mxu0  ;;  %6491 = vmatpush3.bf16.msra.mxu0 %v6948_v30  ;;  %v6969_v30 = vld [vmem:[%s8599_s17 + $0x18] sm:$0xff]  }
 0x44a   :  { %v3205_v55 = vpop.f32.mrb[58].mxu0  ;;  %6492 = vmatprep.subr.bf16.mxu0 %v7539_v0 }
 0x44b   :  { %v6313_v57 = vpop.f32.mrb[59].mxu0 }
 0x44c   :  { %6325 = vmatpush3.bf16.msra.mxu1 %v6889_v32 }
 0x44d   :  { %6326 = vmatprep.subr.bf16.mxu1 %v7539_v0 }
 0x450   :  { %6327 = vmatpush3.bf16.msra.mxu1 %v3262_v34 }
 0x451   :  { %6350 = vmatprep.subr.bf16.mxu1 %v7539_v0 }
 0x453   :  { %6329 = vmatmul.mubr.msk.bf16.vlgmr.msra.gmra.mrb[52].mxu1 %vm409_vm2, %v8239_v22 }
 0x454   :  { %6351 = vmatpush3.bf16.msra.mxu1 %v6893_v35  ;;  %6364 = vmatprep.mubr.msk.bf16.mxu1 %vm7540_vm0, %v7539_v0 }
 0x455   :  { %6352 = vmatprep.subr.bf16.mxu1 %v7539_v0 }
 0x458   :  { %6353 = vmatpush3.bf16.msra.mxu1 %v6895_v36 }
 0x459   :  { %6354 = vmatprep.subr.bf16.mxu1 %v7539_v0 }
 0x45c   :  { %6355 = vmatpush3.bf16.msra.mxu1 %v6897_v38 }
 0x45d   :  { %6356 = vmatprep.subr.bf16.mxu1 %v7539_v0 }
 0x460   :  { %6357 = vmatpush3.bf16.msra.mxu1 %v6899_v39 }
 0x461   :  { %6358 = vmatprep.subr.bf16.mxu1 %v7539_v0 }
 0x464   :  { %6359 = vmatpush3.bf16.msra.mxu1 %v6901_v40  ;;  %v8423_v63 = vpop.f32.mrb[60].mxu0 }
 0x465   :  { %6360 = vmatprep.subr.bf16.mxu1 %v7539_v0  ;;  %v6348_v1 = vpop.f32.mrb[61].mxu0 }
 0x466   :  { %v3398_v2 = vpop.f32.mrb[62].mxu0  ;;  %v6955_v1 = vld [vmem:[#allocation23 + $0x28] sm:$0xff]  }
 0x467   :  { %v6349_v3 = vpop.f32.mrb[63].mxu0  ;;  %v5230_v2 = vld [vmem:[#allocation19] ss:$0 sm:$0xff] }
 0x468   :  { %6361 = vmatpush3.bf16.msra.mxu1 %v6903_v41 }
 0x469   :  { %6362 = vmatprep.subr.bf16.mxu1 %v7539_v0 }
 0x46c   :  { %6363 = vmatpush3.bf16.msra.mxu1 %v3456_v43 }
 0x46d   :  { %6386 = vmatprep.subr.bf16.mxu1 %v7539_v0 }
 0x46f   :  { %6365 = vmatmul.mubr.msk.bf16.vlgmr.msra.gmra.mrb[56].mxu1 %vm409_vm2, %v8239_v22 }
 0x470   :  { %6387 = vmatpush3.bf16.msra.mxu1 %v6907_v44  ;;  %6400 = vmatprep.mubr.msk.bf16.mxu1 %vm7540_vm0, %v7539_v0 }
 0x471   :  { %6388 = vmatprep.subr.bf16.mxu1 %v7539_v0 }
 0x474   :  { %6389 = vmatpush3.bf16.msra.mxu1 %v6909_v45 }
 0x475   :  { %6390 = vmatprep.subr.bf16.mxu1 %v7539_v0 }
 0x478   :  { %6391 = vmatpush3.bf16.msra.mxu1 %v6911_v46 }
 0x479   :  { %6392 = vmatprep.subr.bf16.mxu1 %v7539_v0 }
 0x47c   :  { %6393 = vmatpush3.bf16.msra.mxu1 %v6913_v47 }
 0x47d   :  { %6394 = vmatprep.subr.bf16.mxu1 %v7539_v0 }
 0x480   :  { %6395 = vmatpush3.bf16.msra.mxu1 %v6915_v48  ;;  %v8429_v4 = vpop.f32.mrb[64].mxu0 }
 0x481   :  { %6396 = vmatprep.subr.bf16.mxu1 %v7539_v0  ;;  %v6384_v5 = vpop.f32.mrb[65].mxu0 }
 0x482   :  { %v3592_v6 = vpop.f32.mrb[66].mxu0 }
 0x483   :  { %v6385_v7 = vpop.f32.mrb[67].mxu0 }
 0x484   :  { %6397 = vmatpush3.bf16.msra.mxu1 %v6917_v49 }
 0x485   :  { %6398 = vmatprep.subr.bf16.mxu1 %v7539_v0 }
 0x488   :  { %6399 = vmatpush3.bf16.msra.mxu1 %v3650_v51 }
 0x489   :  { %6422 = vmatprep.subr.bf16.mxu1 %v7539_v0 }
 0x48b   :  { %6401 = vmatmul.mubr.msk.bf16.vlgmr.msra.gmra.mrb[60].mxu1 %vm409_vm2, %v8239_v22 }
 0x48c   :  { %6423 = vmatpush3.bf16.msra.mxu1 %v6921_v52  ;;  %6436 = vmatprep.mubr.msk.bf16.mxu1 %vm7540_vm0, %v7539_v0 }
 0x48d   :  { %6424 = vmatprep.subr.bf16.mxu1 %v7539_v0 }
 0x490   :  { %6425 = vmatpush3.bf16.msra.mxu1 %v6923_v56 }
 0x491   :  { %6426 = vmatprep.subr.bf16.mxu1 %v7539_v0 }
 0x494   :  { %6427 = vmatpush3.bf16.msra.mxu1 %v6925_v58 }
 0x495   :  { %6428 = vmatprep.subr.bf16.mxu1 %v7539_v0 }
 0x498   :  { %6429 = vmatpush3.bf16.msra.mxu1 %v6927_v59  ;;  %v6949_v59 = vld [vmem:[#allocation20 + $0x38] sm:$0xff]  }
 0x499   :  { %6430 = vmatprep.subr.bf16.mxu1 %v7539_v0  ;;  %6493 = vmatpush3.bf16.msra.mxu0 %v6949_v59  ;;  %v6980_v59 = vld [vmem:[#allocation29 + $0x30] sm:$0xff]  }
 0x49a   :  { %6518 = vmatprep.subr.bf16.mxu0 %v7539_v0 }
 0x49c   :  { %6431 = vmatpush3.bf16.msra.mxu1 %v6929_v60  ;;  %v8431_v8 = vpop.f32.mrb[68].mxu0  ;;  %v6950_v60 = vld [vmem:[#allocation23] sm:$0xff]  }
 0x49d   :  { %6432 = vmatprep.subr.bf16.mxu1 %v7539_v0  ;;  %v6420_v9 = vpop.f32.mrb[69].mxu0 }
 0x49e   :  { %v3786_v10 = vpop.f32.mrb[70].mxu0  ;;  %v6956_v9 = vld [vmem:[#allocation23 + $0x30] sm:$0xff]  }
 0x49f   :  { %v6421_v11 = vpop.f32.mrb[71].mxu0  ;;  %v6957_v10 = vld [vmem:[#allocation23 + $0x38] sm:$0xff]  }
 0x4a0   :  { %6433 = vmatpush3.bf16.msra.mxu1 %v6931_v61  ;;  %v6951_v61 = vld [vmem:[#allocation23 + $0x8] sm:$0xff]  }
 0x4a1   :  { %6434 = vmatprep.subr.bf16.mxu1 %v7539_v0  ;;  %v6958_v11 = vld [vmem:[#allocation26] sm:$0xff]  }
 0x4a4   :  { %6435 = vmatpush3.bf16.msra.mxu1 %v3844_v37  ;;  %v6953_v37 = vld [vmem:[#allocation23 + $0x18] sm:$0xff]  }
 0x4a5   :  { %6458 = vmatprep.subr.bf16.mxu1 %v7539_v0 }
 0x4a7   :  { %6437 = vmatmul.mubr.msk.bf16.vlgmr.msra.gmra.mrb[64].mxu1 %vm409_vm2, %v8239_v22  ;;  %v6936_v22 = vld [vmem:[#allocation16 + $0x10] sm:$0xff]  }
 0x4a8   :  { %6474 = vmatprep.mubr.msk.bf16.mxu1 %vm7540_vm0, %v7539_v0  ;;  %6459 = vmatpush3.bf16.msra.mxu1 %v6934_v12  ;;  %v6959_v12 = vld [vmem:[#allocation26 + $0x8] sm:$0xff]  }
 0x4a9   :  { %6460 = vmatprep.subr.bf16.mxu1 %v7539_v0 }
 0x4ac   :  { %6461 = vmatpush3.bf16.msra.mxu1 %v6935_v13  ;;  %v6960_v13 = vld [vmem:[#allocation26 + $0x10] sm:$0xff]  }
 0x4ad   :  { %6462 = vmatprep.subr.bf16.mxu1 %v7539_v0 }
 0x4b0   :  { %6463 = vmatpush3.bf16.msra.mxu1 %v6936_v22  ;;  %v6961_v22 = vld [vmem:[#allocation26 + $0x18] sm:$0xff]  }
 0x4b1   :  { %6464 = vmatprep.subr.bf16.mxu1 %v7539_v0 }
 0x4b4   :  { %6465 = vmatpush3.bf16.msra.mxu1 %v6937_v14  ;;  %v6962_v14 = vld [vmem:[#allocation26 + $0x20] sm:$0xff]  }
 0x4b5   :  { %6466 = vmatprep.subr.bf16.mxu1 %v7539_v0 }
 0x4b8   :  { %6467 = vmatpush3.bf16.msra.mxu1 %v6938_v15  ;;  %v3977_v18 = vpop.f32.mrb[72].mxu0  ;;  %v6963_v15 = vld [vmem:[#allocation26 + $0x28] sm:$0xff]  }
 0x4b9   :  { %6468 = vmatprep.subr.bf16.mxu1 %v7539_v0  ;;  %v6456_v19 = vpop.f32.mrb[73].mxu0 }
 0x4ba   :  { %v3980_v21 = vpop.f32.mrb[74].mxu0 }
 0x4bb   :  { %v6457_v23 = vpop.f32.mrb[75].mxu0 }
 0x4bc   :  { %6469 = vmatpush3.bf16.msra.mxu1 %v6939_v16  ;;  %v5337_v16 = vld [vmem:[#allocation22] ss:$0 sm:$0xff] }
 0x4bd   :  { %6470 = vmatprep.subr.bf16.mxu1 %v7539_v0 }
 0x4c0   :  { %6471 = vmatpush3.bf16.msra.mxu1 %v6940_v20 }
 0x4c1   :  { %6472 = vmatprep.subr.bf16.mxu1 %v7539_v0 }
 0x4c4   :  { %6473 = vmatpush3.bf16.msra.mxu1 %v6941_v24 }
 0x4c5   :  { %6498 = vmatprep.subr.bf16.mxu1 %v7539_v0 }
 0x526   :  { %v3298_v31 = vpop.f32.mrb[52].mxu1 }
 0x527   :  { %v3304_v32 = vmax.f32 %v8409_v53, %v3298_v31  ;;  %v6330_v33 = vpop.f32.mrb[53].mxu1  ;;  %v5328_v53 = vld [vmem:[#allocation10] ss:$0 sm:$0xff]  ;;  %v6970_v31 = vld [vmem:[%s8599_s17 + $0x20] sm:$0xff]  }
 0x528   :  { %v3301_v34 = vpop.f32.mrb[54].mxu1  ;;  %v5346_v33 = vld [vmem:[#allocation25] ss:$0 sm:$0xff] }
 0x529   :  { %v3401_v35 = vmax.f32 %v3304_v32, %v8423_v63  ;;  %v6331_v36 = vpop.f32.mrb[55].mxu1  ;;  %v6954_v63 = vld [vmem:[#allocation23 + $0x20] sm:$0xff]  }
 0x52a   :  { %v6971_v32 = vld [vmem:[%s8599_s17 + $0x28] sm:$0xff]  }
 0x542   :  { %v3492_v38 = vpop.f32.mrb[56].mxu1 }
 0x543   :  { %v3498_v39 = vmax.f32 %v3401_v35, %v3492_v38  ;;  %v6366_v40 = vpop.f32.mrb[57].mxu1 }
 0x544   :  { %v3495_v41 = vpop.f32.mrb[58].mxu1 }
 0x545   :  { %v3595_v42 = vmax.f32 %v3498_v39, %v8429_v4  ;;  %v6367_v43 = vpop.f32.mrb[59].mxu1 }
 0x546   :  { %v6972_v43 = vld [vmem:[%s8599_s17 + $0x30] sm:$0xff]  }
 0x55e   :  { %v3686_v44 = vpop.f32.mrb[60].mxu1 }
 0x55f   :  { %v3692_v45 = vmax.f32 %v3595_v42, %v3686_v44  ;;  %v6402_v46 = vpop.f32.mrb[61].mxu1  ;;  %v6973_v44 = vld [vmem:[%s8599_s17 + $0x38] sm:$0xff]  }
 0x560   :  { %v3689_v47 = vpop.f32.mrb[62].mxu1  ;;  %v6975_v46 = vld [vmem:[#allocation29 + $0x8] sm:$0xff]  }
 0x561   :  { %v3789_v48 = vmax.f32 %v3692_v45, %v8431_v8  ;;  %v6403_v49 = vpop.f32.mrb[63].mxu1  ;;  %v6974_v45 = vld [vmem:[#allocation29] sm:$0xff]   ;;  %v6976_v47 = vld [vmem:[#allocation29 + $0x10] sm:$0xff]  }
 0x562   :  { %v6978_v49 = vld [vmem:[#allocation29 + $0x20] sm:$0xff]  }
 0x57a   :  { %v3880_v50 = vpop.f32.mrb[64].mxu1 }
 0x57b   :  { %v3886_v51 = vmax.f32 %v3789_v48, %v3880_v50  ;;  %v6438_v52 = vpop.f32.mrb[65].mxu1  ;;  %v6977_v48 = vld [vmem:[#allocation29 + $0x18] sm:$0xff]   ;;  %v6979_v50 = vld [vmem:[#allocation29 + $0x28] sm:$0xff]  }
 0x57c   :  { %v3883_v54 = vpop.f32.mrb[66].mxu1 }
 0x57d   :  { %v3983_v55 = vmax.f32 %v3886_v51, %v3977_v18  ;;  %v6439_v56 = vpop.f32.mrb[67].mxu1  ;;  %v5355_v51 = vld [vmem:[#allocation28] ss:$0 sm:$0xff] }
 0x57f   :  { %v3991_v57 = vadd.f32 %v5328_v53, %v3983_v55 }
 0x581   :  { %v3992_v58 = vpack.c.bf16 %v3991_v57, %v3991_v57 }
 0x583   :  { %6475 = vmatmul.mubr.bf16.vlgmr.msra.gmra.mrb[48].mxu1 %v3992_v58 }
 0x584   :  { %6514 = vmatprep.mubr.msk.bf16.mxu1 %vm7540_vm0, %v7539_v0  ;;  %6499 = vmatpush3.bf16.msra.mxu1 %v6950_v60  ;;  %v6981_v60 = vld [vmem:[#allocation29 + $0x38] sm:$0xff]  }
 0x585   :  { %6500 = vmatprep.subr.bf16.mxu1 %v7539_v0 }
 0x588   :  { %6501 = vmatpush3.bf16.msra.mxu1 %v6951_v61  ;;  %v6982_v61 = vld [vmem:[#allocation31] sm:$0xff]  }
 0x589   :  { %6502 = vmatprep.subr.bf16.mxu1 %v7539_v0 }
 0x58c   :  { %6503 = vmatpush3.bf16.msra.mxu1 %v6952_v62  ;;  %v6983_v62 = vld [vmem:[#allocation31 + $0x8] sm:$0xff]  }
 0x58d   :  { %6504 = vmatprep.subr.bf16.mxu1 %v7539_v0 }
 0x590   :  { %6505 = vmatpush3.bf16.msra.mxu1 %v6953_v37  ;;  %v6984_v37 = vld [vmem:[#allocation31 + $0x10] sm:$0xff]  }
 0x591   :  { %6506 = vmatprep.subr.bf16.mxu1 %v7539_v0 }
 0x594   :  { %6507 = vmatpush3.bf16.msra.mxu1 %v6954_v63  ;;  %v6985_v63 = vld [vmem:[#allocation31 + $0x18] sm:$0xff]  }
 0x595   :  { %6508 = vmatprep.subr.bf16.mxu1 %v7539_v0 }
 0x598   :  { %6509 = vmatpush3.bf16.msra.mxu1 %v6955_v1  ;;  %v6986_v1 = vld [vmem:[#allocation31 + $0x20] sm:$0xff]  }
 0x599   :  { %6510 = vmatprep.subr.bf16.mxu1 %v7539_v0 }
 0x59c   :  { %6511 = vmatpush3.bf16.msra.mxu1 %v6956_v9 }
 0x59d   :  { %6512 = vmatprep.subr.bf16.mxu1 %v7539_v0 }
 0x5a0   :  { %6513 = vmatpush3.bf16.msra.mxu1 %v6957_v10 }
 0x5a1   :  { %6538 = vmatprep.subr.bf16.mxu1 %v7539_v0 }
 0x656   :  { %v4091_v3 = vpop.f32.mrb[48].mxu1 }
 0x657   :  { %v8461_v4 = vadd.f32 %v5230_v2, %v4091_v3  ;;  %v6476_v5 = vpop.f32.mrb[49].mxu1  ;;  %v6987_v2 = vld [vmem:[#allocation31 + $0x28] sm:$0xff]   ;;  %v5364_v3 = vld [vmem:[%s8600_s18] ss:$0 sm:$0xff] }
 0x658   :  { %v4094_v6 = vpop.f32.mrb[50].mxu1 }
 0x659   :  { %v4098_v7 = vpack.c.bf16 %v8461_v4, %v8461_v4  ;;  %v6477_v8 = vpop.f32.mrb[51].mxu1 }
 0x65b   :  { %6495 = vmatmul.mubr.bf16.vlgmr.msra.gmra.mrb[76].mxu0 %v4098_v7 }
 0x65c   :  { %6534 = vmatprep.mubr.msk.bf16.mxu0 %vm7540_vm0, %v7539_v0  ;;  %6519 = vmatpush3.bf16.msra.mxu0 %v6958_v11 }
 0x65d   :  { %6520 = vmatprep.subr.bf16.mxu0 %v7539_v0 }
 0x660   :  { %6521 = vmatpush3.bf16.msra.mxu0 %v6959_v12  ;;  %v6988_v12 = vld [vmem:[#allocation31 + $0x30] sm:$0xff]  }
 0x661   :  { %6522 = vmatprep.subr.bf16.mxu0 %v7539_v0 }
 0x664   :  { %6523 = vmatpush3.bf16.msra.mxu0 %v6960_v13  ;;  %v6989_v13 = vld [vmem:[#allocation31 + $0x38] sm:$0xff]  }
 0x665   :  { %6524 = vmatprep.subr.bf16.mxu0 %v7539_v0 }
 0x668   :  { %6525 = vmatpush3.bf16.msra.mxu0 %v6961_v22  ;;  %v6990_v22 = vld [vmem:[#allocation32] sm:$0xff]  }
 0x669   :  { %6526 = vmatprep.subr.bf16.mxu0 %v7539_v0 }
 0x66c   :  { %6527 = vmatpush3.bf16.msra.mxu0 %v6962_v14  ;;  %v6991_v14 = vld [vmem:[#allocation32 + $0x8] sm:$0xff]  }
 0x66d   :  { %6528 = vmatprep.subr.bf16.mxu0 %v7539_v0 }
 0x670   :  { %6529 = vmatpush3.bf16.msra.mxu0 %v6963_v15  ;;  %v6992_v15 = vld [vmem:[#allocation32 + $0x10] sm:$0xff]  }
 0x671   :  { %6530 = vmatprep.subr.bf16.mxu0 %v7539_v0 }
 0x674   :  { %6531 = vmatpush3.bf16.msra.mxu0 %v6964_v17 }
 0x675   :  { %6532 = vmatprep.subr.bf16.mxu0 %v7539_v0 }
 0x678   :  { %6533 = vmatpush3.bf16.msra.mxu0 %v6965_v26 }
 0x679   :  { %6558 = vmatprep.subr.bf16.mxu0 %v7539_v0 }
 0x72e   :  { %v4204_v18 = vpop.f32.mrb[76].mxu0 }
 0x72f   :  { %v4205_v19 = vadd.f32 %v5337_v16, %v4204_v18  ;;  %v6496_v20 = vpop.f32.mrb[77].mxu0  ;;  %v6993_v16 = vld [vmem:[#allocation32 + $0x18] sm:$0xff]   ;;  %v6994_v18 = vld [vmem:[#allocation32 + $0x20] sm:$0xff]  }
 0x730   :  { %v4207_v21 = vpop.f32.mrb[78].mxu0  ;;  %v5373_v20 = vld [vmem:[%s8602_s20] ss:$0 sm:$0xff] }
 0x731   :  { %v4210_v23 = vmax.f32 %v4205_v19, 0.0  ;;  %v6497_v24 = vpop.f32.mrb[79].mxu0  ;;  %v6995_v19 = vld [vmem:[#allocation32 + $0x28] sm:$0xff]  }
 0x733   :  { %v4211_v25 = vpack.c.bf16 %v4210_v23, %v4210_v23 }
 0x735   :  { %6515 = vmatmul.mubr.bf16.vlgmr.msra.gmra.mrb[68].mxu1 %v4211_v25 }
 0x736   :  { %6554 = vmatprep.mubr.msk.bf16.mxu1 %vm7540_vm0, %v7539_v0  ;;  %6539 = vmatpush3.bf16.msra.mxu1 %v6966_v27 }
 0x737   :  { %6540 = vmatprep.subr.bf16.mxu1 %v7539_v0 }
 0x73a   :  { %6541 = vmatpush3.bf16.msra.mxu1 %v6967_v28  ;;  %v6996_v28 = vld [vmem:[#allocation32 + $0x30] sm:$0xff]  }
 0x73b   :  { %6542 = vmatprep.subr.bf16.mxu1 %v7539_v0 }
 0x73e   :  { %6543 = vmatpush3.bf16.msra.mxu1 %v6968_v29  ;;  %v6997_v29 = vld [vmem:[#allocation32 + $0x38] sm:$0xff]  }
 0x73f   :  { %6544 = vmatprep.subr.bf16.mxu1 %v7539_v0 }
 0x742   :  { %6545 = vmatpush3.bf16.msra.mxu1 %v6969_v30  ;;  %v6998_v30 = vld [vmem:[#allocation34] sm:$0xff]  }
 0x743   :  { %6546 = vmatprep.subr.bf16.mxu1 %v7539_v0 }
 0x746   :  { %6547 = vmatpush3.bf16.msra.mxu1 %v6970_v31  ;;  %v6999_v31 = vld [vmem:[#allocation34 + $0x8] sm:$0xff]  }
 0x747   :  { %6548 = vmatprep.subr.bf16.mxu1 %v7539_v0 }
 0x74a   :  { %6549 = vmatpush3.bf16.msra.mxu1 %v6971_v32  ;;  %v7000_v32 = vld [vmem:[#allocation34 + $0x10] sm:$0xff]  }
 0x74b   :  { %6550 = vmatprep.subr.bf16.mxu1 %v7539_v0 }
 0x74e   :  { %6551 = vmatpush3.bf16.msra.mxu1 %v6972_v43 }
 0x74f   :  { %6552 = vmatprep.subr.bf16.mxu1 %v7539_v0 }
 0x752   :  { %6553 = vmatpush3.bf16.msra.mxu1 %v6973_v44 }
 0x753   :  { %6578 = vmatprep.subr.bf16.mxu1 %v7539_v0 }
 0x808   :  { %v4317_v34 = vpop.f32.mrb[68].mxu1 }
 0x809   :  { %v4318_v35 = vadd.f32 %v5346_v33, %v4317_v34  ;;  %v6516_v36 = vpop.f32.mrb[69].mxu1  ;;  %v7001_v33 = vld [vmem:[#allocation34 + $0x18] sm:$0xff]   ;;  %v7002_v34 = vld [vmem:[#allocation34 + $0x20] sm:$0xff]  }
 0x80a   :  { %v4320_v38 = vpop.f32.mrb[70].mxu1  ;;  %v7004_v36 = vld [vmem:[#allocation34 + $0x30] sm:$0xff]  }
 0x80b   :  { %v4323_v39 = vadd.f32 %v8461_v4, %v4318_v35  ;;  %v6517_v40 = vpop.f32.mrb[71].mxu1  ;;  %v7003_v35 = vld [vmem:[#allocation34 + $0x28] sm:$0xff]   ;;  %v5382_v38 = vld [vmem:[%s8604_s22] ss:$0 sm:$0xff] }
 0x80d   :  { %v8504_v41 = vmax.f32 %v4323_v39, 0.0 }
 0x80f   :  { %v4325_v42 = vpack.c.bf16 %v8504_v41, %v8504_v41 }
 0x811   :  { %6535 = vmatmul.mubr.bf16.vlgmr.msra.gmra.mrb[80].mxu0 %v4325_v42 }
 0x812   :  { %6574 = vmatprep.mubr.msk.bf16.mxu0 %vm7540_vm0, %v7539_v0  ;;  %6559 = vmatpush3.bf16.msra.mxu0 %v6974_v45 }
 0x813   :  { %6560 = vmatprep.subr.bf16.mxu0 %v7539_v0 }
 0x816   :  { %6561 = vmatpush3.bf16.msra.mxu0 %v6975_v46  ;;  %v7005_v46 = vld [vmem:[#allocation34 + $0x38] sm:$0xff]  }
 0x817   :  { %6562 = vmatprep.subr.bf16.mxu0 %v7539_v0 }
 0x81a   :  { %6563 = vmatpush3.bf16.msra.mxu0 %v6976_v47  ;;  %v5391_v47 = vld [vmem:[%s8650_s2] ss:$0 sm:$0xff] }
 0x81b   :  { %6564 = vmatprep.subr.bf16.mxu0 %v7539_v0 }
 0x81e   :  { %6565 = vmatpush3.bf16.msra.mxu0 %v6977_v48 }
 0x81f   :  { %6566 = vmatprep.subr.bf16.mxu0 %v7539_v0 }
 0x822   :  { %6567 = vmatpush3.bf16.msra.mxu0 %v6978_v49 }
 0x823   :  { %6568 = vmatprep.subr.bf16.mxu0 %v7539_v0 }
 0x826   :  { %6569 = vmatpush3.bf16.msra.mxu0 %v6979_v50 }
 0x827   :  { %6570 = vmatprep.subr.bf16.mxu0 %v7539_v0 }
 0x82a   :  { %6571 = vmatpush3.bf16.msra.mxu0 %v6980_v59 }
 0x82b   :  { %6572 = vmatprep.subr.bf16.mxu0 %v7539_v0 }
 0x82e   :  { %6573 = vmatpush3.bf16.msra.mxu0 %v6981_v60 }
 0x82f   :  { %6598 = vmatprep.subr.bf16.mxu0 %v7539_v0 }
 0x8e4   :  { %v4431_v52 = vpop.f32.mrb[80].mxu0 }
 0x8e5   :  { %v4432_v53 = vadd.f32 %v5355_v51, %v4431_v52  ;;  %v6536_v54 = vpop.f32.mrb[81].mxu0 }
 0x8e6   :  { %v4434_v55 = vpop.f32.mrb[82].mxu0 }
 0x8e7   :  { %v4437_v56 = vmax.f32 %v4432_v53, 0.0  ;;  %v6537_v57 = vpop.f32.mrb[83].mxu0  ;;  %v5400_v53 = vld [vmem:[%s8651_s24] ss:$0 sm:$0xff] }
 0x8e9   :  { %v4438_v58 = vpack.c.bf16 %v4437_v56, %v4437_v56 }
 0x8eb   :  { %6555 = vmatmul.mubr.bf16.vlgmr.msra.gmra.mrb[72].mxu1 %v4438_v58 }
 0x8ec   :  { %6594 = vmatprep.mubr.msk.bf16.mxu1 %vm7540_vm0, %v7539_v0  ;;  %6579 = vmatpush3.bf16.msra.mxu1 %v6982_v61 }
 0x8ed   :  { %6580 = vmatprep.subr.bf16.mxu1 %v7539_v0 }
 0x8f0   :  { %6581 = vmatpush3.bf16.msra.mxu1 %v6983_v62 }
 0x8f1   :  { %6582 = vmatprep.subr.bf16.mxu1 %v7539_v0 }
 0x8f4   :  { %6583 = vmatpush3.bf16.msra.mxu1 %v6984_v37 }
 0x8f5   :  { %6584 = vmatprep.subr.bf16.mxu1 %v7539_v0 }
 0x8f8   :  { %6585 = vmatpush3.bf16.msra.mxu1 %v6985_v63 }
 0x8f9   :  { %6586 = vmatprep.subr.bf16.mxu1 %v7539_v0 }
 0x8fc   :  { %6587 = vmatpush3.bf16.msra.mxu1 %v6986_v1 }
 0x8fd   :  { %6588 = vmatprep.subr.bf16.mxu1 %v7539_v0 }
 0x900   :  { %6589 = vmatpush3.bf16.msra.mxu1 %v6987_v2 }
 0x901   :  { %6590 = vmatprep.subr.bf16.mxu1 %v7539_v0 }
 0x904   :  { %6591 = vmatpush3.bf16.msra.mxu1 %v6988_v12 }
 0x905   :  { %6592 = vmatprep.subr.bf16.mxu1 %v7539_v0 }
 0x908   :  { %6593 = vmatpush3.bf16.msra.mxu1 %v6989_v13 }
 0x909   :  { %6618 = vmatprep.subr.bf16.mxu1 %v7539_v0 }
 0x9be   :  { %v4544_v4 = vpop.f32.mrb[72].mxu1 }
 0x9bf   :  { %v4545_v5 = vadd.f32 %v5364_v3, %v4544_v4  ;;  %v6556_v6 = vpop.f32.mrb[73].mxu1 }
 0x9c0   :  { %v4547_v7 = vpop.f32.mrb[74].mxu1 }
 0x9c1   :  { %v4550_v8 = vadd.f32 %v4545_v5, %v8504_v41  ;;  %v6557_v9 = vpop.f32.mrb[75].mxu1 }
 0x9c3   :  { %v4551_v10 = vmax.f32 %v4550_v8, 0.0 }
 0x9c5   :  { %v4552_v11 = vpack.c.bf16 %v4551_v10, %v4551_v10 }
 0x9c7   :  { %6575 = vmatmul.mubr.bf16.vlgmr.msra.gmra.mrb[84].mxu0 %v4552_v11 }
 0x9c8   :  { %6614 = vmatprep.mubr.msk.bf16.mxu0 %vm7540_vm0, %v7539_v0  ;;  %6599 = vmatpush3.bf16.msra.mxu0 %v6990_v22 }
 0x9c9   :  { %6600 = vmatprep.subr.bf16.mxu0 %v7539_v0 }
 0x9cc   :  { %6601 = vmatpush3.bf16.msra.mxu0 %v6991_v14 }
 0x9cd   :  { %6602 = vmatprep.subr.bf16.mxu0 %v7539_v0 }
 0x9d0   :  { %6603 = vmatpush3.bf16.msra.mxu0 %v6992_v15 }
 0x9d1   :  { %6604 = vmatprep.subr.bf16.mxu0 %v7539_v0 }
 0x9d4   :  { %6605 = vmatpush3.bf16.msra.mxu0 %v6993_v16 }
 0x9d5   :  { %6606 = vmatprep.subr.bf16.mxu0 %v7539_v0 }
 0x9d8   :  { %6607 = vmatpush3.bf16.msra.mxu0 %v6994_v18 }
 0x9d9   :  { %6608 = vmatprep.subr.bf16.mxu0 %v7539_v0 }
 0x9dc   :  { %6609 = vmatpush3.bf16.msra.mxu0 %v6995_v19 }
 0x9dd   :  { %6610 = vmatprep.subr.bf16.mxu0 %v7539_v0 }
 0x9e0   :  { %6611 = vmatpush3.bf16.msra.mxu0 %v6996_v28 }
 0x9e1   :  { %6612 = vmatprep.subr.bf16.mxu0 %v7539_v0 }
 0x9e4   :  { %6613 = vmatpush3.bf16.msra.mxu0 %v6997_v29 }
 0xa9a   :  { %v4658_v21 = vpop.f32.mrb[84].mxu0 }
 0xa9b   :  { %v4659_v23 = vadd.f32 %v5373_v20, %v4658_v21  ;;  %v6576_v24 = vpop.f32.mrb[85].mxu0 }
 0xa9c   :  { %v4661_v25 = vpop.f32.mrb[86].mxu0 }
 0xa9d   :  { %v4664_v17 = vmax.f32 %v4659_v23, 0.0  ;;  %v6577_v26 = vpop.f32.mrb[87].mxu0 }
 0xa9f   :  { %v4665_v27 = vpack.c.bf16 %v4664_v17, %v4664_v17 }
 0xaa1   :  { %6595 = vmatmul.mubr.bf16.vlgmr.msra.gmra.mrb[76].mxu1 %v4665_v27 }
 0xaa2   :  { %6634 = vmatprep.mubr.msk.bf16.mxu1 %vm7540_vm0, %v7539_v0  ;;  %6619 = vmatpush3.bf16.msra.mxu1 %v6998_v30 }
 0xaa3   :  { %6620 = vmatprep.subr.bf16.mxu1 %v7539_v0 }
 0xaa6   :  { %6621 = vmatpush3.bf16.msra.mxu1 %v6999_v31 }
 0xaa7   :  { %6622 = vmatprep.subr.bf16.mxu1 %v7539_v0 }
 0xaaa   :  { %6623 = vmatpush3.bf16.msra.mxu1 %v7000_v32 }
 0xaab   :  { %6624 = vmatprep.subr.bf16.mxu1 %v7539_v0 }
 0xaae   :  { %6625 = vmatpush3.bf16.msra.mxu1 %v7001_v33 }
 0xaaf   :  { %6626 = vmatprep.subr.bf16.mxu1 %v7539_v0 }
 0xab2   :  { %6627 = vmatpush3.bf16.msra.mxu1 %v7002_v34 }
 0xab3   :  { %6628 = vmatprep.subr.bf16.mxu1 %v7539_v0 }
 0xab6   :  { %6629 = vmatpush3.bf16.msra.mxu1 %v7003_v35 }
 0xab7   :  { %6630 = vmatprep.subr.bf16.mxu1 %v7539_v0 }
 0xaba   :  { %6631 = vmatpush3.bf16.msra.mxu1 %v7004_v36 }
 0xabb   :  { %6632 = vmatprep.subr.bf16.mxu1 %v7539_v0 }
 0xabe   :  { %6633 = vmatpush3.bf16.msra.mxu1 %v7005_v46 }
 0xb74   :  { %v4771_v39 = vpop.f32.mrb[76].mxu1 }
 0xb75   :  { %v4772_v40 = vadd.f32 %v5382_v38, %v4771_v39  ;;  %v6596_v41 = vpop.f32.mrb[77].mxu1 }
 0xb76   :  { %v4774_v42 = vpop.f32.mrb[78].mxu1 }
 0xb77   :  { %v4777_v43 = vmax.f32 %v4772_v40, 0.0  ;;  %v6597_v44 = vpop.f32.mrb[79].mxu1 }
 0xb79   :  { %v4778_v45 = vpack.c.bf16 %v4777_v43, %v4777_v43 }
 0xb7b   :  { %6615 = vmatmul.mubr.bf16.vlgmr.msra.gmra.mrb[88].mxu0 %v4778_v45 }
 0xc4e   :  { %v4884_v48 = vpop.f32.mrb[88].mxu0 }
 0xc4f   :  { %v4885_v0 = vadd.f32 %v5391_v47, %v4884_v48  ;;  %v6616_v49 = vpop.f32.mrb[89].mxu0 }
 0xc50   :  { %v4887_v50 = vpop.f32.mrb[90].mxu0 }
 0xc51   :  { %v4890_v51 = vpack.c.bf16 %v4885_v0, %v4885_v0  ;;  %v6617_v52 = vpop.f32.mrb[91].mxu0 }
 0xc53   :  { %6635 = vmatmul.mubr.bf16.vlgmr.msra.gmra.mrb[80].mxu1 %v4890_v51 }
 0xd26   :  { %v4996_v54 = vpop.f32.mrb[80].mxu1 }
 0xd27   :  { %v4997_v55 = vadd.f32 %v5400_v53, %v4996_v54  ;;  %v6636_v56 = vpop.f32.mrb[81].mxu1 }
 0xd28   :  { %v4999_v57 = vpop.f32.mrb[82].mxu1 }
 0xd29   :  { %v5002_v58 = vpack.c.bf16 %v4997_v55, %v4997_v55  ;;  %v6637_v59 = vpop.f32.mrb[83].mxu1 }
 0xd2b   :  { %5003 = vst [vmem:[#allocation35] sm:$0xf] %v5002_v58 }
 0xd2c   :  { %7481 = shalt.err (!%p7478_p4)
}
 0xd2d   :  { %s8652_s11 = sld [smem:[#allocation62_spill]] }
 0xd33   :  { %s7482_s30 = scalar_lea.hbm %s8652_s11, 64 }
 0xd34   :  { %p7483_p5 = scmp.ne.s32.totalorder %s8652_s11, %s7482_s30  ;;  %p7486_p6 = scmp.lt.u32.totalorder %s7482_s30, %s8652_s11 }
 0xd36   :  { %p7488_p7 = pnand %p7486_p6, %p7483_p5 }
 0xd38   :  { %7491 = shalt.err (!%p7488_p7)
}
 0xd39   :  { %5013 = dma.vmem_to_hbm [thread:$0]  %s5011_s21, 64, %s8652_s11, [#allocation4]  }
 0xd3a   :  { %7514 = dma.done.wait [#allocation4], 64  }
 0xd3b   :  { %7515 = vsyncadd [#allocation4], 4294967232 }
 0xd3c   :  { %5017 = vsyncpa [#allocation3], 1 }
 0xd3d   :  { %5018 = vsyncpa [#allocation6], 1 }
 0xd3e   :  { %5019 = vsyncpa [#allocation9], 1 }
 0xd3f   :  { %5020 = vsyncpa [#allocation12], 1 }
 0xd40   :  { %5021 = vsyncpa [#allocation15], 1 }
 0xd41   :  { %5022 = vsyncpa [#allocation18], 1 }
 0xd42   :  { %5023 = vsyncpa [#allocation21], 1 }
 0xd43   :  { %5024 = vsyncpa [#allocation24], 1 }
 0xd44   :  { %5025 = vsyncpa [#allocation27], 1 }
 0xd45   :  { %5026 = vsyncpa [#allocation30], 1 }
 0xd46   :  { %5027 = vsyncpa [#allocation33], 1 }
 0xd47   :  { %5028 = vsyncpa [#allocation4], 1 }

</bundles_post_ra>
